<compile_context>
chip_gen: v6e
topology: v6e:2x2x1
jax: 0.10.0
libtpu: 0.0.40
codegen_flags: <defaults>
</compile_context>

<pallas_src>
import functools

import jax
import jax.numpy as jnp
from jax.experimental import pallas as pl
from jax.experimental.pallas import tpu as pltpu

BN_EPS = 1e-5
LEAKY_SLOPE = 0.01            # get_acti_func('leakyrelu', {'negative_slope': 0.01})
_LPAD = 8                     # left halo sits at column _LPAD-1 so the interior
                              # store into the scratch is sublane-aligned
_VMEM_LIMIT = 48 * 1024 * 1024  # budgeted under v7x's 64 MiB per-core VMEM


# ----------------------------------------------------------------------------
# Phase A: conv 3x3 (pad=1, no bias) + per-channel sum / sumsq accumulation
# ----------------------------------------------------------------------------
def _store_and_stats(acc, n, y_ref, s1_ref, s2_ref):
    """Write the pre-BN conv tile and accumulate global BN statistics."""
    y_ref[...] = acc

    @pl.when(n == 0)
    def _():
        s1_ref[...] = jnp.zeros_like(s1_ref)
        s2_ref[...] = jnp.zeros_like(s2_ref)

    # One-pass stats (sum and sum-of-squares); var is finalized in the wrapper.
    s1_ref[...] += jnp.sum(acc, axis=0, keepdims=True)
    s2_ref[...] += jnp.sum(acc * acc, axis=0, keepdims=True)


def _conv_stats_fused_kernel(x_ref, w_ref, y_ref, s1_ref, s2_ref, xpad_ref):
    """Fused path: in-kernel zero halo + single K=9*Cin bf16 matmul.

    x_ref   : (1, H, W, Cin)        f32 input block (one batch element)
    w_ref   : (9*Cin, Cout)         bf16 packed conv taps
    y_ref   : (H*W, Cout)           f32 pre-BN conv output block
    s1/s2   : (1, Cout)             f32 running sum / sumsq (revisited blocks)
    xpad_ref: (H+2, W+_LPAD+1, Cin) f32 VMEM scratch, halo kept at zero
    """
    n = pl.program_id(0)
    _, H, W, Cin = x_ref.shape

    @pl.when(n == 0)
    def _():
        # Zero once; the halo region is never overwritten by later steps.
        xpad_ref[...] = jnp.zeros_like(xpad_ref)

    # Interior lives at rows [1, H+1), columns [_LPAD, _LPAD+W): aligned store.
    xpad_ref[1:H + 1, _LPAD:_LPAD + W, :] = x_ref[0]

    # im2col: 9 shifted views concatenated along the contraction axis.
    taps = [xpad_ref[kh:kh + H, _LPAD - 1 + kw:_LPAD - 1 + kw + W, :]
            for kh in range(3) for kw in range(3)]
    patches = jnp.concatenate(taps, axis=-1).reshape(H * W, 9 * Cin)

    acc = jnp.dot(patches.astype(jnp.bfloat16), w_ref[...],
                  preferred_element_type=jnp.float32)          # (H*W, Cout) f32
    _store_and_stats(acc, n, y_ref, s1_ref, s2_ref)


def _conv_stats_taps_kernel(xp_ref, w_ref, y_ref, s1_ref, s2_ref):
    """Conservative fallback: pre-padded input, 9 accumulated tap matmuls."""
    n = pl.program_id(0)
    _, Hp, Wp, Cin = xp_ref.shape
    H, W = Hp - 2, Wp - 2
    Cout = w_ref.shape[-1]

    acc = jnp.zeros((H * W, Cout), jnp.float32)
    for kh in range(3):
        for kw in range(3):
            p = xp_ref[0, kh:kh + H, kw:kw + W, :].reshape(H * W, Cin)
            acc = acc + jnp.dot(p.astype(jnp.bfloat16), w_ref[kh * 3 + kw],
                                preferred_element_type=jnp.float32)
    _store_and_stats(acc, n, y_ref, s1_ref, s2_ref)


# ----------------------------------------------------------------------------
# Phase B: normalize + LeakyReLU on a lane-dense (rows, W*Cout) view
# ----------------------------------------------------------------------------
def _bn_act_kernel(y_ref, scale_ref, shift_ref, o_ref):
    z = y_ref[...] * scale_ref[...] + shift_ref[...]
    o_ref[...] = jnp.where(z >= 0.0, z, LEAKY_SLOPE * z)


def _pick_row_tile(rows, lane_elems):
    """Largest multiple-of-8 divisor of `rows` with an f32 block <= ~2 MiB."""
    budget_rows = max(8, (2 * 1024 * 1024) // (4 * lane_elems))
    best = rows
    for t in range(8, min(rows, budget_rows) + 1, 8):
        if rows % t == 0:
            best = t
    return best


# ----------------------------------------------------------------------------
# One ConvolutionLayer: conv3x3(pad=1) + train-mode BN + LeakyReLU   (NHWC)
# ----------------------------------------------------------------------------
def conv_bn_act(x_nhwc, w_pack, gamma, beta, *, fused=True):
    N, H, W, Cin = x_nhwc.shape
    Cout = w_pack.shape[-1]

    conv_params = pltpu.CompilerParams(
        # stats accumulate across the batch axis -> must stay 'arbitrary'
        dimension_semantics=("arbitrary",),
        vmem_limit_bytes=_VMEM_LIMIT)

    out_shapes = [jax.ShapeDtypeStruct((N * H * W, Cout), jnp.float32),
                  jax.ShapeDtypeStruct((1, Cout), jnp.float32),
                  jax.ShapeDtypeStruct((1, Cout), jnp.float32)]
    out_specs = [pl.BlockSpec((H * W, Cout), lambda n: (n, 0)),
                 pl.BlockSpec((1, Cout), lambda n: (0, 0)),
                 pl.BlockSpec((1, Cout), lambda n: (0, 0))]

    if fused:
        w2 = w_pack.reshape(9 * Cin, Cout)                 # free row-major reshape
        y_flat, s1, s2 = pl.pallas_call(
            _conv_stats_fused_kernel,
            grid=(N,),
            in_specs=[pl.BlockSpec((1, H, W, Cin), lambda n: (n, 0, 0, 0)),
                      pl.BlockSpec((9 * Cin, Cout), lambda n: (0, 0))],
            out_specs=out_specs,
            out_shape=out_shapes,
            scratch_shapes=[pltpu.VMEM((H + 2, W + _LPAD + 1, Cin), jnp.float32)],
            compiler_params=conv_params,
        )(x_nhwc, w2)
    else:
        # Fallback only: wrapper-side halo pad + per-tap matmuls (proven ops).
        xpad = jnp.pad(x_nhwc, ((0, 0), (1, 1), (1, 1), (0, 0)))
        y_flat, s1, s2 = pl.pallas_call(
            _conv_stats_taps_kernel,
            grid=(N,),
            in_specs=[pl.BlockSpec((1, H + 2, W + 2, Cin), lambda n: (n, 0, 0, 0)),
                      pl.BlockSpec((9, Cin, Cout), lambda n: (0, 0, 0))],
            out_specs=out_specs,
            out_shape=out_shapes,
            compiler_params=conv_params,
        )(xpad, w_pack)

    # --- finalize train-mode BN statistics (tiny per-channel arrays) --------
    cnt = jnp.float32(N * H * W)
    mean = s1 / cnt
    var = jnp.maximum(s2 / cnt - mean * mean, 0.0)         # biased variance
    scale = gamma.reshape(1, Cout) * jax.lax.rsqrt(var + BN_EPS)
    shift = beta.reshape(1, Cout) - mean * scale
    # Broadcast the per-channel affine to the lane-dense (w, c) column layout.
    scale_l = jnp.tile(scale, (1, W))                      # (1, W*Cout)
    shift_l = jnp.tile(shift, (1, W))

    # --- phase B: normalize + LeakyReLU, lane-dense tiles --------------------
    R, L = N * H, W * Cout
    TR = _pick_row_tile(R, L)
    y2 = y_flat.reshape(R, L)                              # free row-major reshape
    out2 = pl.pallas_call(
        _bn_act_kernel,
        grid=(R // TR,),
        in_specs=[pl.BlockSpec((TR, L), lambda i: (i, 0)),
                  pl.BlockSpec((1, L), lambda i: (0, 0)),
                  pl.BlockSpec((1, L), lambda i: (0, 0))],
        out_specs=pl.BlockSpec((TR, L), lambda i: (i, 0)),
        out_shape=jax.ShapeDtypeStruct((R, L), jnp.float32),
        compiler_params=pltpu.CompilerParams(
            dimension_semantics=("parallel",),             # megacore-shardable on v7x
            vmem_limit_bytes=_VMEM_LIMIT),
    )(y2, scale_l, shift_l)
    return out2.reshape(N, H, W, Cout)


# ----------------------------------------------------------------------------
# UNetBlock.forward: two (conv3x3 + BN + LeakyReLU) layers, NCHW in / NCHW out
# ----------------------------------------------------------------------------
def unet_block_forward(x_nchw, packed, *, fused=True):
    x = jnp.transpose(x_nchw, (0, 2, 3, 1))                # NCHW -> NHWC
    x = conv_bn_act(x, packed["w1"], packed["g1"], packed["be1"], fused=fused)
    x = conv_bn_act(x, packed["w2"], packed["g2"], packed["be2"], fused=fused)
    return jnp.transpose(x, (0, 3, 1, 2))                  # NHWC -> NCHW


def init_params(key, in_channels, out_channels):
    """Parameters in PyTorch layout (mirrors the torch module)."""
    k1, k2, k3, k4 = jax.random.split(key, 4)
    fan1, fan2 = in_channels * 9, out_channels * 9
    return {
        "w1": jax.random.normal(k1, (out_channels, in_channels, 3, 3), jnp.float32)
              * (1.0 / jnp.sqrt(fan1)),
        "b1": jax.random.normal(k2, (out_channels,), jnp.float32) * 0.01,
        "g1": jnp.ones((out_channels,), jnp.float32),
        "be1": jnp.zeros((out_channels,), jnp.float32),
        "w2": jax.random.normal(k3, (out_channels, out_channels, 3, 3), jnp.float32)
              * (1.0 / jnp.sqrt(fan2)),
        "b2": jax.random.normal(k4, (out_channels,), jnp.float32) * 0.01,
        "g2": jnp.ones((out_channels,), jnp.float32),
        "be2": jnp.zeros((out_channels,), jnp.float32),
    }


def pack_params(raw):
    """One-time packing, hoisted out of the forward pass:
       * (Cout, Cin, 3, 3) -> (9, Cin, Cout) bf16, tap-major (single K=9*Cin matmul);
       * conv biases dropped: a per-channel constant before train-mode BN is
         exactly cancelled by the mean subtraction (forward output unchanged).
    """
    def pack_w(w):
        co, ci = w.shape[0], w.shape[1]
        return (jnp.transpose(w, (2, 3, 1, 0))             # (3, 3, Cin, Cout)
                .reshape(9, ci, co)
                .astype(jnp.bfloat16))
    return {"w1": pack_w(raw["w1"]), "g1": raw["g1"], "be1": raw["be1"],
            "w2": pack_w(raw["w2"]), "g2": raw["g2"], "be2": raw["be2"]}


def _fused_path_ok():
    """Probe: compile + run the fused im2col path once on a tiny problem and
    cross-check it against the per-tap fallback.  Falls back gracefully if the
    Mosaic build rejects the unaligned lane concatenation."""
    try:
        k1, k2 = jax.random.split(jax.random.PRNGKey(42))
        xs = jax.random.normal(k1, (1, 8, 8, 4), jnp.float32)
        ws = (jax.random.normal(k2, (9, 4, 8), jnp.float32) * 0.1).astype(jnp.bfloat16)
        g = jnp.ones((8,), jnp.float32)
        b = jnp.zeros((8,), jnp.float32)
        fused = conv_bn_act(xs, ws, g, b, fused=True)
        ref = conv_bn_act(xs, ws, g, b, fused=False)
        return bool(jnp.allclose(fused, ref, atol=1e-2, rtol=1e-2))
    except Exception:
        return False


if __name__ == "__main__":
    key = jax.random.PRNGKey(0)
    kx, kp = jax.random.split(key)

    N, Cin, Cout, H, W = 2, 4, 8, 16, 16
    x = jax.random.normal(kx, (N, Cin, H, W), jnp.float32)   # NCHW, like PyTorch
    raw_params = init_params(kp, Cin, Cout)
    packed = pack_params(raw_params)                          # hoisted out of forward

    use_fused = _fused_path_ok()
    fwd = jax.jit(functools.partial(unet_block_forward, fused=use_fused))

    y = jax.block_until_ready(fwd(x, packed))

    assert y.shape == (N, Cout, H, W), y.shape
    assert bool(jnp.all(jnp.isfinite(y)))
    print("KERNEL_OK")
</pallas_src>

<mosaic_0001>
module attributes {stable_mosaic.version = 11 : i64} {
  func.func @_conv_stats_fused_kernel(%arg0: i32, %arg1: memref<1x8x8x4xf32, #tpu.memory_space<vmem>>, %arg2: memref<36x8xbf16, #tpu.memory_space<vmem>>, %arg3: memref<64x8xf32, #tpu.memory_space<vmem>>, %arg4: memref<1x8xf32, #tpu.memory_space<vmem>>, %arg5: memref<1x8xf32, #tpu.memory_space<vmem>>, %arg6: memref<10x17x4xf32, #tpu.memory_space<vmem>>) attributes {dimension_semantics = [#tpu.dimension_semantics<arbitrary>], iteration_bounds = array<i64: 1>, scalar_prefetch = 0 : i64, scratch_operands = 1 : i64, tpu.core_type = #tpu.core_type<tc>, window_params = [{transform_indices = @transform_0, window_bounds = array<i64: 1, 8, 8, 4>}, {pipeline_mode = #tpu.pipeline_mode<synchronous>, transform_indices = @transform_1, window_bounds = array<i64: 36, 8>}, {transform_indices = @transform_2, window_bounds = array<i64: 64, 8>}, {pipeline_mode = #tpu.pipeline_mode<synchronous>, transform_indices = @transform_3, window_bounds = array<i64: 1, 8>}, {pipeline_mode = #tpu.pipeline_mode<synchronous>, transform_indices = @transform_4, window_bounds = array<i64: 1, 8>}]} {
    %c0_i32 = arith.constant 0 : i32
    %0 = arith.cmpi eq, %arg0, %c0_i32 : i32
    %1 = arith.extui %0 : i1 to i32
    %c0_i32_0 = arith.constant 0 : i32
    %2 = arith.cmpi ne, %1, %c0_i32_0 : i32
    scf.if %2 {
      %cst_45 = arith.constant 0.000000e+00 : f32
      %35 = vector.broadcast %cst_45 : f32 to vector<10x17x4xf32>
      %c0_46 = arith.constant 0 : index
      %c0_47 = arith.constant 0 : index
      %c0_48 = arith.constant 0 : index
      %36 = vector.load %arg6[%c0_46, %c0_47, %c0_48] : memref<10x17x4xf32, #tpu.memory_space<vmem>>, vector<10x17x4xf32>
      tpu.vector_store %arg6[%c0_46, %c0_47, %c0_48], %35 {strides = array<i32>} : memref<10x17x4xf32, #tpu.memory_space<vmem>>, vector<10x17x4xf32>,
    } else {
    }
    %c0 = arith.constant 0 : index
    %c0_1 = arith.constant 0 : index
    %c0_2 = arith.constant 0 : index
    %c0_3 = arith.constant 0 : index
    %3 = vector.load %arg1[%c0, %c0_1, %c0_2, %c0_3] : memref<1x8x8x4xf32, #tpu.memory_space<vmem>>, vector<1x8x8x4xf32>
    %4 = vector.shape_cast %3 : vector<1x8x8x4xf32> to vector<8x8x4xf32>
    %c1 = arith.constant 1 : index
    %c8 = arith.constant 8 : index
    %c0_4 = arith.constant 0 : index
    %5 = vector.load %arg6[%c1, %c8, %c0_4] : memref<10x17x4xf32, #tpu.memory_space<vmem>>, vector<8x8x4xf32>
    tpu.vector_store %arg6[%c1, %c8, %c0_4], %4 {strides = array<i32>} : memref<10x17x4xf32, #tpu.memory_space<vmem>>, vector<8x8x4xf32>,
    %c0_5 = arith.constant 0 : index
    %c7 = arith.constant 7 : index
    %c0_6 = arith.constant 0 : index
    %6 = vector.load %arg6[%c0_5, %c7, %c0_6] : memref<10x17x4xf32, #tpu.memory_space<vmem>>, vector<8x8x4xf32>
    %c0_7 = arith.constant 0 : index
    %c8_8 = arith.constant 8 : index
    %c0_9 = arith.constant 0 : index
    %7 = vector.load %arg6[%c0_7, %c8_8, %c0_9] : memref<10x17x4xf32, #tpu.memory_space<vmem>>, vector<8x8x4xf32>
    %c0_10 = arith.constant 0 : index
    %c9 = arith.constant 9 : index
    %c0_11 = arith.constant 0 : index
    %8 = vector.load %arg6[%c0_10, %c9, %c0_11] : memref<10x17x4xf32, #tpu.memory_space<vmem>>, vector<8x8x4xf32>
    %c1_12 = arith.constant 1 : index
    %c7_13 = arith.constant 7 : index
    %c0_14 = arith.constant 0 : index
    %9 = vector.load %arg6[%c1_12, %c7_13, %c0_14] : memref<10x17x4xf32, #tpu.memory_space<vmem>>, vector<8x8x4xf32>
    %c1_15 = arith.constant 1 : index
    %c8_16 = arith.constant 8 : index
    %c0_17 = arith.constant 0 : index
    %10 = vector.load %arg6[%c1_15, %c8_16, %c0_17] : memref<10x17x4xf32, #tpu.memory_space<vmem>>, vector<8x8x4xf32>
    %c1_18 = arith.constant 1 : index
    %c9_19 = arith.constant 9 : index
    %c0_20 = arith.constant 0 : index
    %11 = vector.load %arg6[%c1_18, %c9_19, %c0_20] : memref<10x17x4xf32, #tpu.memory_space<vmem>>, vector<8x8x4xf32>
    %c2 = arith.constant 2 : index
    %c7_21 = arith.constant 7 : index
    %c0_22 = arith.constant 0 : index
    %12 = vector.load %arg6[%c2, %c7_21, %c0_22] : memref<10x17x4xf32, #tpu.memory_space<vmem>>, vector<8x8x4xf32>
    %c2_23 = arith.constant 2 : index
    %c8_24 = arith.constant 8 : index
    %c0_25 = arith.constant 0 : index
    %13 = vector.load %arg6[%c2_23, %c8_24, %c0_25] : memref<10x17x4xf32, #tpu.memory_space<vmem>>, vector<8x8x4xf32>
    %c2_26 = arith.constant 2 : index
    %c9_27 = arith.constant 9 : index
    %c0_28 = arith.constant 0 : index
    %14 = vector.load %arg6[%c2_26, %c9_27, %c0_28] : memref<10x17x4xf32, #tpu.memory_space<vmem>>, vector<8x8x4xf32>
    %15 = tpu.concatenate %6, %7, %8, %9, %10, %11, %12, %13, %14 in 2 : vector<8x8x4xf32>, vector<8x8x4xf32>, vector<8x8x4xf32>, vector<8x8x4xf32>, vector<8x8x4xf32>, vector<8x8x4xf32>, vector<8x8x4xf32>, vector<8x8x4xf32>, vector<8x8x4xf32> -> vector<8x8x36xf32>
    %16 = vector.shape_cast %15 : vector<8x8x36xf32> to vector<64x36xf32>
    %17 = arith.truncf %16 : vector<64x36xf32> to vector<64x36xbf16>
    %c0_29 = arith.constant 0 : index
    %c0_30 = arith.constant 0 : index
    %18 = vector.load %arg2[%c0_29, %c0_30] : memref<36x8xbf16, #tpu.memory_space<vmem>>, vector<36x8xbf16>
    %cst = arith.constant dense<0.000000e+00> : vector<64x8xf32>
    %19 = tpu.matmul %17, %18, %cst {dimension_numbers = #tpu.dot_dimension_numbers<[1], [0], [0], [1], [0, 0, 1, 1], [], []>} : vector<64x36xbf16>, vector<36x8xbf16>, vector<64x8xf32> -> vector<64x8xf32>
    %c0_31 = arith.constant 0 : index
    %c0_32 = arith.constant 0 : index
    %20 = vector.load %arg3[%c0_31, %c0_32] : memref<64x8xf32, #tpu.memory_space<vmem>>, vector<64x8xf32>
    tpu.vector_store %arg3[%c0_31, %c0_32], %19 {strides = array<i32>} : memref<64x8xf32, #tpu.memory_space<vmem>>, vector<64x8xf32>,
    %c0_i32_33 = arith.constant 0 : i32
    %21 = arith.cmpi eq, %arg0, %c0_i32_33 : i32
    %22 = arith.extui %21 : i1 to i32
    %c0_i32_34 = arith.constant 0 : i32
    %23 = arith.cmpi ne, %22, %c0_i32_34 : i32
    scf.if %23 {
      %cst_45 = arith.constant 0.000000e+00 : f32
      %35 = vector.broadcast %cst_45 : f32 to vector<1x8xf32>
      %c0_46 = arith.constant 0 : index
      %c0_47 = arith.constant 0 : index
      %36 = vector.load %arg4[%c0_46, %c0_47] : memref<1x8xf32, #tpu.memory_space<vmem>>, vector<1x8xf32>
      tpu.vector_store %arg4[%c0_46, %c0_47], %35 {strides = array<i32>} : memref<1x8xf32, #tpu.memory_space<vmem>>, vector<1x8xf32>,
      %cst_48 = arith.constant 0.000000e+00 : f32
      %37 = vector.broadcast %cst_48 : f32 to vector<1x8xf32>
      %c0_49 = arith.constant 0 : index
      %c0_50 = arith.constant 0 : index
      %38 = vector.load %arg5[%c0_49, %c0_50] : memref<1x8xf32, #tpu.memory_space<vmem>>, vector<1x8xf32>
      tpu.vector_store %arg5[%c0_49, %c0_50], %37 {strides = array<i32>} : memref<1x8xf32, #tpu.memory_space<vmem>>, vector<1x8xf32>,
    } else {
    }
    %c0_35 = arith.constant 0 : index
    %c0_36 = arith.constant 0 : index
    %24 = vector.load %arg4[%c0_35, %c0_36] : memref<1x8xf32, #tpu.memory_space<vmem>>, vector<1x8xf32>
    %cst_37 = arith.constant dense<0.000000e+00> : vector<8xf32>
    %25 = vector.multi_reduction <add>, %19, %cst_37 [0] : vector<64x8xf32> to vector<8xf32>
    %26 = vector.shape_cast %25 : vector<8xf32> to vector<1x8xf32>
    %27 = arith.addf %24, %26 : vector<1x8xf32>
    %c0_38 = arith.constant 0 : index
    %c0_39 = arith.constant 0 : index
    %28 = vector.load %arg4[%c0_38, %c0_39] : memref<1x8xf32, #tpu.memory_space<vmem>>, vector<1x8xf32>
    tpu.vector_store %arg4[%c0_38, %c0_39], %27 {strides = array<i32>} : memref<1x8xf32, #tpu.memory_space<vmem>>, vector<1x8xf32>,
    %c0_40 = arith.constant 0 : index
    %c0_41 = arith.constant 0 : index
    %29 = vector.load %arg5[%c0_40, %c0_41] : memref<1x8xf32, #tpu.memory_space<vmem>>, vector<1x8xf32>
    %30 = arith.mulf %19, %19 : vector<64x8xf32>
    %cst_42 = arith.constant dense<0.000000e+00> : vector<8xf32>
    %31 = vector.multi_reduction <add>, %30, %cst_42 [0] : vector<64x8xf32> to vector<8xf32>
    %32 = vector.shape_cast %31 : vector<8xf32> to vector<1x8xf32>
    %33 = arith.addf %29, %32 : vector<1x8xf32>
    %c0_43 = arith.constant 0 : index
    %c0_44 = arith.constant 0 : index
    %34 = vector.load %arg5[%c0_43, %c0_44] : memref<1x8xf32, #tpu.memory_space<vmem>>, vector<1x8xf32>
    tpu.vector_store %arg5[%c0_43, %c0_44], %33 {strides = array<i32>} : memref<1x8xf32, #tpu.memory_space<vmem>>, vector<1x8xf32>,
    return
  }
  func.func @transform_0(%arg0: i32) -> (i32, i32, i32, i32) {
    %c0_i32 = arith.constant 0 : i32
    %c0_i32_0 = arith.constant 0 : i32
    %c0_i32_1 = arith.constant 0 : i32
    %c0_i32_2 = arith.constant 0 : i32
    return %arg0, %c0_i32, %c0_i32_0, %c0_i32_1 : i32, i32, i32, i32
  }
  func.func @transform_1(%arg0: i32) -> (i32, i32) {
    %c0_i32 = arith.constant 0 : i32
    %c0_i32_0 = arith.constant 0 : i32
    %c0_i32_1 = arith.constant 0 : i32
    return %c0_i32, %c0_i32_0 : i32, i32
  }
  func.func @transform_2(%arg0: i32) -> (i32, i32) {
    %c0_i32 = arith.constant 0 : i32
    %c0_i32_0 = arith.constant 0 : i32
    return %arg0, %c0_i32 : i32, i32
  }
  func.func @transform_3(%arg0: i32) -> (i32, i32) {
    %c0_i32 = arith.constant 0 : i32
    %c0_i32_0 = arith.constant 0 : i32
    %c0_i32_1 = arith.constant 0 : i32
    return %c0_i32, %c0_i32_0 : i32, i32
  }
  func.func @transform_4(%arg0: i32) -> (i32, i32) {
    %c0_i32 = arith.constant 0 : i32
    %c0_i32_0 = arith.constant 0 : i32
    %c0_i32_1 = arith.constant 0 : i32
    return %c0_i32, %c0_i32_0 : i32, i32
  }
}

module attributes {stable_mosaic.version = 11 : i64} {
  func.func @_conv_stats_taps_kernel(%arg0: i32, %arg1: memref<1x18x18x4xf32, #tpu.memory_space<vmem>>, %arg2: memref<9x4x8xbf16, #tpu.memory_space<vmem>>, %arg3: memref<256x8xf32, #tpu.memory_space<vmem>>, %arg4: memref<1x8xf32, #tpu.memory_space<vmem>>, %arg5: memref<1x8xf32, #tpu.memory_space<vmem>>) attributes {dimension_semantics = [#tpu.dimension_semantics<arbitrary>], iteration_bounds = array<i64: 2>, scalar_prefetch = 0 : i64, scratch_operands = 0 : i64, tpu.core_type = #tpu.core_type<tc>, window_params = [{transform_indices = @transform_0, window_bounds = array<i64: 1, 18, 18, 4>}, {pipeline_mode = #tpu.pipeline_mode<synchronous>, transform_indices = @transform_1, window_bounds = array<i64: 9, 4, 8>}, {transform_indices = @transform_2, window_bounds = array<i64: 256, 8>}, {pipeline_mode = #tpu.pipeline_mode<synchronous>, transform_indices = @transform_3, window_bounds = array<i64: 1, 8>}, {pipeline_mode = #tpu.pipeline_mode<synchronous>, transform_indices = @transform_4, window_bounds = array<i64: 1, 8>}]} {
    %cst = arith.constant 0.000000e+00 : f32
    %0 = vector.broadcast %cst : f32 to vector<256x8xf32>
    %c0 = arith.constant 0 : index
    %c0_0 = arith.constant 0 : index
    %c0_1 = arith.constant 0 : index
    %c0_2 = arith.constant 0 : index
    %1 = vector.load %arg1[%c0, %c0_0, %c0_1, %c0_2] : memref<1x18x18x4xf32, #tpu.memory_space<vmem>>, vector<1x16x16x4xf32>
    %2 = vector.shape_cast %1 : vector<1x16x16x4xf32> to vector<16x16x4xf32>
    %3 = vector.shape_cast %2 : vector<16x16x4xf32> to vector<256x4xf32>
    %4 = arith.truncf %3 : vector<256x4xf32> to vector<256x4xbf16>
    %c0_3 = arith.constant 0 : index
    %c0_4 = arith.constant 0 : index
    %c0_5 = arith.constant 0 : index
    %5 = vector.load %arg2[%c0_3, %c0_4, %c0_5] : memref<9x4x8xbf16, #tpu.memory_space<vmem>>, vector<1x4x8xbf16>
    %6 = vector.shape_cast %5 : vector<1x4x8xbf16> to vector<4x8xbf16>
    %cst_6 = arith.constant dense<0.000000e+00> : vector<256x8xf32>
    %7 = tpu.matmul %4, %6, %cst_6 {dimension_numbers = #tpu.dot_dimension_numbers<[1], [0], [0], [1], [0, 0, 1, 1], [], []>} : vector<256x4xbf16>, vector<4x8xbf16>, vector<256x8xf32> -> vector<256x8xf32>
    %8 = arith.addf %0, %7 : vector<256x8xf32>
    %c0_7 = arith.constant 0 : index
    %c0_8 = arith.constant 0 : index
    %c1 = arith.constant 1 : index
    %c0_9 = arith.constant 0 : index
    %9 = vector.load %arg1[%c0_7, %c0_8, %c1, %c0_9] : memref<1x18x18x4xf32, #tpu.memory_space<vmem>>, vector<1x16x16x4xf32>
    %10 = vector.shape_cast %9 : vector<1x16x16x4xf32> to vector<16x16x4xf32>
    %11 = vector.shape_cast %10 : vector<16x16x4xf32> to vector<256x4xf32>
    %12 = arith.truncf %11 : vector<256x4xf32> to vector<256x4xbf16>
    %c1_10 = arith.constant 1 : index
    %c0_11 = arith.constant 0 : index
    %c0_12 = arith.constant 0 : index
    %13 = vector.load %arg2[%c1_10, %c0_11, %c0_12] : memref<9x4x8xbf16, #tpu.memory_space<vmem>>, vector<1x4x8xbf16>
    %14 = vector.shape_cast %13 : vector<1x4x8xbf16> to vector<4x8xbf16>
    %cst_13 = arith.constant dense<0.000000e+00> : vector<256x8xf32>
    %15 = tpu.matmul %12, %14, %cst_13 {dimension_numbers = #tpu.dot_dimension_numbers<[1], [0], [0], [1], [0, 0, 1, 1], [], []>} : vector<256x4xbf16>, vector<4x8xbf16>, vector<256x8xf32> -> vector<256x8xf32>
    %16 = arith.addf %8, %15 : vector<256x8xf32>
    %c0_14 = arith.constant 0 : index
    %c0_15 = arith.constant 0 : index
    %c2 = arith.constant 2 : index
    %c0_16 = arith.constant 0 : index
    %17 = vector.load %arg1[%c0_14, %c0_15, %c2, %c0_16] : memref<1x18x18x4xf32, #tpu.memory_space<vmem>>, vector<1x16x16x4xf32>
    %18 = vector.shape_cast %17 : vector<1x16x16x4xf32> to vector<16x16x4xf32>
    %19 = vector.shape_cast %18 : vector<16x16x4xf32> to vector<256x4xf32>
    %20 = arith.truncf %19 : vector<256x4xf32> to vector<256x4xbf16>
    %c2_17 = arith.constant 2 : index
    %c0_18 = arith.constant 0 : index
    %c0_19 = arith.constant 0 : index
    %21 = vector.load %arg2[%c2_17, %c0_18, %c0_19] : memref<9x4x8xbf16, #tpu.memory_space<vmem>>, vector<1x4x8xbf16>
    %22 = vector.shape_cast %21 : vector<1x4x8xbf16> to vector<4x8xbf16>
    %cst_20 = arith.constant dense<0.000000e+00> : vector<256x8xf32>
    %23 = tpu.matmul %20, %22, %cst_20 {dimension_numbers = #tpu.dot_dimension_numbers<[1], [0], [0], [1], [0, 0, 1, 1], [], []>} : vector<256x4xbf16>, vector<4x8xbf16>, vector<256x8xf32> -> vector<256x8xf32>
    %24 = arith.addf %16, %23 : vector<256x8xf32>
    %c0_21 = arith.constant 0 : index
    %c1_22 = arith.constant 1 : index
    %c0_23 = arith.constant 0 : index
    %c0_24 = arith.constant 0 : index
    %25 = vector.load %arg1[%c0_21, %c1_22, %c0_23, %c0_24] : memref<1x18x18x4xf32, #tpu.memory_space<vmem>>, vector<1x16x16x4xf32>
    %26 = vector.shape_cast %25 : vector<1x16x16x4xf32> to vector<16x16x4xf32>
    %27 = vector.shape_cast %26 : vector<16x16x4xf32> to vector<256x4xf32>
    %28 = arith.truncf %27 : vector<256x4xf32> to vector<256x4xbf16>
    %c3 = arith.constant 3 : index
    %c0_25 = arith.constant 0 : index
    %c0_26 = arith.constant 0 : index
    %29 = vector.load %arg2[%c3, %c0_25, %c0_26] : memref<9x4x8xbf16, #tpu.memory_space<vmem>>, vector<1x4x8xbf16>
    %30 = vector.shape_cast %29 : vector<1x4x8xbf16> to vector<4x8xbf16>
    %cst_27 = arith.constant dense<0.000000e+00> : vector<256x8xf32>
    %31 = tpu.matmul %28, %30, %cst_27 {dimension_numbers = #tpu.dot_dimension_numbers<[1], [0], [0], [1], [0, 0, 1, 1], [], []>} : vector<256x4xbf16>, vector<4x8xbf16>, vector<256x8xf32> -> vector<256x8xf32>
    %32 = arith.addf %24, %31 : vector<256x8xf32>
    %c0_28 = arith.constant 0 : index
    %c1_29 = arith.constant 1 : index
    %c1_30 = arith.constant 1 : index
    %c0_31 = arith.constant 0 : index
    %33 = vector.load %arg1[%c0_28, %c1_29, %c1_30, %c0_31] : memref<1x18x18x4xf32, #tpu.memory_space<vmem>>, vector<1x16x16x4xf32>
    %34 = vector.shape_cast %33 : vector<1x16x16x4xf32> to vector<16x16x4xf32>
    %35 = vector.shape_cast %34 : vector<16x16x4xf32> to vector<256x4xf32>
    %36 = arith.truncf %35 : vector<256x4xf32> to vector<256x4xbf16>
    %c4 = arith.constant 4 : index
    %c0_32 = arith.constant 0 : index
    %c0_33 = arith.constant 0 : index
    %37 = vector.load %arg2[%c4, %c0_32, %c0_33] : memref<9x4x8xbf16, #tpu.memory_space<vmem>>, vector<1x4x8xbf16>
    %38 = vector.shape_cast %37 : vector<1x4x8xbf16> to vector<4x8xbf16>
    %cst_34 = arith.constant dense<0.000000e+00> : vector<256x8xf32>
    %39 = tpu.matmul %36, %38, %cst_34 {dimension_numbers = #tpu.dot_dimension_numbers<[1], [0], [0], [1], [0, 0, 1, 1], [], []>} : vector<256x4xbf16>, vector<4x8xbf16>, vector<256x8xf32> -> vector<256x8xf32>
    %40 = arith.addf %32, %39 : vector<256x8xf32>
    %c0_35 = arith.constant 0 : index
    %c1_36 = arith.constant 1 : index
    %c2_37 = arith.constant 2 : index
    %c0_38 = arith.constant 0 : index
    %41 = vector.load %arg1[%c0_35, %c1_36, %c2_37, %c0_38] : memref<1x18x18x4xf32, #tpu.memory_space<vmem>>, vector<1x16x16x4xf32>
    %42 = vector.shape_cast %41 : vector<1x16x16x4xf32> to vector<16x16x4xf32>
    %43 = vector.shape_cast %42 : vector<16x16x4xf32> to vector<256x4xf32>
    %44 = arith.truncf %43 : vector<256x4xf32> to vector<256x4xbf16>
    %c5 = arith.constant 5 : index
    %c0_39 = arith.constant 0 : index
    %c0_40 = arith.constant 0 : index
    %45 = vector.load %arg2[%c5, %c0_39, %c0_40] : memref<9x4x8xbf16, #tpu.memory_space<vmem>>, vector<1x4x8xbf16>
    %46 = vector.shape_cast %45 : vector<1x4x8xbf16> to vector<4x8xbf16>
    %cst_41 = arith.constant dense<0.000000e+00> : vector<256x8xf32>
    %47 = tpu.matmul %44, %46, %cst_41 {dimension_numbers = #tpu.dot_dimension_numbers<[1], [0], [0], [1], [0, 0, 1, 1], [], []>} : vector<256x4xbf16>, vector<4x8xbf16>, vector<256x8xf32> -> vector<256x8xf32>
    %48 = arith.addf %40, %47 : vector<256x8xf32>
    %c0_42 = arith.constant 0 : index
    %c2_43 = arith.constant 2 : index
    %c0_44 = arith.constant 0 : index
    %c0_45 = arith.constant 0 : index
    %49 = vector.load %arg1[%c0_42, %c2_43, %c0_44, %c0_45] : memref<1x18x18x4xf32, #tpu.memory_space<vmem>>, vector<1x16x16x4xf32>
    %50 = vector.shape_cast %49 : vector<1x16x16x4xf32> to vector<16x16x4xf32>
    %51 = vector.shape_cast %50 : vector<16x16x4xf32> to vector<256x4xf32>
    %52 = arith.truncf %51 : vector<256x4xf32> to vector<256x4xbf16>
    %c6 = arith.constant 6 : index
    %c0_46 = arith.constant 0 : index
    %c0_47 = arith.constant 0 : index
    %53 = vector.load %arg2[%c6, %c0_46, %c0_47] : memref<9x4x8xbf16, #tpu.memory_space<vmem>>, vector<1x4x8xbf16>
    %54 = vector.shape_cast %53 : vector<1x4x8xbf16> to vector<4x8xbf16>
    %cst_48 = arith.constant dense<0.000000e+00> : vector<256x8xf32>
    %55 = tpu.matmul %52, %54, %cst_48 {dimension_numbers = #tpu.dot_dimension_numbers<[1], [0], [0], [1], [0, 0, 1, 1], [], []>} : vector<256x4xbf16>, vector<4x8xbf16>, vector<256x8xf32> -> vector<256x8xf32>
    %56 = arith.addf %48, %55 : vector<256x8xf32>
    %c0_49 = arith.constant 0 : index
    %c2_50 = arith.constant 2 : index
    %c1_51 = arith.constant 1 : index
    %c0_52 = arith.constant 0 : index
    %57 = vector.load %arg1[%c0_49, %c2_50, %c1_51, %c0_52] : memref<1x18x18x4xf32, #tpu.memory_space<vmem>>, vector<1x16x16x4xf32>
    %58 = vector.shape_cast %57 : vector<1x16x16x4xf32> to vector<16x16x4xf32>
    %59 = vector.shape_cast %58 : vector<16x16x4xf32> to vector<256x4xf32>
    %60 = arith.truncf %59 : vector<256x4xf32> to vector<256x4xbf16>
    %c7 = arith.constant 7 : index
    %c0_53 = arith.constant 0 : index
    %c0_54 = arith.constant 0 : index
    %61 = vector.load %arg2[%c7, %c0_53, %c0_54] : memref<9x4x8xbf16, #tpu.memory_space<vmem>>, vector<1x4x8xbf16>
    %62 = vector.shape_cast %61 : vector<1x4x8xbf16> to vector<4x8xbf16>
    %cst_55 = arith.constant dense<0.000000e+00> : vector<256x8xf32>
    %63 = tpu.matmul %60, %62, %cst_55 {dimension_numbers = #tpu.dot_dimension_numbers<[1], [0], [0], [1], [0, 0, 1, 1], [], []>} : vector<256x4xbf16>, vector<4x8xbf16>, vector<256x8xf32> -> vector<256x8xf32>
    %64 = arith.addf %56, %63 : vector<256x8xf32>
    %c0_56 = arith.constant 0 : index
    %c2_57 = arith.constant 2 : index
    %c2_58 = arith.constant 2 : index
    %c0_59 = arith.constant 0 : index
    %65 = vector.load %arg1[%c0_56, %c2_57, %c2_58, %c0_59] : memref<1x18x18x4xf32, #tpu.memory_space<vmem>>, vector<1x16x16x4xf32>
    %66 = vector.shape_cast %65 : vector<1x16x16x4xf32> to vector<16x16x4xf32>
    %67 = vector.shape_cast %66 : vector<16x16x4xf32> to vector<256x4xf32>
    %68 = arith.truncf %67 : vector<256x4xf32> to vector<256x4xbf16>
    %c8 = arith.constant 8 : index
    %c0_60 = arith.constant 0 : index
    %c0_61 = arith.constant 0 : index
    %69 = vector.load %arg2[%c8, %c0_60, %c0_61] : memref<9x4x8xbf16, #tpu.memory_space<vmem>>, vector<1x4x8xbf16>
    %70 = vector.shape_cast %69 : vector<1x4x8xbf16> to vector<4x8xbf16>
    %cst_62 = arith.constant dense<0.000000e+00> : vector<256x8xf32>
    %71 = tpu.matmul %68, %70, %cst_62 {dimension_numbers = #tpu.dot_dimension_numbers<[1], [0], [0], [1], [0, 0, 1, 1], [], []>} : vector<256x4xbf16>, vector<4x8xbf16>, vector<256x8xf32> -> vector<256x8xf32>
    %72 = arith.addf %64, %71 : vector<256x8xf32>
    %c0_63 = arith.constant 0 : index
    %c0_64 = arith.constant 0 : index
    %73 = vector.load %arg3[%c0_63, %c0_64] : memref<256x8xf32, #tpu.memory_space<vmem>>, vector<256x8xf32>
    tpu.vector_store %arg3[%c0_63, %c0_64], %72 {strides = array<i32>} : memref<256x8xf32, #tpu.memory_space<vmem>>, vector<256x8xf32>,
    %c0_i32 = arith.constant 0 : i32
    %74 = arith.cmpi eq, %arg0, %c0_i32 : i32
    %75 = arith.extui %74 : i1 to i32
    %c0_i32_65 = arith.constant 0 : i32
    %76 = arith.cmpi ne, %75, %c0_i32_65 : i32
    scf.if %76 {
      %cst_76 = arith.constant 0.000000e+00 : f32
      %88 = vector.broadcast %cst_76 : f32 to vector<1x8xf32>
      %c0_77 = arith.constant 0 : index
      %c0_78 = arith.constant 0 : index
      %89 = vector.load %arg4[%c0_77, %c0_78] : memref<1x8xf32, #tpu.memory_space<vmem>>, vector<1x8xf32>
      tpu.vector_store %arg4[%c0_77, %c0_78], %88 {strides = array<i32>} : memref<1x8xf32, #tpu.memory_space<vmem>>, vector<1x8xf32>,
      %cst_79 = arith.constant 0.000000e+00 : f32
      %90 = vector.broadcast %cst_79 : f32 to vector<1x8xf32>
      %c0_80 = arith.constant 0 : index
      %c0_81 = arith.constant 0 : index
      %91 = vector.load %arg5[%c0_80, %c0_81] : memref<1x8xf32, #tpu.memory_space<vmem>>, vector<1x8xf32>
      tpu.vector_store %arg5[%c0_80, %c0_81], %90 {strides = array<i32>} : memref<1x8xf32, #tpu.memory_space<vmem>>, vector<1x8xf32>,
    } else {
    }
    %c0_66 = arith.constant 0 : index
    %c0_67 = arith.constant 0 : index
    %77 = vector.load %arg4[%c0_66, %c0_67] : memref<1x8xf32, #tpu.memory_space<vmem>>, vector<1x8xf32>
    %cst_68 = arith.constant dense<0.000000e+00> : vector<8xf32>
    %78 = vector.multi_reduction <add>, %72, %cst_68 [0] : vector<256x8xf32> to vector<8xf32>
    %79 = vector.shape_cast %78 : vector<8xf32> to vector<1x8xf32>
    %80 = arith.addf %77, %79 : vector<1x8xf32>
    %c0_69 = arith.constant 0 : index
    %c0_70 = arith.constant 0 : index
    %81 = vector.load %arg4[%c0_69, %c0_70] : memref<1x8xf32, #tpu.memory_space<vmem>>, vector<1x8xf32>
    tpu.vector_store %arg4[%c0_69, %c0_70], %80 {strides = array<i32>} : memref<1x8xf32, #tpu.memory_space<vmem>>, vector<1x8xf32>,
    %c0_71 = arith.constant 0 : index
    %c0_72 = arith.constant 0 : index
    %82 = vector.load %arg5[%c0_71, %c0_72] : memref<1x8xf32, #tpu.memory_space<vmem>>, vector<1x8xf32>
    %83 = arith.mulf %72, %72 : vector<256x8xf32>
    %cst_73 = arith.constant dense<0.000000e+00> : vector<8xf32>
    %84 = vector.multi_reduction <add>, %83, %cst_73 [0] : vector<256x8xf32> to vector<8xf32>
    %85 = vector.shape_cast %84 : vector<8xf32> to vector<1x8xf32>
    %86 = arith.addf %82, %85 : vector<1x8xf32>
    %c0_74 = arith.constant 0 : index
    %c0_75 = arith.constant 0 : index
    %87 = vector.load %arg5[%c0_74, %c0_75] : memref<1x8xf32, #tpu.memory_space<vmem>>, vector<1x8xf32>
    tpu.vector_store %arg5[%c0_74, %c0_75], %86 {strides = array<i32>} : memref<1x8xf32, #tpu.memory_space<vmem>>, vector<1x8xf32>,
    return
  }
  func.func @transform_0(%arg0: i32) -> (i32, i32, i32, i32) {
    %c0_i32 = arith.constant 0 : i32
    %c0_i32_0 = arith.constant 0 : i32
    %c0_i32_1 = arith.constant 0 : i32
    %c0_i32_2 = arith.constant 0 : i32
    return %arg0, %c0_i32, %c0_i32_0, %c0_i32_1 : i32, i32, i32, i32
  }
  func.func @transform_1(%arg0: i32) -> (i32, i32, i32) {
    %c0_i32 = arith.constant 0 : i32
    %c0_i32_0 = arith.constant 0 : i32
    %c0_i32_1 = arith.constant 0 : i32
    %c0_i32_2 = arith.constant 0 : i32
    return %c0_i32, %c0_i32_0, %c0_i32_1 : i32, i32, i32
  }
  func.func @transform_2(%arg0: i32) -> (i32, i32) {
    %c0_i32 = arith.constant 0 : i32
    %c0_i32_0 = arith.constant 0 : i32
    return %arg0, %c0_i32 : i32, i32
  }
  func.func @transform_3(%arg0: i32) -> (i32, i32) {
    %c0_i32 = arith.constant 0 : i32
    %c0_i32_0 = arith.constant 0 : i32
    %c0_i32_1 = arith.constant 0 : i32
    return %c0_i32, %c0_i32_0 : i32, i32
  }
  func.func @transform_4(%arg0: i32) -> (i32, i32) {
    %c0_i32 = arith.constant 0 : i32
    %c0_i32_0 = arith.constant 0 : i32
    %c0_i32_1 = arith.constant 0 : i32
    return %c0_i32, %c0_i32_0 : i32, i32
  }
}

module attributes {stable_mosaic.version = 11 : i64} {
  func.func @_bn_act_kernel(%arg0: i32, %arg1: memref<32x128xf32, #tpu.memory_space<vmem>>, %arg2: memref<1x128xf32, #tpu.memory_space<vmem>>, %arg3: memref<1x128xf32, #tpu.memory_space<vmem>>, %arg4: memref<32x128xf32, #tpu.memory_space<vmem>>) attributes {dimension_semantics = [#tpu.dimension_semantics<parallel>], iteration_bounds = array<i64: 1>, scalar_prefetch = 0 : i64, scratch_operands = 0 : i64, tpu.core_type = #tpu.core_type<tc>, window_params = [{transform_indices = @transform_0, window_bounds = array<i64: 32, 128>}, {pipeline_mode = #tpu.pipeline_mode<synchronous>, transform_indices = @transform_1, window_bounds = array<i64: 1, 128>}, {pipeline_mode = #tpu.pipeline_mode<synchronous>, transform_indices = @transform_2, window_bounds = array<i64: 1, 128>}, {transform_indices = @transform_3, window_bounds = array<i64: 32, 128>}]} {
    %c0 = arith.constant 0 : index
    %c0_0 = arith.constant 0 : index
    %0 = vector.load %arg1[%c0, %c0_0] : memref<32x128xf32, #tpu.memory_space<vmem>>, vector<32x128xf32>
    %c0_1 = arith.constant 0 : index
    %c0_2 = arith.constant 0 : index
    %1 = vector.load %arg2[%c0_1, %c0_2] : memref<1x128xf32, #tpu.memory_space<vmem>>, vector<1x128xf32>
    %2 = vector.broadcast %1 : vector<1x128xf32> to vector<32x128xf32>
    %3 = arith.mulf %0, %2 : vector<32x128xf32>
    %c0_3 = arith.constant 0 : index
    %c0_4 = arith.constant 0 : index
    %4 = vector.load %arg3[%c0_3, %c0_4] : memref<1x128xf32, #tpu.memory_space<vmem>>, vector<1x128xf32>
    %5 = vector.broadcast %4 : vector<1x128xf32> to vector<32x128xf32>
    %6 = arith.addf %3, %5 : vector<32x128xf32>
    %cst = arith.constant 0.000000e+00 : f32
    %7 = vector.broadcast %cst : f32 to vector<32x128xf32>
    %8 = arith.cmpf oge, %6, %7 : vector<32x128xf32>
    %cst_5 = arith.constant 0.00999999977 : f32
    %9 = vector.broadcast %cst_5 : f32 to vector<32x128xf32>
    %10 = arith.mulf %9, %6 : vector<32x128xf32>
    %11 = arith.select %8, %6, %10 : vector<32x128xi1>, vector<32x128xf32>
    %c0_6 = arith.constant 0 : index
    %c0_7 = arith.constant 0 : index
    %12 = vector.load %arg4[%c0_6, %c0_7] : memref<32x128xf32, #tpu.memory_space<vmem>>, vector<32x128xf32>
    tpu.vector_store %arg4[%c0_6, %c0_7], %11 {strides = array<i32>} : memref<32x128xf32, #tpu.memory_space<vmem>>, vector<32x128xf32>,
    return
  }
  func.func @transform_0(%arg0: i32) -> (i32, i32) {
    %c0_i32 = arith.constant 0 : i32
    %c0_i32_0 = arith.constant 0 : i32
    return %arg0, %c0_i32 : i32, i32
  }
  func.func @transform_1(%arg0: i32) -> (i32, i32) {
    %c0_i32 = arith.constant 0 : i32
    %c0_i32_0 = arith.constant 0 : i32
    %c0_i32_1 = arith.constant 0 : i32
    return %c0_i32, %c0_i32_0 : i32, i32
  }
  func.func @transform_2(%arg0: i32) -> (i32, i32) {
    %c0_i32 = arith.constant 0 : i32
    %c0_i32_0 = arith.constant 0 : i32
    %c0_i32_1 = arith.constant 0 : i32
    return %c0_i32, %c0_i32_0 : i32, i32
  }
  func.func @transform_3(%arg0: i32) -> (i32, i32) {
    %c0_i32 = arith.constant 0 : i32
    %c0_i32_0 = arith.constant 0 : i32
    return %arg0, %c0_i32 : i32, i32
  }
}

module attributes {stable_mosaic.version = 11 : i64} {
  func.func @_conv_stats_taps_kernel(%arg0: i32, %arg1: memref<1x18x18x8xf32, #tpu.memory_space<vmem>>, %arg2: memref<9x8x8xbf16, #tpu.memory_space<vmem>>, %arg3: memref<256x8xf32, #tpu.memory_space<vmem>>, %arg4: memref<1x8xf32, #tpu.memory_space<vmem>>, %arg5: memref<1x8xf32, #tpu.memory_space<vmem>>) attributes {dimension_semantics = [#tpu.dimension_semantics<arbitrary>], iteration_bounds = array<i64: 2>, scalar_prefetch = 0 : i64, scratch_operands = 0 : i64, tpu.core_type = #tpu.core_type<tc>, window_params = [{transform_indices = @transform_0, window_bounds = array<i64: 1, 18, 18, 8>}, {pipeline_mode = #tpu.pipeline_mode<synchronous>, transform_indices = @transform_1, window_bounds = array<i64: 9, 8, 8>}, {transform_indices = @transform_2, window_bounds = array<i64: 256, 8>}, {pipeline_mode = #tpu.pipeline_mode<synchronous>, transform_indices = @transform_3, window_bounds = array<i64: 1, 8>}, {pipeline_mode = #tpu.pipeline_mode<synchronous>, transform_indices = @transform_4, window_bounds = array<i64: 1, 8>}]} {
    %cst = arith.constant 0.000000e+00 : f32
    %0 = vector.broadcast %cst : f32 to vector<256x8xf32>
    %c0 = arith.constant 0 : index
    %c0_0 = arith.constant 0 : index
    %c0_1 = arith.constant 0 : index
    %c0_2 = arith.constant 0 : index
    %1 = vector.load %arg1[%c0, %c0_0, %c0_1, %c0_2] : memref<1x18x18x8xf32, #tpu.memory_space<vmem>>, vector<1x16x16x8xf32>
    %2 = vector.shape_cast %1 : vector<1x16x16x8xf32> to vector<16x16x8xf32>
    %3 = vector.shape_cast %2 : vector<16x16x8xf32> to vector<256x8xf32>
    %4 = arith.truncf %3 : vector<256x8xf32> to vector<256x8xbf16>
    %c0_3 = arith.constant 0 : index
    %c0_4 = arith.constant 0 : index
    %c0_5 = arith.constant 0 : index
    %5 = vector.load %arg2[%c0_3, %c0_4, %c0_5] : memref<9x8x8xbf16, #tpu.memory_space<vmem>>, vector<1x8x8xbf16>
    %6 = vector.shape_cast %5 : vector<1x8x8xbf16> to vector<8x8xbf16>
    %cst_6 = arith.constant dense<0.000000e+00> : vector<256x8xf32>
    %7 = tpu.matmul %4, %6, %cst_6 {dimension_numbers = #tpu.dot_dimension_numbers<[1], [0], [0], [1], [0, 0, 1, 1], [], []>} : vector<256x8xbf16>, vector<8x8xbf16>, vector<256x8xf32> -> vector<256x8xf32>
    %8 = arith.addf %0, %7 : vector<256x8xf32>
    %c0_7 = arith.constant 0 : index
    %c0_8 = arith.constant 0 : index
    %c1 = arith.constant 1 : index
    %c0_9 = arith.constant 0 : index
    %9 = vector.load %arg1[%c0_7, %c0_8, %c1, %c0_9] : memref<1x18x18x8xf32, #tpu.memory_space<vmem>>, vector<1x16x16x8xf32>
    %10 = vector.shape_cast %9 : vector<1x16x16x8xf32> to vector<16x16x8xf32>
    %11 = vector.shape_cast %10 : vector<16x16x8xf32> to vector<256x8xf32>
    %12 = arith.truncf %11 : vector<256x8xf32> to vector<256x8xbf16>
    %c1_10 = arith.constant 1 : index
    %c0_11 = arith.constant 0 : index
    %c0_12 = arith.constant 0 : index
    %13 = vector.load %arg2[%c1_10, %c0_11, %c0_12] : memref<9x8x8xbf16, #tpu.memory_space<vmem>>, vector<1x8x8xbf16>
    %14 = vector.shape_cast %13 : vector<1x8x8xbf16> to vector<8x8xbf16>
    %cst_13 = arith.constant dense<0.000000e+00> : vector<256x8xf32>
    %15 = tpu.matmul %12, %14, %cst_13 {dimension_numbers = #tpu.dot_dimension_numbers<[1], [0], [0], [1], [0, 0, 1, 1], [], []>} : vector<256x8xbf16>, vector<8x8xbf16>, vector<256x8xf32> -> vector<256x8xf32>
    %16 = arith.addf %8, %15 : vector<256x8xf32>
    %c0_14 = arith.constant 0 : index
    %c0_15 = arith.constant 0 : index
    %c2 = arith.constant 2 : index
    %c0_16 = arith.constant 0 : index
    %17 = vector.load %arg1[%c0_14, %c0_15, %c2, %c0_16] : memref<1x18x18x8xf32, #tpu.memory_space<vmem>>, vector<1x16x16x8xf32>
    %18 = vector.shape_cast %17 : vector<1x16x16x8xf32> to vector<16x16x8xf32>
    %19 = vector.shape_cast %18 : vector<16x16x8xf32> to vector<256x8xf32>
    %20 = arith.truncf %19 : vector<256x8xf32> to vector<256x8xbf16>
    %c2_17 = arith.constant 2 : index
    %c0_18 = arith.constant 0 : index
    %c0_19 = arith.constant 0 : index
    %21 = vector.load %arg2[%c2_17, %c0_18, %c0_19] : memref<9x8x8xbf16, #tpu.memory_space<vmem>>, vector<1x8x8xbf16>
    %22 = vector.shape_cast %21 : vector<1x8x8xbf16> to vector<8x8xbf16>
    %cst_20 = arith.constant dense<0.000000e+00> : vector<256x8xf32>
    %23 = tpu.matmul %20, %22, %cst_20 {dimension_numbers = #tpu.dot_dimension_numbers<[1], [0], [0], [1], [0, 0, 1, 1], [], []>} : vector<256x8xbf16>, vector<8x8xbf16>, vector<256x8xf32> -> vector<256x8xf32>
    %24 = arith.addf %16, %23 : vector<256x8xf32>
    %c0_21 = arith.constant 0 : index
    %c1_22 = arith.constant 1 : index
    %c0_23 = arith.constant 0 : index
    %c0_24 = arith.constant 0 : index
    %25 = vector.load %arg1[%c0_21, %c1_22, %c0_23, %c0_24] : memref<1x18x18x8xf32, #tpu.memory_space<vmem>>, vector<1x16x16x8xf32>
    %26 = vector.shape_cast %25 : vector<1x16x16x8xf32> to vector<16x16x8xf32>
    %27 = vector.shape_cast %26 : vector<16x16x8xf32> to vector<256x8xf32>
    %28 = arith.truncf %27 : vector<256x8xf32> to vector<256x8xbf16>
    %c3 = arith.constant 3 : index
    %c0_25 = arith.constant 0 : index
    %c0_26 = arith.constant 0 : index
    %29 = vector.load %arg2[%c3, %c0_25, %c0_26] : memref<9x8x8xbf16, #tpu.memory_space<vmem>>, vector<1x8x8xbf16>
    %30 = vector.shape_cast %29 : vector<1x8x8xbf16> to vector<8x8xbf16>
    %cst_27 = arith.constant dense<0.000000e+00> : vector<256x8xf32>
    %31 = tpu.matmul %28, %30, %cst_27 {dimension_numbers = #tpu.dot_dimension_numbers<[1], [0], [0], [1], [0, 0, 1, 1], [], []>} : vector<256x8xbf16>, vector<8x8xbf16>, vector<256x8xf32> -> vector<256x8xf32>
    %32 = arith.addf %24, %31 : vector<256x8xf32>
    %c0_28 = arith.constant 0 : index
    %c1_29 = arith.constant 1 : index
    %c1_30 = arith.constant 1 : index
    %c0_31 = arith.constant 0 : index
    %33 = vector.load %arg1[%c0_28, %c1_29, %c1_30, %c0_31] : memref<1x18x18x8xf32, #tpu.memory_space<vmem>>, vector<1x16x16x8xf32>
    %34 = vector.shape_cast %33 : vector<1x16x16x8xf32> to vector<16x16x8xf32>
    %35 = vector.shape_cast %34 : vector<16x16x8xf32> to vector<256x8xf32>
    %36 = arith.truncf %35 : vector<256x8xf32> to vector<256x8xbf16>
    %c4 = arith.constant 4 : index
    %c0_32 = arith.constant 0 : index
    %c0_33 = arith.constant 0 : index
    %37 = vector.load %arg2[%c4, %c0_32, %c0_33] : memref<9x8x8xbf16, #tpu.memory_space<vmem>>, vector<1x8x8xbf16>
    %38 = vector.shape_cast %37 : vector<1x8x8xbf16> to vector<8x8xbf16>
    %cst_34 = arith.constant dense<0.000000e+00> : vector<256x8xf32>
    %39 = tpu.matmul %36, %38, %cst_34 {dimension_numbers = #tpu.dot_dimension_numbers<[1], [0], [0], [1], [0, 0, 1, 1], [], []>} : vector<256x8xbf16>, vector<8x8xbf16>, vector<256x8xf32> -> vector<256x8xf32>
    %40 = arith.addf %32, %39 : vector<256x8xf32>
    %c0_35 = arith.constant 0 : index
    %c1_36 = arith.constant 1 : index
    %c2_37 = arith.constant 2 : index
    %c0_38 = arith.constant 0 : index
    %41 = vector.load %arg1[%c0_35, %c1_36, %c2_37, %c0_38] : memref<1x18x18x8xf32, #tpu.memory_space<vmem>>, vector<1x16x16x8xf32>
    %42 = vector.shape_cast %41 : vector<1x16x16x8xf32> to vector<16x16x8xf32>
    %43 = vector.shape_cast %42 : vector<16x16x8xf32> to vector<256x8xf32>
    %44 = arith.truncf %43 : vector<256x8xf32> to vector<256x8xbf16>
    %c5 = arith.constant 5 : index
    %c0_39 = arith.constant 0 : index
    %c0_40 = arith.constant 0 : index
    %45 = vector.load %arg2[%c5, %c0_39, %c0_40] : memref<9x8x8xbf16, #tpu.memory_space<vmem>>, vector<1x8x8xbf16>
    %46 = vector.shape_cast %45 : vector<1x8x8xbf16> to vector<8x8xbf16>
    %cst_41 = arith.constant dense<0.000000e+00> : vector<256x8xf32>
    %47 = tpu.matmul %44, %46, %cst_41 {dimension_numbers = #tpu.dot_dimension_numbers<[1], [0], [0], [1], [0, 0, 1, 1], [], []>} : vector<256x8xbf16>, vector<8x8xbf16>, vector<256x8xf32> -> vector<256x8xf32>
    %48 = arith.addf %40, %47 : vector<256x8xf32>
    %c0_42 = arith.constant 0 : index
    %c2_43 = arith.constant 2 : index
    %c0_44 = arith.constant 0 : index
    %c0_45 = arith.constant 0 : index
    %49 = vector.load %arg1[%c0_42, %c2_43, %c0_44, %c0_45] : memref<1x18x18x8xf32, #tpu.memory_space<vmem>>, vector<1x16x16x8xf32>
    %50 = vector.shape_cast %49 : vector<1x16x16x8xf32> to vector<16x16x8xf32>
    %51 = vector.shape_cast %50 : vector<16x16x8xf32> to vector<256x8xf32>
    %52 = arith.truncf %51 : vector<256x8xf32> to vector<256x8xbf16>
    %c6 = arith.constant 6 : index
    %c0_46 = arith.constant 0 : index
    %c0_47 = arith.constant 0 : index
    %53 = vector.load %arg2[%c6, %c0_46, %c0_47] : memref<9x8x8xbf16, #tpu.memory_space<vmem>>, vector<1x8x8xbf16>
    %54 = vector.shape_cast %53 : vector<1x8x8xbf16> to vector<8x8xbf16>
    %cst_48 = arith.constant dense<0.000000e+00> : vector<256x8xf32>
    %55 = tpu.matmul %52, %54, %cst_48 {dimension_numbers = #tpu.dot_dimension_numbers<[1], [0], [0], [1], [0, 0, 1, 1], [], []>} : vector<256x8xbf16>, vector<8x8xbf16>, vector<256x8xf32> -> vector<256x8xf32>
    %56 = arith.addf %48, %55 : vector<256x8xf32>
    %c0_49 = arith.constant 0 : index
    %c2_50 = arith.constant 2 : index
    %c1_51 = arith.constant 1 : index
    %c0_52 = arith.constant 0 : index
    %57 = vector.load %arg1[%c0_49, %c2_50, %c1_51, %c0_52] : memref<1x18x18x8xf32, #tpu.memory_space<vmem>>, vector<1x16x16x8xf32>
    %58 = vector.shape_cast %57 : vector<1x16x16x8xf32> to vector<16x16x8xf32>
    %59 = vector.shape_cast %58 : vector<16x16x8xf32> to vector<256x8xf32>
    %60 = arith.truncf %59 : vector<256x8xf32> to vector<256x8xbf16>
    %c7 = arith.constant 7 : index
    %c0_53 = arith.constant 0 : index
    %c0_54 = arith.constant 0 : index
    %61 = vector.load %arg2[%c7, %c0_53, %c0_54] : memref<9x8x8xbf16, #tpu.memory_space<vmem>>, vector<1x8x8xbf16>
    %62 = vector.shape_cast %61 : vector<1x8x8xbf16> to vector<8x8xbf16>
    %cst_55 = arith.constant dense<0.000000e+00> : vector<256x8xf32>
    %63 = tpu.matmul %60, %62, %cst_55 {dimension_numbers = #tpu.dot_dimension_numbers<[1], [0], [0], [1], [0, 0, 1, 1], [], []>} : vector<256x8xbf16>, vector<8x8xbf16>, vector<256x8xf32> -> vector<256x8xf32>
    %64 = arith.addf %56, %63 : vector<256x8xf32>
    %c0_56 = arith.constant 0 : index
    %c2_57 = arith.constant 2 : index
    %c2_58 = arith.constant 2 : index
    %c0_59 = arith.constant 0 : index
    %65 = vector.load %arg1[%c0_56, %c2_57, %c2_58, %c0_59] : memref<1x18x18x8xf32, #tpu.memory_space<vmem>>, vector<1x16x16x8xf32>
    %66 = vector.shape_cast %65 : vector<1x16x16x8xf32> to vector<16x16x8xf32>
    %67 = vector.shape_cast %66 : vector<16x16x8xf32> to vector<256x8xf32>
    %68 = arith.truncf %67 : vector<256x8xf32> to vector<256x8xbf16>
    %c8 = arith.constant 8 : index
    %c0_60 = arith.constant 0 : index
    %c0_61 = arith.constant 0 : index
    %69 = vector.load %arg2[%c8, %c0_60, %c0_61] : memref<9x8x8xbf16, #tpu.memory_space<vmem>>, vector<1x8x8xbf16>
    %70 = vector.shape_cast %69 : vector<1x8x8xbf16> to vector<8x8xbf16>
    %cst_62 = arith.constant dense<0.000000e+00> : vector<256x8xf32>
    %71 = tpu.matmul %68, %70, %cst_62 {dimension_numbers = #tpu.dot_dimension_numbers<[1], [0], [0], [1], [0, 0, 1, 1], [], []>} : vector<256x8xbf16>, vector<8x8xbf16>, vector<256x8xf32> -> vector<256x8xf32>
    %72 = arith.addf %64, %71 : vector<256x8xf32>
    %c0_63 = arith.constant 0 : index
    %c0_64 = arith.constant 0 : index
    %73 = vector.load %arg3[%c0_63, %c0_64] : memref<256x8xf32, #tpu.memory_space<vmem>>, vector<256x8xf32>
    tpu.vector_store %arg3[%c0_63, %c0_64], %72 {strides = array<i32>} : memref<256x8xf32, #tpu.memory_space<vmem>>, vector<256x8xf32>,
    %c0_i32 = arith.constant 0 : i32
    %74 = arith.cmpi eq, %arg0, %c0_i32 : i32
    %75 = arith.extui %74 : i1 to i32
    %c0_i32_65 = arith.constant 0 : i32
    %76 = arith.cmpi ne, %75, %c0_i32_65 : i32
    scf.if %76 {
      %cst_76 = arith.constant 0.000000e+00 : f32
      %88 = vector.broadcast %cst_76 : f32 to vector<1x8xf32>
      %c0_77 = arith.constant 0 : index
      %c0_78 = arith.constant 0 : index
      %89 = vector.load %arg4[%c0_77, %c0_78] : memref<1x8xf32, #tpu.memory_space<vmem>>, vector<1x8xf32>
      tpu.vector_store %arg4[%c0_77, %c0_78], %88 {strides = array<i32>} : memref<1x8xf32, #tpu.memory_space<vmem>>, vector<1x8xf32>,
      %cst_79 = arith.constant 0.000000e+00 : f32
      %90 = vector.broadcast %cst_79 : f32 to vector<1x8xf32>
      %c0_80 = arith.constant 0 : index
      %c0_81 = arith.constant 0 : index
      %91 = vector.load %arg5[%c0_80, %c0_81] : memref<1x8xf32, #tpu.memory_space<vmem>>, vector<1x8xf32>
      tpu.vector_store %arg5[%c0_80, %c0_81], %90 {strides = array<i32>} : memref<1x8xf32, #tpu.memory_space<vmem>>, vector<1x8xf32>,
    } else {
    }
    %c0_66 = arith.constant 0 : index
    %c0_67 = arith.constant 0 : index
    %77 = vector.load %arg4[%c0_66, %c0_67] : memref<1x8xf32, #tpu.memory_space<vmem>>, vector<1x8xf32>
    %cst_68 = arith.constant dense<0.000000e+00> : vector<8xf32>
    %78 = vector.multi_reduction <add>, %72, %cst_68 [0] : vector<256x8xf32> to vector<8xf32>
    %79 = vector.shape_cast %78 : vector<8xf32> to vector<1x8xf32>
    %80 = arith.addf %77, %79 : vector<1x8xf32>
    %c0_69 = arith.constant 0 : index
    %c0_70 = arith.constant 0 : index
    %81 = vector.load %arg4[%c0_69, %c0_70] : memref<1x8xf32, #tpu.memory_space<vmem>>, vector<1x8xf32>
    tpu.vector_store %arg4[%c0_69, %c0_70], %80 {strides = array<i32>} : memref<1x8xf32, #tpu.memory_space<vmem>>, vector<1x8xf32>,
    %c0_71 = arith.constant 0 : index
    %c0_72 = arith.constant 0 : index
    %82 = vector.load %arg5[%c0_71, %c0_72] : memref<1x8xf32, #tpu.memory_space<vmem>>, vector<1x8xf32>
    %83 = arith.mulf %72, %72 : vector<256x8xf32>
    %cst_73 = arith.constant dense<0.000000e+00> : vector<8xf32>
    %84 = vector.multi_reduction <add>, %83, %cst_73 [0] : vector<256x8xf32> to vector<8xf32>
    %85 = vector.shape_cast %84 : vector<8xf32> to vector<1x8xf32>
    %86 = arith.addf %82, %85 : vector<1x8xf32>
    %c0_74 = arith.constant 0 : index
    %c0_75 = arith.constant 0 : index
    %87 = vector.load %arg5[%c0_74, %c0_75] : memref<1x8xf32, #tpu.memory_space<vmem>>, vector<1x8xf32>
    tpu.vector_store %arg5[%c0_74, %c0_75], %86 {strides = array<i32>} : memref<1x8xf32, #tpu.memory_space<vmem>>, vector<1x8xf32>,
    return
  }
  func.func @transform_0(%arg0: i32) -> (i32, i32, i32, i32) {
    %c0_i32 = arith.constant 0 : i32
    %c0_i32_0 = arith.constant 0 : i32
    %c0_i32_1 = arith.constant 0 : i32
    %c0_i32_2 = arith.constant 0 : i32
    return %arg0, %c0_i32, %c0_i32_0, %c0_i32_1 : i32, i32, i32, i32
  }
  func.func @transform_1(%arg0: i32) -> (i32, i32, i32) {
    %c0_i32 = arith.constant 0 : i32
    %c0_i32_0 = arith.constant 0 : i32
    %c0_i32_1 = arith.constant 0 : i32
    %c0_i32_2 = arith.constant 0 : i32
    return %c0_i32, %c0_i32_0, %c0_i32_1 : i32, i32, i32
  }
  func.func @transform_2(%arg0: i32) -> (i32, i32) {
    %c0_i32 = arith.constant 0 : i32
    %c0_i32_0 = arith.constant 0 : i32
    return %arg0, %c0_i32 : i32, i32
  }
  func.func @transform_3(%arg0: i32) -> (i32, i32) {
    %c0_i32 = arith.constant 0 : i32
    %c0_i32_0 = arith.constant 0 : i32
    %c0_i32_1 = arith.constant 0 : i32
    return %c0_i32, %c0_i32_0 : i32, i32
  }
  func.func @transform_4(%arg0: i32) -> (i32, i32) {
    %c0_i32 = arith.constant 0 : i32
    %c0_i32_0 = arith.constant 0 : i32
    %c0_i32_1 = arith.constant 0 : i32
    return %c0_i32, %c0_i32_0 : i32, i32
  }
}

</mosaic_0001>

<bundles_post_ra>
// kernel: tpu_custom_call.1
= control target key start
LH: loop header
LB: loop body
LE: loop exit
PB: predicated region body
PF: predicated region fallthrough
CT: control target
= control target key end

     0   :  { %10 = vsyncpa [#allocation4], 0  ;;  %vm21_vm0 = vcmask 31744   ;;  %vm24_vm1 = vcmask 24576   ;;  %v934_v1 = vmov 0.0   ;;  %s1273_s0 = inlined_call_operand.vmem [shape: f32[1,8,8,4], index: 0, kind: input, shape index: {}]   ;;  %s1274_s1 = inlined_call_operand.vmem [shape: bf16[36,8], index: 1, kind: input, shape index: {}]   ;;  %s1275_s2 = inlined_call_operand.vmem [shape: f32[64,8], index: 2, kind: output, shape index: {0}]   ;;  %s1276_s3 = inlined_call_operand.hbm [shape: f32[1,8], index: 3, kind: output, shape index: {1}]   ;;  %s1277_s4 = inlined_call_operand.hbm [shape: f32[1,8], index: 4, kind: output, shape index: {2}]  }
   0x1   :  { %v53_v0 = vld [vmem:[%s1273_s0] sm:$0xff]  ;;  %23 = vst.msk [vmem:[#allocation2 + $0x8] sm:$0xff] %vm21_vm0, %v934_v1  ;;  %27 = vst.msk [vmem:[#allocation2 + $0x20] sm:$0xff] %vm21_vm0, %v934_v1  ;;  %v54_v2 = vld [vmem:[%s1273_s0 + $0x8] sm:$0xff] }
   0x2   :  { %25 = vst.msk [vmem:[#allocation2 + $0x10] sm:$0x1] %vm24_vm1, %v934_v1  ;;  %28 = vst.msk [vmem:[#allocation2 + $0x28] sm:$0x1] %vm24_vm1, %v934_v1  ;;  %v55_v3 = vld [vmem:[%s1273_s0 + $0x10] sm:$0xff]  ;;  %v56_v4 = vld [vmem:[%s1273_s0 + $0x18] sm:$0xff] }
   0x3   :  { %22 = vst.msk [vmem:[#allocation2] sm:$0xff] %vm21_vm0, %v934_v1  ;;  %26 = vst.msk [vmem:[#allocation2 + $0x18] sm:$0xff] %vm21_vm0, %v934_v1  ;;  %v57_v5 = vld [vmem:[%s1273_s0 + $0x20] sm:$0xff]  ;;  %v58_v6 = vld [vmem:[%s1273_s0 + $0x28] sm:$0xff] }
   0x4   :  { %29 = vst.msk [vmem:[#allocation2 + $0x30] sm:$0xff] %vm21_vm0, %v934_v1  ;;  %30 = vst.msk [vmem:[#allocation2 + $0x38] sm:$0xff] %vm21_vm0, %v934_v1  ;;  %v59_v7 = vld [vmem:[%s1273_s0 + $0x30] sm:$0xff]  ;;  %v60_v8 = vld [vmem:[%s1273_s0 + $0x38] sm:$0xff] }
   0x5   :  { %31 = vst.msk [vmem:[#allocation2 + $0x40] sm:$0x1] %vm24_vm1, %v934_v1  ;;  %34 = vst.msk [vmem:[#allocation2 + $0x58] sm:$0x1] %vm24_vm1, %v934_v1 }
   0x6   :  { %32 = vst.msk [vmem:[#allocation2 + $0x48] sm:$0xff] %vm21_vm0, %v934_v1  ;;  %33 = vst.msk [vmem:[#allocation2 + $0x50] sm:$0xff] %vm21_vm0, %v934_v1 }
   0x7   :  { %35 = vst.msk [vmem:[#allocation2 + $0x60] sm:$0xff] %vm21_vm0, %v934_v1  ;;  %36 = vst.msk [vmem:[#allocation2 + $0x68] sm:$0xff] %vm21_vm0, %v934_v1 }
   0x8   :  { %37 = vst.msk [vmem:[#allocation2 + $0x70] sm:$0x1] %vm24_vm1, %v934_v1  ;;  %40 = vst.msk [vmem:[#allocation2 + $0x88] sm:$0x1] %vm24_vm1, %v934_v1 }
   0x9   :  { %38 = vst.msk [vmem:[#allocation2 + $0x78] sm:$0xff] %vm21_vm0, %v934_v1  ;;  %39 = vst.msk [vmem:[#allocation2 + $0x80] sm:$0xff] %vm21_vm0, %v934_v1 }
   0xa   :  { %41 = vst.msk [vmem:[#allocation2 + $0x90] sm:$0xff] %vm21_vm0, %v934_v1  ;;  %42 = vst.msk [vmem:[#allocation2 + $0x98] sm:$0xff] %vm21_vm0, %v934_v1 }
   0xb   :  { %43 = vst.msk [vmem:[#allocation2 + $0xa0] sm:$0x1] %vm24_vm1, %v934_v1  ;;  %46 = vst.msk [vmem:[#allocation2 + $0xb8] sm:$0x1] %vm24_vm1, %v934_v1 }
   0xc   :  { %44 = vst.msk [vmem:[#allocation2 + $0xa8] sm:$0xff] %vm21_vm0, %v934_v1  ;;  %45 = vst.msk [vmem:[#allocation2 + $0xb0] sm:$0xff] %vm21_vm0, %v934_v1 }
   0xd   :  { %47 = vst.msk [vmem:[#allocation2 + $0xc0] sm:$0xff] %vm21_vm0, %v934_v1  ;;  %48 = vst.msk [vmem:[#allocation2 + $0xc8] sm:$0xff] %vm21_vm0, %v934_v1 }
   0xe   :  { %49 = vst.msk [vmem:[#allocation2 + $0xd0] sm:$0x1] %vm24_vm1, %v934_v1  ;;  %52 = vst.msk [vmem:[#allocation2 + $0xe8] sm:$0x1] %vm24_vm1, %v934_v1 }
   0xf   :  { %50 = vst.msk [vmem:[#allocation2 + $0xd8] sm:$0xff] %vm21_vm0, %v934_v1  ;;  %51 = vst.msk [vmem:[#allocation2 + $0xe0] sm:$0xff] %vm21_vm0, %v934_v1 }
  0x10   :  { %63 = vst.msk [vmem:[#allocation2 + $0x20] sm:$0xff] %vm21_vm0, %v53_v0  ;;  %64 = vst.msk [vmem:[#allocation2 + $0x38] sm:$0xff] %vm21_vm0, %v54_v2 }
  0x11   :  { %65 = vst.msk [vmem:[#allocation2 + $0x50] sm:$0xff] %vm21_vm0, %v55_v3  ;;  %66 = vst.msk [vmem:[#allocation2 + $0x68] sm:$0xff] %vm21_vm0, %v56_v4 }
  0x12   :  { %67 = vst.msk [vmem:[#allocation2 + $0x80] sm:$0xff] %vm21_vm0, %v57_v5  ;;  %68 = vst.msk [vmem:[#allocation2 + $0x98] sm:$0xff] %vm21_vm0, %v58_v6 }
  0x13   :  { %69 = vst.msk [vmem:[#allocation2 + $0xb0] sm:$0xff] %vm21_vm0, %v59_v7  ;;  %70 = vst.msk [vmem:[#allocation2 + $0xc8] sm:$0xff] %vm21_vm0, %v60_v8 }
  0x14   :  { %11 = vsyncpa [#allocation6], 0  ;;  %v87_v9 = vld [vmem:[#allocation2 + $0x9] sm:$0xff]  ;;  %s935_s5 = smov 8   ;;  %s936_s6 = smov 4   ;;  %vm508_vm2 = vcmask 1041408  }
  0x15   :  { %v79_v10 = vld [vmem:[#allocation2 + $0x8] sm:$0xff]  ;;  %s937_s0 = smov 12   ;;  %v887_v31 = vld [vmem:[%s1274_s1 + $0x10] ss:$0 sps:$4 sm:$0x33]   ;;  %s938_s9 = smov 16  }
  0x16   :  { %v510_v34 = vsel %vm508_vm2, %v887_v31, 0  ;;  %714 = vmatprep.subr.msk.bf16.mxu0 %vm508_vm2, %v887_v31  ;;  %715 = vmatprep.subr.msk.bf16.mxu1 %vm508_vm2, %v887_v31  ;;  %v888_v36 = vld [vmem:[%s1274_s1 + $0x8] sm:$0xff]   ;;  %s939_s12 = smov 20   ;;  %v889_v40 = vld [vmem:[%s1274_s1] sm:$0xff]   ;;  %s940_s15 = smov 24   ;;  %vm408_vm3 = vcmask 64512  }
  0x17   :  { %v88_v11 = vld [vmem:[#allocation2 + $0x21] sm:$0xff]  ;;  %v89_v13 = vld [vmem:[#allocation2 + $0x39] sm:$0xff]  ;;  %695 = vmatpush3.bf16.msra.mxu0 %v510_v34  ;;  %711 = vmatpush3.bf16.msra.mxu1 %v510_v34  ;;  %s941_s16 = smov 28   ;;  %s942_s1 = smov 32   ;;  %vm417_vm4 = vcmask 97280   ;;  %vm426_vm5 = vcmask 130048  }
  0x18   :  { %v80_v12 = vld [vmem:[#allocation2 + $0x20] sm:$0xff]  ;;  %v737_v14 = vpack.i.bf16 %v88_v11, %v87_v9  ;;  %v90_v16 = vld [vmem:[#allocation2 + $0x51] sm:$0xff]  ;;  %v106_v27 = vld [vmem:[#allocation2 + $0x68] sm:$0xff]  ;;  %v767_v33 = vpack.i.bf16 %v89_v13, %v88_v11  ;;  %696 = vmatprep.subr.bf16.mxu0 %v888_v36  ;;  %709 = vmatprep.subr.bf16.mxu1 %v888_v36  ;;  %vm435_vm6 = vcmask 162816   ;;  %vm444_vm7 = vcmask 195584   ;;  %s944_s7 = smov [#allocation5]  }
  0x19   :  { %v727_v15 = vpack.i.bf16 %v80_v12, %v79_v10  ;;  %v81_v17 = vld [vmem:[#allocation2 + $0x38] sm:$0xff]  ;;  %v82_v18 = vld [vmem:[#allocation2 + $0x50] sm:$0xff]  ;;  %v742_v19 = vpack.i.bf16 %v90_v16, %v89_v13  ;;  %v1066_v22 = vld [vmem:[#allocation2 + $0x67] sm:$0xff]  ;;  %vm453_vm8 = vcmask 228352   ;;  %vm462_vm9 = vcmask 261120   ;;  %s666_s8 = sshll.u32 %s944_s7, 4  ;;  %s667_s8 = int_to_ptr.vmem [resolvable:$true] %s666_s8 }
  0x1a   :  { %738 = vrot.lane.b32.xlu1 %v737_v14, %s935_s5  ;;  %v732_v20 = vpack.i.bf16 %v82_v18, %v81_v17  ;;  %v1064_v21 = vld [vmem:[#allocation2 + $0x4f] sm:$0xff]  ;;  %v1068_v23 = vld [vmem:[#allocation2 + $0x1f] sm:$0xff]  ;;  %v1070_v24 = vld [vmem:[#allocation2 + $0x37] sm:$0xff]  ;;  %v762_v28 = vpack.i.bf16 %v106_v27, %v82_v18  ;;  %v757_v29 = vpack.i.bf16 %v81_v17, %v80_v12  ;;  %vm495_vm10 = vcmask 293888  }
  0x1b   :  { %728 = vrot.lane.b32.xlu0 %v727_v15, %s936_s6  ;;  %v752_v25 = vpack.i.bf16 %v1066_v22, %v1064_v21  ;;  %v747_v26 = vpack.i.bf16 %v1070_v24, %v1068_v23  ;;  %v114_v30 = vld [vmem:[#allocation2 + $0x69] sm:$0xff]  ;;  %v1085_v35 = vld [vmem:[#allocation2 + $0x7f] sm:$0xff]  ;;  %v777_v38 = vpack.i.bf16 %v1064_v21, %v1070_v24  ;;  %697 = vmatpush3.bf16.msra.mxu0 %v888_v36  ;;  %v94_v48 = vld [vmem:[#allocation2 + $0xb1] sm:$0xff]  ;;  %vm588_vm11 = vcmask 57344  }
  0x1c   :  { %v772_v32 = vpack.i.bf16 %v114_v30, %v90_v16  ;;  %v782_v37 = vpack.i.bf16 %v1085_v35, %v1066_v22  ;;  %v131_v39 = vld [vmem:[#allocation2 + $0x80] sm:$0xff]  ;;  %712 = vmatpush3.bf16.msra.mxu1 %v888_v36  ;;  %698 = vmatprep.subr.bf16.mxu0 %v889_v40  ;;  %v85_v42 = vld [vmem:[#allocation2 + $0x98] sm:$0xff]  ;;  %v86_v43 = vld [vmem:[#allocation2 + $0xb0] sm:$0xff]  ;;  %589 = vst.msk [vmem:[#allocation3] sm:$0x1] %vm588_vm11, %v934_v1 }
  0x1d   :  { %v792_v41 = vpack.i.bf16 %v131_v39, %v106_v27  ;;  %710 = vmatprep.subr.bf16.mxu1 %v889_v40  ;;  %v139_v44 = vld [vmem:[#allocation2 + $0x81] sm:$0xff]  ;;  %v812_v45 = vpack.i.bf16 %v86_v43, %v85_v42  ;;  %v93_v47 = vld [vmem:[#allocation2 + $0x99] sm:$0xff]  ;;  %v1107_v50 = vld [vmem:[#allocation2 + $0xaf] sm:$0xff]  ;;  %v837_v57 = vpack.i.bf16 %v85_v42, %v131_v39  ;;  %590 = vst.msk [vmem:[#allocation5] sm:$0x1] %vm588_vm11, %v934_v1 }
  0x1e   :  { %743 = vrot.lane.b32.xlu1 %v742_v19, %s935_s5  ;;  %v807_v46 = vpack.i.bf16 %v139_v44, %v114_v30  ;;  %v822_v49 = vpack.i.bf16 %v94_v48, %v93_v47  ;;  %v102_v51 = vld [vmem:[#allocation2 + $0xc7] sm:$0xff]  ;;  %v1109_v52 = vld [vmem:[#allocation2 + $0x97] sm:$0xff]  ;;  %v847_v60 = vpack.i.bf16 %v93_v47, %v139_v44  ;;  %v127_v61 = vld [vmem:[#allocation2 + $0xdf] sm:$0xff] }
  0x1f   :  { %733 = vrot.lane.b32.xlu0 %v732_v20, %s936_s6  ;;  %699 = vmatpush3.bf16.msra.mxu0 %v889_v40  ;;  %v832_v53 = vpack.i.bf16 %v102_v51, %v1107_v50  ;;  %v827_v54 = vpack.i.bf16 %v1109_v52, %v1085_v35  ;;  %v110_v55 = vld [vmem:[#allocation2 + $0xc8] sm:$0xff]  ;;  %v862_v62 = vpack.i.bf16 %v127_v61, %v102_v51  ;;  %v135_v0 = vld [vmem:[#allocation2 + $0xe0] sm:$0xff] }
  0x20   :  { %713 = vmatpush3.bf16.msra.mxu1 %v889_v40  ;;  %v842_v56 = vpack.i.bf16 %v110_v55, %v86_v43  ;;  %v118_v58 = vld [vmem:[#allocation2 + $0xc9] sm:$0xff]  ;;  %v857_v63 = vpack.i.bf16 %v1107_v50, %v1109_v52  ;;  %v872_v2 = vpack.i.bf16 %v135_v0, %v110_v55  ;;  %v143_v3 = vld [vmem:[#allocation2 + $0xe1] sm:$0xff] }
  0x21   :  { %v852_v59 = vpack.i.bf16 %v118_v58, %v94_v48  ;;  %v882_v4 = vpack.i.bf16 %v143_v3, %v118_v58  ;;  %v71_v15 = vld [vmem:[#allocation2 + $0x7] sm:$0xff] }
  0x22   :  { %753 = vrot.lane.b32.xlu1 %v752_v25, %s937_s0 }
  0x23   :  { %748 = vrot.lane.b32.xlu0 %v747_v26, %s937_s0 }
  0x26   :  { %763 = vrot.lane.b32.xlu1 %v762_v28, %s938_s9 }
  0x27   :  { %758 = vrot.lane.b32.xlu0 %v757_v29, %s938_s9 }
  0x2a   :  { %773 = vrot.lane.b32.xlu1 %v772_v32, %s939_s12 }
  0x2b   :  { %768 = vrot.lane.b32.xlu0 %v767_v33, %s939_s12 }
  0x2e   :  { %783 = vrot.lane.b32.xlu1 %v782_v37, %s940_s15 }
  0x2f   :  { %778 = vrot.lane.b32.xlu0 %v777_v38, %s940_s15 }
  0x32   :  { %793 = vrot.lane.b32.xlu1 %v792_v41, %s941_s16 }
  0x33   :  { %788 = vrot.lane.b32.xlu0 %v732_v20, %s941_s16 }
  0x36   :  { %803 = vrot.lane.b32.xlu1 %v792_v41, %s936_s6 }
  0x37   :  { %798 = vrot.lane.b32.xlu0 %v742_v19, %s942_s1 }
  0x3a   :  { %813 = vrot.lane.b32.xlu1 %v812_v45, %s936_s6 }
  0x3b   :  { %808 = vrot.lane.b32.xlu0 %v807_v46, %s942_s1 }
  0x3e   :  { %823 = vrot.lane.b32.xlu1 %v822_v49, %s935_s5 }
  0x3f   :  { %818 = vrot.lane.b32.xlu0 %v807_v46, %s935_s5 }
  0x42   :  { %833 = vrot.lane.b32.xlu1 %v832_v53, %s937_s0 }
  0x43   :  { %828 = vrot.lane.b32.xlu0 %v827_v54, %s937_s0 }
  0x46   :  { %843 = vrot.lane.b32.xlu1 %v842_v56, %s938_s9 }
  0x47   :  { %838 = vrot.lane.b32.xlu0 %v837_v57, %s938_s9 }
  0x4a   :  { %853 = vrot.lane.b32.xlu1 %v852_v59, %s939_s12 }
  0x4b   :  { %848 = vrot.lane.b32.xlu0 %v847_v60, %s939_s12 }
  0x4e   :  { %863 = vrot.lane.b32.xlu1 %v862_v62, %s940_s15 }
  0x4f   :  { %858 = vrot.lane.b32.xlu0 %v857_v63, %s940_s15 }
  0x52   :  { %873 = vrot.lane.b32.xlu1 %v872_v2, %s941_s16 }
  0x53   :  { %868 = vrot.lane.b32.xlu0 %v812_v45, %s941_s16 }
  0x56   :  { %883 = vrot.lane.b32.xlu1 %v882_v4, %s942_s1 }
  0x57   :  { %878 = vrot.lane.b32.xlu0 %v822_v49, %s942_s1 }
  0x8c   :  { %v739_v5 = vpop.permute.xlu1 %738 }
  0x8d   :  { %v729_v6 = vpop.permute.xlu0 %728  ;;  %v741_v20 = vunpack.i.h.bf16 %v739_v5  ;;  %v740_v25 = vunpack.i.l.bf16 %v739_v5 }
  0x8e   :  { %v731_v13 = vunpack.i.h.bf16 %v729_v6  ;;  %v730_v14 = vunpack.i.l.bf16 %v729_v6 }
  0x90   :  { %v744_v7 = vpop.permute.xlu1 %743  ;;  %v401_v26 = vsel %vm21_vm0, %v1068_v23, %v731_v13  ;;  %v400_v27 = vsel %vm21_vm0, %v71_v15, %v730_v14 }
  0x91   :  { %v734_v8 = vpop.permute.xlu0 %733  ;;  %v746_v28 = vunpack.i.h.bf16 %v744_v7  ;;  %v745_v29 = vunpack.i.l.bf16 %v744_v7  ;;  %v409_v23 = vsel %vm408_vm3, %v400_v27, %v740_v25  ;;  %v410_v39 = vsel %vm408_vm3, %v401_v26, %v741_v20 }
  0x92   :  { %v736_v16 = vunpack.i.h.bf16 %v734_v8  ;;  %v735_v17 = vunpack.i.l.bf16 %v734_v8 }
  0x94   :  { %v754_v9 = vpop.permute.xlu1 %753  ;;  %v403_v30 = vsel %vm21_vm0, %v1064_v21, %v736_v16  ;;  %v402_v31 = vsel %vm21_vm0, %v1070_v24, %v735_v17 }
  0x95   :  { %v749_v10 = vpop.permute.xlu0 %748  ;;  %v756_v32 = vunpack.i.h.bf16 %v754_v9  ;;  %v755_v33 = vunpack.i.l.bf16 %v754_v9  ;;  %v411_v40 = vsel %vm408_vm3, %v402_v31, %v745_v29  ;;  %v412_v21 = vsel %vm408_vm3, %v403_v30, %v746_v28 }
  0x96   :  { %v751_v37 = vunpack.i.h.bf16 %v749_v10  ;;  %v750_v38 = vunpack.i.l.bf16 %v749_v10 }
  0x97   :  { %v420_v42 = vsel %vm417_vm4, %v411_v40, %v755_v33  ;;  %v421_v43 = vsel %vm417_vm4, %v412_v21, %v756_v32 }
  0x98   :  { %v1130_v11 = vpop.permute.xlu1 %763  ;;  %v418_v48 = vsel %vm417_vm4, %v409_v23, %v750_v38  ;;  %v419_v49 = vsel %vm417_vm4, %v410_v39, %v751_v37 }
  0x99   :  { %v759_v12 = vpop.permute.xlu0 %758  ;;  %v766_v54 = vunpack.i.h.bf16 %v1130_v11  ;;  %v765_v55 = vunpack.i.l.bf16 %v1130_v11 }
  0x9a   :  { %v761_v41 = vunpack.i.h.bf16 %v759_v12  ;;  %v760_v24 = vunpack.i.l.bf16 %v759_v12 }
  0x9b   :  { %v429_v13 = vsel %vm426_vm5, %v420_v42, %v765_v55  ;;  %v430_v14 = vsel %vm426_vm5, %v421_v43, %v766_v54 }
  0x9c   :  { %v1132_v18 = vpop.permute.xlu1 %773  ;;  %v427_v58 = vsel %vm426_vm5, %v418_v48, %v760_v24  ;;  %v428_v59 = vsel %vm426_vm5, %v419_v49, %v761_v41 }
  0x9d   :  { %v769_v19 = vpop.permute.xlu0 %768  ;;  %v776_v60 = vunpack.i.h.bf16 %v1132_v18  ;;  %v775_v61 = vunpack.i.l.bf16 %v1132_v18 }
  0x9e   :  { %v771_v44 = vunpack.i.h.bf16 %v769_v19  ;;  %v770_v45 = vunpack.i.l.bf16 %v769_v19 }
  0x9f   :  { %v438_v17 = vsel %vm435_vm6, %v429_v13, %v775_v61  ;;  %v439_v18 = vsel %vm435_vm6, %v430_v14, %v776_v60 }
  0xa0   :  { %v784_v34 = vpop.permute.xlu1 %783  ;;  %v436_v62 = vsel %vm435_vm6, %v427_v58, %v770_v45  ;;  %v437_v63 = vsel %vm435_vm6, %v428_v59, %v771_v44 }
  0xa1   :  { %v779_v36 = vpop.permute.xlu0 %778  ;;  %v786_v0 = vunpack.i.h.bf16 %v784_v34  ;;  %v785_v2 = vunpack.i.l.bf16 %v784_v34 }
  0xa2   :  { %v781_v51 = vunpack.i.h.bf16 %v779_v36  ;;  %v780_v53 = vunpack.i.l.bf16 %v779_v36 }
  0xa3   :  { %v447_v26 = vsel %vm444_vm7, %v438_v17, %v785_v2  ;;  %v448_v27 = vsel %vm444_vm7, %v439_v18, %v786_v0 }
  0xa4   :  { %v794_v46 = vpop.permute.xlu1 %793  ;;  %v445_v5 = vsel %vm444_vm7, %v436_v62, %v780_v53  ;;  %v446_v6 = vsel %vm444_vm7, %v437_v63, %v781_v51 }
  0xa5   :  { %v789_v47 = vpop.permute.xlu0 %788  ;;  %v796_v9 = vunpack.i.h.bf16 %v794_v46  ;;  %v795_v10 = vunpack.i.l.bf16 %v794_v46 }
  0xa6   :  { %v791_v56 = vunpack.i.h.bf16 %v789_v47  ;;  %v790_v57 = vunpack.i.l.bf16 %v789_v47 }
  0xa7   :  { %v456_v30 = vsel %vm453_vm8, %v447_v26, %v795_v10  ;;  %v457_v31 = vsel %vm453_vm8, %v448_v27, %v796_v9 }
  0xa8   :  { %v804_v3 = vpop.permute.xlu1 %803  ;;  %v454_v11 = vsel %vm453_vm8, %v445_v5, %v790_v57  ;;  %v455_v12 = vsel %vm453_vm8, %v446_v6, %v791_v56 }
  0xa9   :  { %v799_v4 = vpop.permute.xlu0 %798  ;;  %v806_v21 = vunpack.i.h.bf16 %v804_v3  ;;  %v805_v41 = vunpack.i.l.bf16 %v804_v3 }
  0xaa   :  { %v801_v7 = vunpack.i.h.bf16 %v799_v4  ;;  %v800_v8 = vunpack.i.l.bf16 %v799_v4 }
  0xab   :  { %v405_v55 = vsel %vm21_vm0, %v1085_v35, %v806_v21  ;;  %v404_v56 = vsel %vm21_vm0, %v1066_v22, %v805_v41 }
  0xac   :  { %v463_v15 = vsel %vm462_vm9, %v454_v11, %v800_v8  ;;  %v464_v16 = vsel %vm462_vm9, %v455_v12, %v801_v7  ;;  %v814_v19 = vpop.permute.xlu1 %813 }
  0xad   :  { %v809_v20 = vpop.permute.xlu0 %808  ;;  %v471_v25 = vpack.c.bf16 %v464_v16, %v463_v15  ;;  %v816_v24 = vunpack.i.h.bf16 %v814_v19  ;;  %v815_v42 = vunpack.i.l.bf16 %v814_v19 }
  0xae   :  { %v811_v28 = vunpack.i.h.bf16 %v809_v20  ;;  %v810_v29 = vunpack.i.l.bf16 %v809_v20 }
  0xaf   :  { %700 = vmatprep.mubr.msk.bf16.mxu0 %vm495_vm10, %v471_v25  ;;  %v407_v57 = vsel %vm21_vm0, %v1107_v50, %v816_v24  ;;  %v406_v58 = vsel %vm21_vm0, %v1109_v52, %v815_v42 }
  0xb0   :  { %v465_v32 = vsel %vm462_vm9, %v456_v30, %v810_v29  ;;  %v466_v33 = vsel %vm462_vm9, %v457_v31, %v811_v28  ;;  %v824_v36 = vpop.permute.xlu1 %823 }
  0xb1   :  { %v472_v34 = vpack.c.bf16 %v466_v33, %v465_v32  ;;  %v819_v37 = vpop.permute.xlu0 %818  ;;  %v826_v43 = vunpack.i.h.bf16 %v824_v36  ;;  %v825_v44 = vunpack.i.l.bf16 %v824_v36 }
  0xb2   :  { %v821_v45 = vunpack.i.h.bf16 %v819_v37  ;;  %v820_v46 = vunpack.i.l.bf16 %v819_v37 }
  0xb3   :  { %701 = vmatmul.mubr.msk.bf16.vlgmr.msra.gmra.mxu0 %vm495_vm10, %v472_v34  ;;  %v415_v59 = vsel %vm408_vm3, %v406_v58, %v825_v44  ;;  %v416_v60 = vsel %vm408_vm3, %v407_v57, %v826_v43 }
  0xb4   :  { %v834_v38 = vpop.permute.xlu1 %833  ;;  %v414_v61 = vsel %vm408_vm3, %v405_v55, %v821_v45  ;;  %v413_v62 = vsel %vm408_vm3, %v404_v56, %v820_v46 }
  0xb5   :  { %v829_v23 = vpop.permute.xlu0 %828  ;;  %v836_v49 = vunpack.i.h.bf16 %v834_v38  ;;  %v835_v51 = vunpack.i.l.bf16 %v834_v38 }
  0xb6   :  { %v831_v53 = vunpack.i.h.bf16 %v829_v23  ;;  %v830_v54 = vunpack.i.l.bf16 %v829_v23 }
  0xb7   :  { %v424_v4 = vsel %vm417_vm4, %v415_v59, %v835_v51  ;;  %v425_v50 = vsel %vm417_vm4, %v416_v60, %v836_v49 }
  0xb8   :  { %v844_v39 = vpop.permute.xlu1 %843  ;;  %v422_v52 = vsel %vm417_vm4, %v413_v62, %v830_v54  ;;  %v423_v5 = vsel %vm417_vm4, %v414_v61, %v831_v53 }
  0xb9   :  { %v839_v40 = vpop.permute.xlu0 %838  ;;  %v846_v35 = vunpack.i.h.bf16 %v844_v39  ;;  %v845_v2 = vunpack.i.l.bf16 %v844_v39 }
  0xba   :  { %v841_v3 = vunpack.i.h.bf16 %v839_v40  ;;  %v840_v22 = vunpack.i.l.bf16 %v839_v40 }
  0xbb   :  { %v433_v16 = vsel %vm426_vm5, %v424_v4, %v845_v2  ;;  %v434_v17 = vsel %vm426_vm5, %v425_v50, %v846_v35 }
  0xbc   :  { %v854_v47 = vpop.permute.xlu1 %853  ;;  %v431_v18 = vsel %vm426_vm5, %v422_v52, %v840_v22  ;;  %v432_v19 = vsel %vm426_vm5, %v423_v5, %v841_v3 }
  0xbd   :  { %v849_v48 = vpop.permute.xlu0 %848  ;;  %v856_v6 = vunpack.i.h.bf16 %v854_v47  ;;  %v855_v7 = vunpack.i.l.bf16 %v854_v47 }
  0xbe   :  { %v851_v8 = vunpack.i.h.bf16 %v849_v48  ;;  %v850_v9 = vunpack.i.l.bf16 %v849_v48 }
  0xbf   :  { %v442_v28 = vsel %vm435_vm6, %v433_v16, %v855_v7  ;;  %v443_v29 = vsel %vm435_vm6, %v434_v17, %v856_v6 }
  0xc0   :  { %v864_v63 = vpop.permute.xlu1 %863  ;;  %v440_v30 = vsel %vm435_vm6, %v431_v18, %v850_v9  ;;  %v441_v31 = vsel %vm435_vm6, %v432_v19, %v851_v8 }
  0xc1   :  { %v859_v0 = vpop.permute.xlu0 %858  ;;  %v866_v10 = vunpack.i.h.bf16 %v864_v63  ;;  %v865_v11 = vunpack.i.l.bf16 %v864_v63 }
  0xc2   :  { %v861_v12 = vunpack.i.h.bf16 %v859_v0  ;;  %v860_v13 = vunpack.i.l.bf16 %v859_v0 }
  0xc3   :  { %v451_v32 = vsel %vm444_vm7, %v442_v28, %v865_v11  ;;  %v452_v33 = vsel %vm444_vm7, %v443_v29, %v866_v10 }
  0xc4   :  { %v874_v14 = vpop.permute.xlu1 %873  ;;  %v449_v34 = vsel %vm444_vm7, %v440_v30, %v860_v13  ;;  %v450_v36 = vsel %vm444_vm7, %v441_v31, %v861_v12 }
  0xc5   :  { %v869_v15 = vpop.permute.xlu0 %868  ;;  %v876_v20 = vunpack.i.h.bf16 %v874_v14  ;;  %v875_v25 = vunpack.i.l.bf16 %v874_v14 }
  0xc6   :  { %v871_v26 = vunpack.i.h.bf16 %v869_v15  ;;  %v870_v27 = vunpack.i.l.bf16 %v869_v15 }
  0xc7   :  { %v460_v41 = vsel %vm453_vm8, %v451_v32, %v875_v25  ;;  %v461_v24 = vsel %vm453_vm8, %v452_v33, %v876_v20 }
  0xc8   :  { %v884_v37 = vpop.permute.xlu1 %883  ;;  %v458_v42 = vsel %vm453_vm8, %v449_v34, %v870_v27  ;;  %v459_v43 = vsel %vm453_vm8, %v450_v36, %v871_v26 }
  0xc9   :  { %v879_v38 = vpop.permute.xlu0 %878  ;;  %v886_v23 = vunpack.i.h.bf16 %v884_v37  ;;  %v885_v39 = vunpack.i.l.bf16 %v884_v37 }
  0xca   :  { %v881_v40 = vunpack.i.h.bf16 %v879_v38  ;;  %v880_v21 = vunpack.i.l.bf16 %v879_v38 }
  0xcb   :  { %v469_v44 = vsel %vm462_vm9, %v460_v41, %v885_v39  ;;  %v470_v45 = vsel %vm462_vm9, %v461_v24, %v886_v23  ;;  %v591_v24 = vld [vmem:[#allocation3] sm:$0x1] }
  0xcc   :  { %v467_v46 = vsel %vm462_vm9, %v458_v42, %v880_v21  ;;  %v468_v47 = vsel %vm462_vm9, %v459_v43, %v881_v40  ;;  %v474_v48 = vpack.c.bf16 %v470_v45, %v469_v44  ;;  %v616_v44 = vld [vmem:[#allocation5] sm:$0x1] }
  0xcd   :  { %v473_v49 = vpack.c.bf16 %v468_v47, %v467_v46 }
  0xcf   :  { %704 = vmatprep.mubr.msk.bf16.mxu1 %vm495_vm10, %v473_v49 }
  0xd0   :  { %705 = vmatmul.mubr.msk.bf16.vlgmr.msra.gmra.mxu1 %vm495_vm10, %v474_v48 }
 0x173   :  { %v702_v51 = vpop.f32.mrf.mxu0 }
 0x174   :  { %579 = vst.msk [vmem:[%s1275_s2 + $0x10] sm:$0xff] %vm408_vm3, %v702_v51  ;;  %v619_v61 = vmul.f32 %v702_v51, %v702_v51  ;;  %v595_v0 = vsel %vm408_vm3, %v702_v51, 0.0 }
 0x175   :  { %v546_v53 = vpop.f32.mrf.mxu0 }
 0x176   :  { %577 = vst.msk [vmem:[%s1275_s2] sm:$0xff] %vm408_vm3, %v546_v53  ;;  %v617_v56 = vmul.f32 %v546_v53, %v546_v53  ;;  %v592_v58 = vsel %vm408_vm3, %v546_v53, 0.0  ;;  %v628_v3 = vsel %vm408_vm3, %v619_v61, 0.0 }
 0x177   :  { %v703_v54 = vpop.f32.mrf.mxu0 }
 0x178   :  { %580 = vst.msk [vmem:[%s1275_s2 + $0x18] sm:$0xff] %vm408_vm3, %v703_v54  ;;  %v625_v62 = vsel %vm408_vm3, %v617_v56, 0.0  ;;  %v620_v22 = vmul.f32 %v703_v54, %v703_v54  ;;  %v597_v52 = vsel %vm408_vm3, %v703_v54, 0.0 }
 0x179   :  { %v549_v55 = vpop.f32.mrf.mxu0 }
 0x17a   :  { %578 = vst.msk [vmem:[%s1275_s2 + $0x8] sm:$0xff] %vm408_vm3, %v549_v55  ;;  %v618_v1 = vmul.f32 %v549_v55, %v549_v55  ;;  %v593_v57 = vsel %vm408_vm3, %v549_v55, 0.0  ;;  %v630_v9 = vsel %vm408_vm3, %v620_v22, 0.0 }
 0x17b   :  { %v594_v60 = vadd.f32 %v593_v57, %v592_v58 }
 0x17c   :  { %v626_v59 = vsel %vm408_vm3, %v618_v1, 0.0 }
 0x17d   :  { %v627_v63 = vadd.f32 %v626_v59, %v625_v62  ;;  %v596_v35 = vadd.f32 %v595_v0, %v594_v60 }
 0x17f   :  { %v629_v4 = vadd.f32 %v628_v3, %v627_v63  ;;  %v598_v7 = vadd.f32 %v597_v52, %v596_v35 }
 0x181   :  { %v631_v12 = vadd.f32 %v630_v9, %v629_v4 }
 0x190   :  { %v706_v2 = vpop.f32.mrf.mxu1 }
 0x191   :  { %583 = vst.msk [vmem:[%s1275_s2 + $0x30] sm:$0xff] %vm408_vm3, %v706_v2  ;;  %v623_v14 = vmul.f32 %v706_v2, %v706_v2  ;;  %v603_v19 = vsel %vm408_vm3, %v706_v2, 0.0 }
 0x192   :  { %v562_v50 = vpop.f32.mrf.mxu1 }
 0x193   :  { %581 = vst.msk [vmem:[%s1275_s2 + $0x20] sm:$0xff] %vm408_vm3, %v562_v50  ;;  %v599_v5 = vsel %vm408_vm3, %v562_v50, 0.0  ;;  %v621_v6 = vmul.f32 %v562_v50, %v562_v50  ;;  %v636_v28 = vsel %vm408_vm3, %v623_v14, 0.0 }
 0x194   :  { %v707_v8 = vpop.f32.mrf.mxu1  ;;  %v600_v11 = vadd.f32 %v599_v5, %v598_v7 }
 0x195   :  { %v632_v10 = vsel %vm408_vm3, %v621_v6, 0.0  ;;  %584 = vst.msk [vmem:[%s1275_s2 + $0x38] sm:$0xff] %vm408_vm3, %v707_v8  ;;  %v624_v20 = vmul.f32 %v707_v8, %v707_v8  ;;  %v605_v29 = vsel %vm408_vm3, %v707_v8, 0.0 }
 0x196   :  { %v565_v13 = vpop.f32.mrf.mxu1  ;;  %v633_v17 = vadd.f32 %v632_v10, %v631_v12 }
 0x197   :  { %582 = vst.msk [vmem:[%s1275_s2 + $0x28] sm:$0xff] %vm408_vm3, %v565_v13  ;;  %v601_v15 = vsel %vm408_vm3, %v565_v13, 0.0  ;;  %v622_v16 = vmul.f32 %v565_v13, %v565_v13  ;;  %v638_v32 = vsel %vm408_vm3, %v624_v20, 0.0  ;;  %s943_s2 = smov [#allocation3]  }
 0x198   :  { %v602_v18 = vadd.f32 %v601_v15, %v600_v11  ;;  %s656_s0 = sshll.u32 %s943_s2, 4  ;;  %s657_s0 = int_to_ptr.vmem [resolvable:$true] %s656_s0 }
 0x199   :  { %v634_v25 = vsel %vm408_vm3, %v622_v16, 0.0  ;;  %s890_s9 = scalar_lea.vmem %s657_s0, 16  ;;  %s894_s10 = scalar_lea.vmem %s657_s0, 32 }
 0x19a   :  { %v604_v26 = vadd.f32 %v603_v19, %v602_v18  ;;  %v635_v27 = vadd.f32 %v634_v25, %v633_v17  ;;  %p891_p0 = scmp.ne.s32.totalorder %s657_s0, %s890_s9  ;;  %p895_p1 = scmp.lt.s32.totalorder %s657_s0, %s657_s0 }
 0x19b   :  { %p896_p2 = scmp.lt.s32.totalorder %s894_s10, %s890_s9 }
 0x19c   :  { %v606_v30 = vadd.f32 %v605_v29, %v604_v26  ;;  %v637_v31 = vadd.f32 %v636_v28, %v635_v27 }
 0x19d   :  { %p897_p3 = por %p896_p2, %p895_p1 }
 0x19e   :  { %v607_v33 = vrot.slane %v606_v30, 4  ;;  %v639_v34 = vadd.f32 %v638_v32, %v637_v31 }
 0x19f   :  { %p898_p4 = pnand %p897_p3, %p891_p0 }
 0x1a0   :  { %v608_v36 = vadd.f32 %v607_v33, %v606_v30  ;;  %v640_v37 = vrot.slane %v639_v34, 4 }
 0x1a2   :  { %v609_v38 = vrot.slane %v608_v36, 2  ;;  %v641_v23 = vadd.f32 %v640_v37, %v639_v34 }
 0x1a4   :  { %v610_v39 = vadd.f32 %v609_v38, %v608_v36  ;;  %v642_v40 = vrot.slane %v641_v23, 2 }
 0x1a6   :  { %v611_v21 = vrot.slane %v610_v39, 1  ;;  %v643_v41 = vadd.f32 %v642_v40, %v641_v23 }
 0x1a8   :  { %v612_v42 = vadd.f32 %v611_v21, %v610_v39  ;;  %v644_v43 = vrot.slane %v643_v41, 1 }
 0x1aa   :  { %v613_v45 = vadd.f32 %v612_v42, %v591_v24  ;;  %v645_v46 = vadd.f32 %v644_v43, %v643_v41 }
 0x1ac   :  { %615 = vst.msk [vmem:[#allocation3] sm:$0x1] %vm588_vm11, %v613_v45  ;;  %v646_v47 = vadd.f32 %v645_v46, %v616_v44 }
 0x1ad   :  { %901 = shalt.err (!%p898_p4)
}
 0x1ae   :  { %659 = dma.vmem_to_hbm [thread:$0]  %s657_s0, 16, %s1276_s3, [#allocation4]   ;;  %647 = vst.msk [vmem:[#allocation5] sm:$0x1] %vm588_vm11, %v646_v47 }
 0x1af   :  { %s910_s13 = scalar_lea.vmem %s667_s8, 16  ;;  %s914_s14 = scalar_lea.vmem %s667_s8, 32 }
 0x1b0   :  { %p911_p5 = scmp.ne.s32.totalorder %s667_s8, %s910_s13  ;;  %p915_p6 = scmp.lt.s32.totalorder %s667_s8, %s667_s8 }
 0x1b1   :  { %p916_p7 = scmp.lt.s32.totalorder %s914_s14, %s910_s13 }
 0x1b3   :  { %p917_p8 = por %p916_p7, %p915_p6 }
 0x1b5   :  { %p918_p9 = pnand %p917_p8, %p911_p5 }
 0x1b7   :  { %921 = shalt.err (!%p918_p9)
}
 0x1b8   :  { %669 = dma.vmem_to_hbm [thread:$0]  %s667_s8, 16, %s1277_s4, [#allocation6]  }
 0x1b9   :  { %930 = dma.done.wait [#allocation4], 16  }
 0x1ba   :  { %931 = vsyncadd [#allocation4], 4294967280 }
 0x1bb   :  { %932 = dma.done.wait [#allocation6], 16  }
 0x1bc   :  { %933 = vsyncadd [#allocation6], 4294967280 }
 0x1bd   :  { %678 = vsyncpa [#allocation4], 1 }
 0x1be   :  { %679 = vsyncpa [#allocation6], 1 }

// kernel: unet_block_forward.5
= control target key start
LH: loop header
LB: loop body
LE: loop exit
PB: predicated region body
PF: predicated region fallthrough
CT: control target
= control target key end

     0   :  { %s112_s0 = inlined_call_operand.vmem [shape: f32[32,128], index: 0, kind: input, shape index: {}]   ;;  %s113_s1 = inlined_call_operand.vmem [shape: f32[1,128], index: 1, kind: input, shape index: {}]   ;;  %s114_s2 = inlined_call_operand.vmem [shape: f32[1,128], index: 2, kind: input, shape index: {}]   ;;  %s115_s3 = inlined_call_operand.vmem [shape: f32[32,128], index: 3, kind: output, shape index: {}]  }
   0x1   :  { %v14_v0 = vld [vmem:[%s112_s0] sm:$0xff]  ;;  %v15_v4 = vld [vmem:[%s112_s0 + $0x8] sm:$0xff]  ;;  %v16_v5 = vld [vmem:[%s112_s0 + $0x10] sm:$0xff] }
   0x2   :  { %v60_v1 = vld [vmem:[%s113_s1] ss:$0 sm:$0xff]  ;;  %v17_v6 = vld [vmem:[%s112_s0 + $0x18] sm:$0xff] }
   0x3   :  { %v61_v2 = vld [vmem:[%s114_s2] ss:$0 sm:$0xff]  ;;  %v25_v3 = vmul.f32 %v60_v1, %v14_v0  ;;  %v26_v7 = vmul.f32 %v60_v1, %v15_v4  ;;  %v27_v8 = vmul.f32 %v60_v1, %v16_v5  ;;  %v28_v9 = vmul.f32 %v60_v1, %v17_v6 }
   0x5   :  { %v36_v10 = vadd.f32 %v61_v2, %v25_v3  ;;  %v37_v11 = vadd.f32 %v61_v2, %v26_v7  ;;  %v38_v12 = vadd.f32 %v61_v2, %v27_v8  ;;  %v39_v13 = vadd.f32 %v61_v2, %v28_v9 }
   0x7   :  { %vm40_vm0 = vcmp.ge.f32.partialorder %v36_v10, 0.0  ;;  %v44_v14 = vmul.f32 0.01, %v36_v10  ;;  %vm41_vm1 = vcmp.ge.f32.partialorder %v37_v11, 0.0  ;;  %v45_v15 = vmul.f32 0.01, %v37_v11 }
   0x8   :  { %vm42_vm2 = vcmp.ge.f32.partialorder %v38_v12, 0.0  ;;  %v46_v16 = vmul.f32 0.01, %v38_v12  ;;  %vm43_vm3 = vcmp.ge.f32.partialorder %v39_v13, 0.0  ;;  %v47_v18 = vmul.f32 0.01, %v39_v13 }
   0x9   :  { %v48_v17 = vsel %vm40_vm0, %v36_v10, %v44_v14  ;;  %v49_v19 = vsel %vm41_vm1, %v37_v11, %v45_v15 }
   0xa   :  { %52 = vst [vmem:[%s115_s3] sm:$0xff] %v48_v17  ;;  %v50_v20 = vsel %vm42_vm2, %v38_v12, %v46_v16  ;;  %53 = vst [vmem:[%s115_s3 + $0x8] sm:$0xff] %v49_v19  ;;  %v51_v21 = vsel %vm43_vm3, %v39_v13, %v47_v18 }
   0xb   :  { %54 = vst [vmem:[%s115_s3 + $0x10] sm:$0xff] %v50_v20  ;;  %55 = vst [vmem:[%s115_s3 + $0x18] sm:$0xff] %v51_v21 }

// kernel: unet_block_forward.4
= control target key start
LH: loop header
LB: loop body
LE: loop exit
PB: predicated region body
PF: predicated region fallthrough
CT: control target
= control target key end

     0   :  { %s3935_s15 = smov 0   ;;  %s5325_s0 = inlined_call_operand.vmem [shape: f32[2,18,18,4], index: 0, kind: input, shape index: {}]   ;;  %s5326_s1 = inlined_call_operand.vmem [shape: bf16[9,4,8], index: 1, kind: input, shape index: {}]   ;;  %s5327_s2 = inlined_call_operand.vmem [shape: f32[512,8], index: 2, kind: output, shape index: {0}]   ;;  %s5328_s3 = inlined_call_operand.vmem [shape: f32[1,8], index: 3, kind: output, shape index: {1}]   ;;  %s5329_s4 = inlined_call_operand.vmem [shape: f32[1,8], index: 4, kind: output, shape index: {2}]  }
   0x1 LB: > { %s3941_s16 = sadd.s32 4294967295, %s3907_s15   ;;  %p3069_p0 = scmp.ge.s32.totalorder %s3907_s15, 1  ;;  %s3907_s15 = sphi %s3935_s15, %s15_s15  }
   0x2   : > { %p157_p1 = scmp.lt.s32.totalorder %s3907_s15, 3 }
   0x4   : > { %p158_p2 = pnand %p3069_p0, %p157_p1 }
   0x6   : > { %161 = sbr.rel (%p158_p2) target bundleno = 593 (0x251), region = 28 }
   0xb   : > { %v3073_v0 = vld [vmem:[%s5326_s1 + $0x2] sm:$0x3]  ;;  %vm343_vm0 = vcmask 1041408   ;;  %p183_p3 = scmp.lt.s32.totalorder %s3941_s16, 1  ;;  %v243_v2 = vld [vmem:[%s5326_s1] sm:$0x3] }
   0xc   : > { %3882 = vmatprep.subr.msk.bf16.mxu1 %vm343_vm0, %v3073_v0  ;;  %3881 = vmatprep.subr.msk.bf16.mxu0 %vm343_vm0, %v3073_v0  ;;  %v345_v1 = vsel %vm343_vm0, %v3073_v0, 0  ;;  %v3106_v3 = vld [vmem:[%s5326_s1 + $0x4] sm:$0x3]  ;;  %vm294_vm1 = vcmask 31744   ;;  %v557_v18 = vsel %vm343_vm0, %v243_v2, 0  ;;  %s3071_s14 = sshll.u32 %s3941_s16, 5 }
   0xd   : > { %3880 = vmatpush3.bf16.msra.mxu1 %v345_v1  ;;  %3574 = vmatpush3.bf16.msra.mxu0 %v345_v1  ;;  %s184_s23 = scalar_select %p183_p3, %s3941_s16, 1  ;;  %v819_v15 = vsel %vm343_vm0, %v3106_v3, 0  ;;  %v3998_v24 = vld [vmem:[%s5326_s1 + $0x6] sm:$0x3]  ;;  %v4003_v25 = vld [vmem:[%s5326_s1 + $0x8] sm:$0x3] }
   0xe   : > { %3883 = vmatprep.subr.msk.bf16.mxu1 %vm343_vm0, %v243_v2  ;;  %3884 = vmatprep.subr.msk.bf16.mxu0 %vm343_vm0, %v3106_v3  ;;  %p189_p4 = scmp.lt.s32.totalorder %s3071_s14, 63  ;;  %vm2780_vm2 = vcmask 64512   ;;  %p3417_p5 = scmp.ne.s32.totalorder %s3941_s16, 0 }
   0xf   : > { %s3891_s24 = smul.u32 432, %s184_s23 }
  0x10   : > { %s5411_s14 = smov (!%p189_p4, %s3071_s14), 63 }
  0x11   : > { %s3964_s27 = scalar_lea.vmem %s5325_s0, %s3891_s24  ;;  %s3072_s17 = sshll.u32 %s5411_s14, 3 }
  0x12   : > { %v244_v4 = vld [vmem:[%s3964_s27 + $0x1] sm:$0xff]  ;;  %v245_v5 = vld [vmem:[%s3964_s27 + $0x9] sm:$0xff]  ;;  %v246_v9 = vld [vmem:[%s3964_s27 + $0x19] sm:$0xff]  ;;  %s4893_s20 = scalar_lea.vmem %s5327_s2, %s3072_s17 }
  0x13   : > { %v260_v6 = vld [vmem:[%s3964_s27 + $0xc1] sm:$0xff]  ;;  %v276_v7 = vpack.c.bf16 %v245_v5, %v244_v4  ;;  %v261_v8 = vld [vmem:[%s3964_s27 + $0xc9] sm:$0xff]  ;;  %v262_v13 = vld [vmem:[%s3964_s27 + $0xd9] sm:$0xff] }
  0x14   : > { %v247_v10 = vld [vmem:[%s3964_s27 + $0x21] sm:$0xff]  ;;  %v3972_v11 = vpack.c.bf16 %v261_v8, %v260_v6  ;;  %v248_v16 = vld [vmem:[%s3964_s27 + $0x31] sm:$0xff]  ;;  %v249_v19 = vld [vmem:[%s3964_s27 + $0x39] sm:$0xff]  ;;  %v1408_v8 = vsel %vm343_vm0, %v4003_v25, 0 }
  0x15   : > { %v3974_v12 = vpack.c.bf16 %v247_v10, %v246_v9  ;;  %v263_v14 = vld [vmem:[%s3964_s27 + $0xe1] sm:$0xff]  ;;  %3575 = vmatprep.mubr.msk.bf16.mxu0 %vm294_vm1, %v276_v7  ;;  %v264_v20 = vld [vmem:[%s3964_s27 + $0xf1] sm:$0xff]  ;;  %v265_v21 = vld [vmem:[%s3964_s27 + $0xf9] sm:$0xff]  ;;  %v3991_v22 = vpack.c.bf16 %v249_v19, %v248_v16  ;;  %v1114_v10 = vsel %vm343_vm0, %v3998_v24, 0 }
  0x16   : > { %v3981_v17 = vpack.c.bf16 %v263_v14, %v262_v13  ;;  %3591 = vmatprep.mubr.msk.bf16.mxu1 %vm294_vm1, %v3972_v11  ;;  %v3993_v23 = vpack.c.bf16 %v265_v21, %v264_v20  ;;  %v250_v26 = vld [vmem:[%s3964_s27 + $0x49] sm:$0xff]  ;;  %v251_v27 = vld [vmem:[%s3964_s27 + $0x51] sm:$0xff]  ;;  %v252_v30 = vld [vmem:[%s3964_s27 + $0x61] sm:$0xff] }
  0x17   : > { %3576 = vmatmul.mubr.msk.bf16.vlgmr.msra.gmra.mxu0 %vm294_vm1, %v3974_v12  ;;  %v266_v28 = vld [vmem:[%s3964_s27 + $0x109] sm:$0xff]  ;;  %v267_v29 = vld [vmem:[%s3964_s27 + $0x111] sm:$0xff]  ;;  %v268_v32 = vld [vmem:[%s3964_s27 + $0x121] sm:$0xff]  ;;  %v4021_v34 = vpack.c.bf16 %v251_v27, %v250_v26 }
  0x18   : > { %3592 = vmatmul.mubr.msk.bf16.vlgmr.msra.gmra.mxu1 %vm294_vm1, %v3981_v17  ;;  %3642 = vmatpush3.bf16.msra.mxu0 %v819_v15  ;;  %v253_v31 = vld [vmem:[%s3964_s27 + $0x69] sm:$0xff]  ;;  %v4025_v35 = vpack.c.bf16 %v267_v29, %v266_v28  ;;  %v254_v38 = vld [vmem:[%s3964_s27 + $0x79] sm:$0xff]  ;;  %v255_v39 = vld [vmem:[%s3964_s27 + $0x81] sm:$0xff] }
  0x19   : > { %3608 = vmatpush3.bf16.msra.mxu1 %v557_v18  ;;  %3579 = vmatprep.mubr.msk.bf16.mxu0 %vm294_vm1, %v3991_v22  ;;  %v269_v33 = vld [vmem:[%s3964_s27 + $0x129] sm:$0xff]  ;;  %v4027_v36 = vpack.c.bf16 %v253_v31, %v252_v30  ;;  %v270_v40 = vld [vmem:[%s3964_s27 + $0x139] sm:$0xff]  ;;  %v271_v41 = vld [vmem:[%s3964_s27 + $0x141] sm:$0xff]  ;;  %v4047_v46 = vpack.c.bf16 %v255_v39, %v254_v38 }
  0x1a   : > { %3595 = vmatprep.mubr.msk.bf16.mxu1 %vm294_vm1, %v3993_v23  ;;  %3885 = vmatprep.subr.msk.bf16.mxu1 %vm343_vm0, %v3998_v24  ;;  %v4029_v37 = vpack.c.bf16 %v269_v33, %v268_v32  ;;  %v256_v42 = vld [vmem:[%s3964_s27 + $0x91] sm:$0xff]  ;;  %v257_v43 = vld [vmem:[%s3964_s27 + $0x99] sm:$0xff]  ;;  %v4049_v47 = vpack.c.bf16 %v271_v41, %v270_v40  ;;  %v258_v50 = vld [vmem:[%s3964_s27 + $0xa9] sm:$0xff] }
  0x1b   : > { %3886 = vmatprep.subr.msk.bf16.mxu0 %vm343_vm0, %v4003_v25  ;;  %v272_v44 = vld [vmem:[%s3964_s27 + $0x151] sm:$0xff]  ;;  %v273_v45 = vld [vmem:[%s3964_s27 + $0x159] sm:$0xff]  ;;  %v4051_v48 = vpack.c.bf16 %v257_v43, %v256_v42  ;;  %v274_v52 = vld [vmem:[%s3964_s27 + $0x169] sm:$0xff] }
  0x1c   : > { %v4053_v49 = vpack.c.bf16 %v273_v45, %v272_v44  ;;  %v259_v51 = vld [vmem:[%s3964_s27 + $0xb1] sm:$0xff]  ;;  %v720_v54 = vld [vmem:[%s3964_s27 + $0x2] sm:$0xff]  ;;  %v722_v62 = vld [vmem:[%s3964_s27 + $0x1a] sm:$0xff] }
  0x1d   : > { %v275_v53 = vld [vmem:[%s3964_s27 + $0x171] sm:$0xff]  ;;  %v195_v56 = vld [vmem:[%s3964_s27] sm:$0xff]  ;;  %v196_v57 = vld [vmem:[%s3964_s27 + $0x8] sm:$0xff]  ;;  %v4071_v58 = vpack.c.bf16 %v259_v51, %v258_v50 }
  0x1e   : > { %v721_v55 = vld [vmem:[%s3964_s27 + $0xa] sm:$0xff]  ;;  %v4073_v59 = vpack.c.bf16 %v275_v53, %v274_v52  ;;  %v227_v61 = vpack.c.bf16 %v196_v57, %v195_v56  ;;  %v723_v63 = vld [vmem:[%s3964_s27 + $0x22] sm:$0xff]  ;;  %v197_v0 = vld [vmem:[%s3964_s27 + $0x18] sm:$0xff] }
  0x1f   : > { %3580 = vmatmul.mubr.msk.bf16.gmra.mxu0 %vm294_vm1, %v4021_v34  ;;  %v752_v60 = vpack.c.bf16 %v721_v55, %v720_v54  ;;  %v198_v1 = vld [vmem:[%s3964_s27 + $0x20] sm:$0xff]  ;;  %v199_v2 = vld [vmem:[%s3964_s27 + $0x30] sm:$0xff]  ;;  %v200_v3 = vld [vmem:[%s3964_s27 + $0x38] sm:$0xff]  ;;  %v4087_v4 = vpack.c.bf16 %v723_v63, %v722_v62 }
  0x20   : > { %3596 = vmatmul.mubr.msk.bf16.gmra.mxu1 %vm294_vm1, %v4025_v35  ;;  %3583 = vmatprep.mubr.msk.bf16.mxu0 %vm294_vm1, %v4027_v36  ;;  %v724_v5 = vld [vmem:[%s3964_s27 + $0x32] sm:$0xff]  ;;  %v725_v6 = vld [vmem:[%s3964_s27 + $0x3a] sm:$0xff]  ;;  %v4091_v7 = vpack.c.bf16 %v198_v1, %v197_v0  ;;  %v4095_v9 = vpack.c.bf16 %v200_v3, %v199_v2  ;;  %v4106_v14 = vld [vmem:[%s5326_s1 + $0xa] sm:$0x3] }
  0x21   : > { %3599 = vmatprep.mubr.msk.bf16.mxu1 %vm294_vm1, %v4029_v37  ;;  %v4099_v13 = vpack.c.bf16 %v725_v6, %v724_v5  ;;  %v4111_v15 = vld [vmem:[%s5326_s1 + $0xc] sm:$0x3]  ;;  %v727_v19 = vld [vmem:[%s3964_s27 + $0x52] sm:$0xff]  ;;  %v728_v21 = vld [vmem:[%s3964_s27 + $0x62] sm:$0xff] }
  0x22   : > { %v201_v16 = vld [vmem:[%s3964_s27 + $0x48] sm:$0xff]  ;;  %v202_v20 = vld [vmem:[%s3964_s27 + $0x50] sm:$0xff]  ;;  %v203_v25 = vld [vmem:[%s3964_s27 + $0x60] sm:$0xff] }
  0x23   : > { %v726_v18 = vld [vmem:[%s3964_s27 + $0x4a] sm:$0xff]  ;;  %v4133_v28 = vpack.c.bf16 %v202_v20, %v201_v16  ;;  %v205_v31 = vld [vmem:[%s3964_s27 + $0x78] sm:$0xff]  ;;  %v731_v33 = vld [vmem:[%s3964_s27 + $0x82] sm:$0xff] }
  0x24   : > { %v729_v24 = vld [vmem:[%s3964_s27 + $0x6a] sm:$0xff]  ;;  %v4129_v27 = vpack.c.bf16 %v727_v19, %v726_v18  ;;  %v730_v32 = vld [vmem:[%s3964_s27 + $0x7a] sm:$0xff]  ;;  %v732_v39 = vld [vmem:[%s3964_s27 + $0x92] sm:$0xff] }
  0x25   : > { %v204_v26 = vld [vmem:[%s3964_s27 + $0x68] sm:$0xff]  ;;  %v4135_v29 = vpack.c.bf16 %v729_v24, %v728_v21  ;;  %v206_v38 = vld [vmem:[%s3964_s27 + $0x80] sm:$0xff]  ;;  %v207_v41 = vld [vmem:[%s3964_s27 + $0x90] sm:$0xff]  ;;  %v4155_v43 = vpack.c.bf16 %v731_v33, %v730_v32 }
  0x26   : > { %v4137_v30 = vpack.c.bf16 %v204_v26, %v203_v25  ;;  %v733_v40 = vld [vmem:[%s3964_s27 + $0x9a] sm:$0xff]  ;;  %v4157_v44 = vpack.c.bf16 %v206_v38, %v205_v31  ;;  %v209_v51 = vld [vmem:[%s3964_s27 + $0xa8] sm:$0xff]  ;;  %v735_v53 = vld [vmem:[%s3964_s27 + $0xb2] sm:$0xff] }
  0x27   : > { %3584 = vmatmul.mubr.msk.bf16.gmra.mxu0 %vm294_vm1, %v4047_v46  ;;  %v208_v42 = vld [vmem:[%s3964_s27 + $0x98] sm:$0xff]  ;;  %v4159_v45 = vpack.c.bf16 %v733_v40, %v732_v39  ;;  %v734_v52 = vld [vmem:[%s3964_s27 + $0xaa] sm:$0xff]  ;;  %v736_v55 = vld [vmem:[%s3964_s27 + $0xc2] sm:$0xff] }
  0x28   : > { %3600 = vmatmul.mubr.msk.bf16.gmra.mxu1 %vm294_vm1, %v4049_v47  ;;  %3587 = vmatprep.mubr.msk.bf16.mxu0 %vm294_vm1, %v4051_v48  ;;  %v4161_v50 = vpack.c.bf16 %v208_v42, %v207_v41  ;;  %v210_v54 = vld [vmem:[%s3964_s27 + $0xb0] sm:$0xff]  ;;  %v211_v57 = vld [vmem:[%s3964_s27 + $0xc0] sm:$0xff]  ;;  %v213_v1 = vld [vmem:[%s3964_s27 + $0xd8] sm:$0xff] }
  0x29   : > { %3603 = vmatprep.mubr.msk.bf16.mxu1 %vm294_vm1, %v4053_v49  ;;  %v737_v56 = vld [vmem:[%s3964_s27 + $0xca] sm:$0xff]  ;;  %v4181_v62 = vpack.c.bf16 %v210_v54, %v209_v51  ;;  %v738_v2 = vld [vmem:[%s3964_s27 + $0xda] sm:$0xff]  ;;  %v739_v3 = vld [vmem:[%s3964_s27 + $0xe2] sm:$0xff] }
  0x2a   : > { %v4183_v63 = vpack.c.bf16 %v737_v56, %v736_v55  ;;  %v214_v5 = vld [vmem:[%s3964_s27 + $0xe0] sm:$0xff]  ;;  %v740_v6 = vld [vmem:[%s3964_s27 + $0xf2] sm:$0xff]  ;;  %v4203_v18 = vpack.c.bf16 %v739_v3, %v738_v2  ;;  %v217_v24 = vld [vmem:[%s3964_s27 + $0x108] sm:$0xff] }
  0x2b   : > { %v216_v16 = vld [vmem:[%s3964_s27 + $0xf8] sm:$0xff]  ;;  %v4205_v19 = vpack.c.bf16 %v214_v5, %v213_v1  ;;  %v742_v25 = vld [vmem:[%s3964_s27 + $0x10a] sm:$0xff]  ;;  %v744_v32 = vld [vmem:[%s3964_s27 + $0x122] sm:$0xff] }
  0x2c   : > { %v743_v26 = vld [vmem:[%s3964_s27 + $0x112] sm:$0xff]  ;;  %v745_v33 = vld [vmem:[%s3964_s27 + $0x12a] sm:$0xff]  ;;  %v219_v38 = vld [vmem:[%s3964_s27 + $0x120] sm:$0xff] }
  0x2d   : > { %v218_v31 = vld [vmem:[%s3964_s27 + $0x110] sm:$0xff]  ;;  %v220_v39 = vld [vmem:[%s3964_s27 + $0x128] sm:$0xff]  ;;  %v4227_v40 = vpack.c.bf16 %v743_v26, %v742_v25  ;;  %v4231_v42 = vpack.c.bf16 %v745_v33, %v744_v32  ;;  %v222_v55 = vld [vmem:[%s3964_s27 + $0x140] sm:$0xff]  ;;  %v1702_v32 = vsel %vm343_vm0, %v4106_v14, 0 }
  0x2e   : > { %v4229_v41 = vpack.c.bf16 %v218_v31, %v217_v24  ;;  %v4233_v51 = vpack.c.bf16 %v220_v39, %v219_v38  ;;  %v747_v54 = vld [vmem:[%s3964_s27 + $0x142] sm:$0xff]  ;;  %v748_v56 = vld [vmem:[%s3964_s27 + $0x152] sm:$0xff]  ;;  %v1997_v31 = vsel %vm343_vm0, %v4111_v15, 0  ;;  %v3351_v33 = vld [vmem:[%s5326_s1 + $0xe] sm:$0x3] }
  0x2f   : > { %3588 = vmatmul.mubr.msk.bf16.gmra.mxu0 %vm294_vm1, %v4071_v58  ;;  %v224_v1 = vld [vmem:[%s3964_s27 + $0x158] sm:$0xff]  ;;  %v226_v24 = vld [vmem:[%s3964_s27 + $0x170] sm:$0xff] }
  0x30   : > { %3604 = vmatmul.mubr.msk.bf16.gmra.mxu1 %vm294_vm1, %v4073_v59  ;;  %3643 = vmatprep.mubr.msk.bf16.mxu0 %vm294_vm1, %v752_v60  ;;  %v212_v60 = vld [vmem:[%s3964_s27 + $0xc8] sm:$0xff] }
  0x31   : > { %3609 = vmatprep.mubr.msk.bf16.mxu1 %vm294_vm1, %v227_v61  ;;  %v4179_v61 = vpack.c.bf16 %v735_v53, %v734_v52  ;;  %v4185_v0 = vpack.c.bf16 %v212_v60, %v211_v57  ;;  %v221_v52 = vld [vmem:[%s3964_s27 + $0x138] sm:$0xff]  ;;  %v223_v60 = vld [vmem:[%s3964_s27 + $0x150] sm:$0xff] }
  0x32   : > { %v746_v53 = vld [vmem:[%s3964_s27 + $0x13a] sm:$0xff]  ;;  %v4253_v3 = vpack.c.bf16 %v222_v55, %v221_v52  ;;  %v3252_v55 = vld [vmem:[%s3964_s27 + $0x18a] sm:$0xff] }
  0x33   : > { %v749_v57 = vld [vmem:[%s3964_s27 + $0x15a] sm:$0xff]  ;;  %v4251_v2 = vpack.c.bf16 %v747_v54, %v746_v53  ;;  %v3251_v54 = vld [vmem:[%s3964_s27 + $0x182] sm:$0xff] }
  0x34   : > { %v4255_v5 = vpack.c.bf16 %v749_v57, %v748_v56  ;;  %v3301_v52 = vld [vmem:[%s3964_s27 + $0x1a0] sm:$0xff] }
  0x37   : > { %3644 = vmatmul.mubr.msk.bf16.vlgmr.msra.gmra.mxu0 %vm294_vm1, %v4087_v4 }
  0x38   : > { %3610 = vmatmul.mubr.msk.bf16.vlgmr.msra.gmra.mxu1 %vm294_vm1, %v4091_v7  ;;  %3710 = vmatpush3.bf16.msra.mxu0 %v1408_v8  ;;  %v741_v8 = vld [vmem:[%s3964_s27 + $0xfa] sm:$0xff] }
  0x39   : > { %3676 = vmatpush3.bf16.msra.mxu1 %v1114_v10  ;;  %3613 = vmatprep.mubr.msk.bf16.mxu1 %vm294_vm1, %v4095_v9  ;;  %v215_v10 = vld [vmem:[%s3964_s27 + $0xf0] sm:$0xff]  ;;  %v4207_v20 = vpack.c.bf16 %v741_v8, %v740_v6  ;;  %v4257_v6 = vpack.c.bf16 %v224_v1, %v223_v60 }
  0x3a   : > { %3647 = vmatprep.mubr.msk.bf16.mxu0 %vm294_vm1, %v4099_v13  ;;  %3887 = vmatprep.subr.msk.bf16.mxu1 %vm343_vm0, %v4106_v14  ;;  %v4209_v21 = vpack.c.bf16 %v216_v16, %v215_v10  ;;  %v750_v8 = vld [vmem:[%s3964_s27 + $0x16a] sm:$0xff]  ;;  %v751_v10 = vld [vmem:[%s3964_s27 + $0x172] sm:$0xff] }
  0x3b   : > { %3888 = vmatprep.subr.msk.bf16.mxu0 %vm343_vm0, %v4111_v15  ;;  %v225_v16 = vld [vmem:[%s3964_s27 + $0x168] sm:$0xff]  ;;  %v4271_v25 = vpack.c.bf16 %v751_v10, %v750_v8 }
  0x3c   : > { %v4273_v26 = vpack.c.bf16 %v226_v24, %v225_v16 }
  0x3f   : > { %3648 = vmatmul.mubr.msk.bf16.gmra.mxu0 %vm294_vm1, %v4129_v27 }
  0x40   : > { %3614 = vmatmul.mubr.msk.bf16.gmra.mxu1 %vm294_vm1, %v4133_v28  ;;  %3651 = vmatprep.mubr.msk.bf16.mxu0 %vm294_vm1, %v4135_v29 }
  0x41   : > { %3617 = vmatprep.mubr.msk.bf16.mxu1 %vm294_vm1, %v4137_v30 }
  0x47   : > { %3652 = vmatmul.mubr.msk.bf16.gmra.mxu0 %vm294_vm1, %v4155_v43 }
  0x48   : > { %3618 = vmatmul.mubr.msk.bf16.gmra.mxu1 %vm294_vm1, %v4157_v44  ;;  %3655 = vmatprep.mubr.msk.bf16.mxu0 %vm294_vm1, %v4159_v45 }
  0x49   : > { %3621 = vmatprep.mubr.msk.bf16.mxu1 %vm294_vm1, %v4161_v50 }
  0x4f   : > { %3656 = vmatmul.mubr.msk.bf16.gmra.mxu0 %vm294_vm1, %v4179_v61 }
  0x50   : > { %3622 = vmatmul.mubr.msk.bf16.gmra.mxu1 %vm294_vm1, %v4181_v62  ;;  %3659 = vmatprep.mubr.msk.bf16.mxu0 %vm294_vm1, %v4183_v63 }
  0x51   : > { %3625 = vmatprep.mubr.msk.bf16.mxu1 %vm294_vm1, %v4185_v0 }
  0x57   : > { %3660 = vmatmul.mubr.msk.bf16.gmra.mxu0 %vm294_vm1, %v4203_v18 }
  0x58   : > { %3626 = vmatmul.mubr.msk.bf16.gmra.mxu1 %vm294_vm1, %v4205_v19  ;;  %3663 = vmatprep.mubr.msk.bf16.mxu0 %vm294_vm1, %v4207_v20 }
  0x59   : > { %3629 = vmatprep.mubr.msk.bf16.mxu1 %vm294_vm1, %v4209_v21 }
  0x5f   : > { %3664 = vmatmul.mubr.msk.bf16.gmra.mxu0 %vm294_vm1, %v4227_v40 }
  0x60   : > { %3630 = vmatmul.mubr.msk.bf16.gmra.mxu1 %vm294_vm1, %v4229_v41  ;;  %3667 = vmatprep.mubr.msk.bf16.mxu0 %vm294_vm1, %v4231_v42 }
  0x61   : > { %3633 = vmatprep.mubr.msk.bf16.mxu1 %vm294_vm1, %v4233_v51 }
  0x67   : > { %3668 = vmatmul.mubr.msk.bf16.gmra.mxu0 %vm294_vm1, %v4251_v2 }
  0x68   : > { %3634 = vmatmul.mubr.msk.bf16.gmra.mxu1 %vm294_vm1, %v4253_v3  ;;  %3671 = vmatprep.mubr.msk.bf16.mxu0 %vm294_vm1, %v4255_v5 }
  0x69   : > { %3637 = vmatprep.mubr.msk.bf16.mxu1 %vm294_vm1, %v4257_v6 }
  0x6f   : > { %3672 = vmatmul.mubr.msk.bf16.gmra.mxu0 %vm294_vm1, %v4271_v25 }
  0x70   : > { %3638 = vmatmul.mubr.msk.bf16.gmra.mxu1 %vm294_vm1, %v4273_v26  ;;  %3711 = vmatprep.mubr.msk.bf16.mxu0 %vm294_vm1, %v3974_v12  ;;  %v3400_v12 = vld [vmem:[%s5326_s1 + $0x10] sm:$0x3] }
  0x71   : > { %3677 = vmatprep.mubr.msk.bf16.mxu1 %vm294_vm1, %v4091_v7 }
  0x77   : > { %3712 = vmatmul.mubr.msk.bf16.vlgmr.msra.gmra.mxu0 %vm294_vm1, %v3991_v22 }
  0x78   : > { %3678 = vmatmul.mubr.msk.bf16.vlgmr.msra.gmra.mxu1 %vm294_vm1, %v4095_v9  ;;  %3778 = vmatpush3.bf16.msra.mxu0 %v1997_v31 }
  0x79   : > { %3744 = vmatpush3.bf16.msra.mxu1 %v1702_v32  ;;  %3681 = vmatprep.mubr.msk.bf16.mxu1 %vm294_vm1, %v4133_v28 }
  0x7a   : > { %3715 = vmatprep.mubr.msk.bf16.mxu0 %vm294_vm1, %v4021_v34  ;;  %3889 = vmatprep.subr.msk.bf16.mxu1 %vm343_vm0, %v3351_v33 }
  0x7b   : > { %3890 = vmatprep.subr.msk.bf16.mxu0 %vm343_vm0, %v3400_v12 }
  0x7f   : > { %3716 = vmatmul.mubr.msk.bf16.gmra.mxu0 %vm294_vm1, %v4027_v36 }
  0x80   : > { %3682 = vmatmul.mubr.msk.bf16.gmra.mxu1 %vm294_vm1, %v4137_v30  ;;  %3719 = vmatprep.mubr.msk.bf16.mxu0 %vm294_vm1, %v4047_v46 }
  0x81   : > { %3685 = vmatprep.mubr.msk.bf16.mxu1 %vm294_vm1, %v4157_v44 }
  0x87   : > { %3720 = vmatmul.mubr.msk.bf16.gmra.mxu0 %vm294_vm1, %v4051_v48  ;;  %v2585_v48 = vsel %vm343_vm0, %v3400_v12, 0 }
  0x88   : > { %3686 = vmatmul.mubr.msk.bf16.gmra.mxu1 %vm294_vm1, %v4161_v50  ;;  %3723 = vmatprep.mubr.msk.bf16.mxu0 %vm294_vm1, %v4071_v58 }
  0x89   : > { %3689 = vmatprep.mubr.msk.bf16.mxu1 %vm294_vm1, %v4181_v62 }
  0x8f   : > { %3724 = vmatmul.mubr.msk.bf16.gmra.mxu0 %vm294_vm1, %v3972_v11  ;;  %v3202_v11 = vld [vmem:[%s3964_s27 + $0x181] sm:$0xff] }
  0x90   : > { %3690 = vmatmul.mubr.msk.bf16.gmra.mxu1 %vm294_vm1, %v4185_v0  ;;  %3727 = vmatprep.mubr.msk.bf16.mxu0 %vm294_vm1, %v3981_v17  ;;  %v3203_v17 = vld [vmem:[%s3964_s27 + $0x189] sm:$0xff] }
  0x91   : > { %3693 = vmatprep.mubr.msk.bf16.mxu1 %vm294_vm1, %v4205_v19 }
  0x97   : > { %3728 = vmatmul.mubr.msk.bf16.gmra.mxu0 %vm294_vm1, %v3993_v23  ;;  %v3153_v23 = vld [vmem:[%s3964_s27 + $0x180] sm:$0xff] }
  0x98   : > { %3694 = vmatmul.mubr.msk.bf16.gmra.mxu1 %vm294_vm1, %v4209_v21  ;;  %3731 = vmatprep.mubr.msk.bf16.mxu0 %vm294_vm1, %v4025_v35  ;;  %v3154_v35 = vld [vmem:[%s3964_s27 + $0x188] sm:$0xff] }
  0x99   : > { %3697 = vmatprep.mubr.msk.bf16.mxu1 %vm294_vm1, %v4229_v41 }
  0x9f   : > { %3732 = vmatmul.mubr.msk.bf16.gmra.mxu0 %vm294_vm1, %v4029_v37  ;;  %v4355_v37 = vpack.c.bf16 %v3203_v17, %v3202_v11 }
  0xa0   : > { %3698 = vmatmul.mubr.msk.bf16.gmra.mxu1 %vm294_vm1, %v4233_v51  ;;  %3735 = vmatprep.mubr.msk.bf16.mxu0 %vm294_vm1, %v4049_v47  ;;  %v1062_v47 = vpack.c.bf16 %v3154_v35, %v3153_v23  ;;  %v3327_v23 = vld [vmem:[%s3964_s27 + $0x91] sm:$0xff]  ;;  %v3328_v35 = vld [vmem:[%s3964_s27 + $0x99] sm:$0xff] }
  0xa1   : > { %3701 = vmatprep.mubr.msk.bf16.mxu1 %vm294_vm1, %v4253_v3 }
  0xa7   : > { %3736 = vmatmul.mubr.msk.bf16.gmra.mxu0 %vm294_vm1, %v4053_v49  ;;  %v2291_v49 = vsel %vm343_vm0, %v3351_v33, 0 }
  0xa8   : > { %3702 = vmatmul.mubr.msk.bf16.gmra.mxu1 %vm294_vm1, %v4257_v6  ;;  %3739 = vmatprep.mubr.msk.bf16.mxu0 %vm294_vm1, %v4073_v59 }
  0xa9   : > { %3705 = vmatprep.mubr.msk.bf16.mxu1 %vm294_vm1, %v4273_v26 }
  0xaf   : > { %3740 = vmatmul.mubr.msk.bf16.gmra.mxu0 %vm294_vm1, %v4355_v37 }
  0xb0   : > { %3706 = vmatmul.mubr.msk.bf16.gmra.mxu1 %vm294_vm1, %v1062_v47  ;;  %3779 = vmatprep.mubr.msk.bf16.mxu0 %vm294_vm1, %v4095_v9 }
  0xb1   : > { %3745 = vmatprep.mubr.msk.bf16.mxu1 %vm294_vm1, %v4087_v4 }
  0xb7   : > { %3780 = vmatmul.mubr.msk.bf16.vlgmr.msra.gmra.mxu0 %vm294_vm1, %v4133_v28 }
  0xb8   : > { %3746 = vmatmul.mubr.msk.bf16.vlgmr.msra.gmra.mxu1 %vm294_vm1, %v4099_v13  ;;  %3846 = vmatpush3.bf16.msra.mxu0 %v2585_v48 }
  0xb9   : > { %3812 = vmatpush3.bf16.msra.mxu1 %v2291_v49  ;;  %3749 = vmatprep.mubr.msk.bf16.mxu1 %vm294_vm1, %v4129_v27 }
  0xba   : > { %3783 = vmatprep.mubr.msk.bf16.mxu0 %vm294_vm1, %v4137_v30 }
  0xbf   : > { %3784 = vmatmul.mubr.msk.bf16.gmra.mxu0 %vm294_vm1, %v4157_v44 }
  0xc0   : > { %3750 = vmatmul.mubr.msk.bf16.gmra.mxu1 %vm294_vm1, %v4135_v29  ;;  %3787 = vmatprep.mubr.msk.bf16.mxu0 %vm294_vm1, %v4161_v50 }
  0xc1   : > { %3753 = vmatprep.mubr.msk.bf16.mxu1 %vm294_vm1, %v4155_v43 }
  0xc7   : > { %3788 = vmatmul.mubr.msk.bf16.gmra.mxu0 %vm294_vm1, %v4181_v62 }
  0xc8   : > { %3754 = vmatmul.mubr.msk.bf16.gmra.mxu1 %vm294_vm1, %v4159_v45  ;;  %3791 = vmatprep.mubr.msk.bf16.mxu0 %vm294_vm1, %v4185_v0 }
  0xc9   : > { %3757 = vmatprep.mubr.msk.bf16.mxu1 %vm294_vm1, %v4179_v61 }
  0xcf   : > { %3792 = vmatmul.mubr.msk.bf16.gmra.mxu0 %vm294_vm1, %v4205_v19 }
  0xd0   : > { %3758 = vmatmul.mubr.msk.bf16.gmra.mxu1 %vm294_vm1, %v4183_v63  ;;  %3795 = vmatprep.mubr.msk.bf16.mxu0 %vm294_vm1, %v4209_v21 }
  0xd1   : > { %3761 = vmatprep.mubr.msk.bf16.mxu1 %vm294_vm1, %v4203_v18 }
  0xd7   : > { %v3577_v58 = vpop.f32.mrf.mxu0  ;;  %3796 = vmatmul.mubr.msk.bf16.gmra.mxu0 %vm294_vm1, %v4229_v41 }
  0xd8   : > { %v4400_v59 = vpop.f32.mrf.mxu1  ;;  %3762 = vmatmul.mubr.msk.bf16.gmra.mxu1 %vm294_vm1, %v4207_v20  ;;  %3799 = vmatprep.mubr.msk.bf16.mxu0 %vm294_vm1, %v4233_v51  ;;  %v3300_v51 = vld [vmem:[%s3964_s27 + $0x198] sm:$0xff] }
  0xd9   : > { %v381_v4 = vpop.f32.mrf.mxu0  ;;  %3765 = vmatprep.mubr.msk.bf16.mxu1 %vm294_vm1, %v4227_v40  ;;  %v1945_v60 = vpack.c.bf16 %v3301_v52, %v3300_v51 }
  0xda   : > { %v4408_v7 = vpop.f32.mrf.mxu1 }
  0xdb   : > { %v3578_v9 = vpop.f32.mrf.mxu0 }
  0xdc   : > { %v4410_v14 = vpop.f32.mrf.mxu1 }
  0xdd   : > { %v4412_v15 = vpop.f32.mrf.mxu0 }
  0xde   : > { %v4414_v28 = vpop.f32.mrf.mxu1 }
  0xdf   : > { %v4416_v30 = vpop.f32.mrf.mxu0  ;;  %3800 = vmatmul.mubr.msk.bf16.gmra.mxu0 %vm294_vm1, %v4253_v3  ;;  %v4463_v3 = vpack.c.bf16 %v3252_v55, %v3251_v54 }
  0xe0   : > { %v4420_v44 = vpop.f32.mrf.mxu1  ;;  %3766 = vmatmul.mubr.msk.bf16.gmra.mxu1 %vm294_vm1, %v4231_v42  ;;  %3803 = vmatprep.mubr.msk.bf16.mxu0 %vm294_vm1, %v4257_v6 }
  0xe1   : > { %v4426_v50 = vpop.f32.mrf.mxu0  ;;  %3769 = vmatprep.mubr.msk.bf16.mxu1 %vm294_vm1, %v4251_v2 }
  0xe2   : > { %v4430_v62 = vpop.f32.mrf.mxu1 }
  0xe3   : > { %v4432_v0 = vpop.f32.mrf.mxu0 }
  0xe4   : > { %v4434_v19 = vpop.f32.mrf.mxu1 }
  0xe5   : > { %v4436_v21 = vpop.f32.mrf.mxu0 }
  0xe6   : > { %v4438_v38 = vpop.f32.mrf.mxu1 }
  0xe7   : > { %v4440_v39 = vpop.f32.mrf.mxu0  ;;  %3804 = vmatmul.mubr.msk.bf16.gmra.mxu0 %vm294_vm1, %v4273_v26 }
  0xe8   : > { %v4444_v41 = vpop.f32.mrf.mxu1  ;;  %3770 = vmatmul.mubr.msk.bf16.gmra.mxu1 %vm294_vm1, %v4255_v5  ;;  %3807 = vmatprep.mubr.msk.bf16.mxu0 %vm294_vm1, %v1062_v47 }
  0xe9   : > { %v4451_v53 = vpop.f32.mrf.mxu0  ;;  %3773 = vmatprep.mubr.msk.bf16.mxu1 %vm294_vm1, %v4271_v25 }
  0xea   : > { %v4457_v56 = vpop.f32.mrf.mxu1 }
  0xeb   : > { %v4459_v57 = vpop.f32.mrf.mxu0 }
  0xec   : > { %v4461_v1 = vpop.f32.mrf.mxu1 }
  0xed   : > { %v4465_v6 = vpop.f32.mrf.mxu0 }
  0xee   : > { %v4467_v8 = vpop.f32.mrf.mxu1 }
  0xef   : > { %v4469_v10 = vpop.f32.mrf.mxu0  ;;  %3808 = vmatmul.mubr.msk.bf16.gmra.mxu0 %vm294_vm1, %v1945_v60 }
  0xf0   : > { %v4472_v16 = vpop.f32.mrf.mxu1  ;;  %3774 = vmatmul.mubr.msk.bf16.gmra.mxu1 %vm294_vm1, %v4463_v3  ;;  %3847 = vmatprep.mubr.msk.bf16.mxu0 %vm294_vm1, %v4099_v13 }
  0xf1   : > { %v4478_v24 = vpop.f32.mrf.mxu0  ;;  %3813 = vmatprep.mubr.msk.bf16.mxu1 %vm294_vm1, %v3991_v22 }
  0xf2   : > { %v4482_v25 = vpop.f32.mrf.mxu1 }
  0xf3   : > { %v4484_v26 = vpop.f32.mrf.mxu0 }
  0xf4   : > { %v4486_v31 = vpop.f32.mrf.mxu1 }
  0xf5   : > { %v4488_v32 = vpop.f32.mrf.mxu0 }
  0xf6   : > { %v4490_v33 = vpop.f32.mrf.mxu1 }
  0xf7   : > { %v3645_v12 = vpop.f32.mrf.mxu0  ;;  %3848 = vmatmul.mubr.msk.bf16.vlgmr.msra.gmra.mxu0 %vm294_vm1, %v4129_v27 }
  0xf8   : > { %v3611_v13 = vpop.f32.mrf.mxu1  ;;  %3814 = vmatmul.mubr.msk.bf16.vlgmr.msra.gmra.mxu1 %vm294_vm1, %v4021_v34  ;;  %3851 = vmatprep.mubr.msk.bf16.mxu0 %vm294_vm1, %v4135_v29  ;;  %v2228_v29 = vpack.c.bf16 %v3328_v35, %v3327_v23 }
  0xf9   : > { %v602_v22 = vadd.f32 %v3611_v13, %v3577_v58  ;;  %v855_v11 = vpop.f32.mrf.mxu0  ;;  %3817 = vmatprep.mubr.msk.bf16.mxu1 %vm294_vm1, %v4027_v36  ;;  %v3329_v13 = vld [vmem:[%s3964_s27 + $0xa9] sm:$0xff] }
  0xfa   : > { %v593_v17 = vpop.f32.mrf.mxu1 }
  0xfb   : > { %v4502_v47 = vadd.f32 %v3645_v12, %v602_v22  ;;  %v594_v48 = vadd.f32 %v593_v17, %v381_v4  ;;  %v3646_v49 = vpop.f32.mrf.mxu0  ;;  %v3332_v17 = vld [vmem:[%s3964_s27 + $0xc9] sm:$0xff] }
  0xfc   : > { %v3612_v27 = vpop.f32.mrf.mxu1 }
  0xfd   : > { %v4504_v51 = vadd.f32 %v855_v11, %v594_v48  ;;  %v605_v34 = vadd.f32 %v3612_v27, %v3578_v9  ;;  %v858_v52 = vpop.f32.mrf.mxu0  ;;  %v3331_v11 = vld [vmem:[%s3964_s27 + $0xc1] sm:$0xff] }
  0xfe   : > { %v596_v58 = vpop.f32.mrf.mxu1  ;;  %v2230_v27 = vpack.c.bf16 %v3332_v17, %v3331_v11 }
  0xff   : > { %v4506_v54 = vadd.f32 %v3646_v49, %v605_v34  ;;  %v597_v36 = vadd.f32 %v596_v58, %v4412_v15  ;;  %v3649_v55 = vpop.f32.mrf.mxu0  ;;  %3852 = vmatmul.mubr.msk.bf16.gmra.mxu0 %vm294_vm1, %v4155_v43  ;;  %v3330_v15 = vld [vmem:[%s3964_s27 + $0xb1] sm:$0xff] }
 0x100   : > { %v3615_v4 = vpop.f32.mrf.mxu1  ;;  %3818 = vmatmul.mubr.msk.bf16.gmra.mxu1 %vm294_vm1, %v4047_v46  ;;  %3855 = vmatprep.mubr.msk.bf16.mxu0 %vm294_vm1, %v4159_v45  ;;  %v2229_v48 = vpack.c.bf16 %v3330_v15, %v3329_v13  ;;  %v3336_v13 = vld [vmem:[%s3964_s27 + $0xf9] sm:$0xff] }
 0x101   : > { %v4515_v9 = vadd.f32 %v858_v52, %v597_v36  ;;  %v618_v60 = vadd.f32 %v3615_v4, %v4416_v30  ;;  %v871_v12 = vpop.f32.mrf.mxu0  ;;  %3821 = vmatprep.mubr.msk.bf16.mxu1 %vm294_vm1, %v2228_v29  ;;  %v3333_v4 = vld [vmem:[%s3964_s27 + $0xd9] sm:$0xff] }
 0x102   : > { %v609_v22 = vpop.f32.mrf.mxu1 }
 0x103   : > { %v4523_v43 = vadd.f32 %v3649_v55, %v618_v60  ;;  %v610_v23 = vadd.f32 %v609_v22, %v4426_v50  ;;  %v3650_v46 = vpop.f32.mrf.mxu0  ;;  %v3334_v60 = vld [vmem:[%s3964_s27 + $0xe1] sm:$0xff] }
 0x104   : > { %v3616_v35 = vpop.f32.mrf.mxu1  ;;  %v2231_v17 = vpack.c.bf16 %v3334_v60, %v3333_v4 }
 0x105   : > { %v4526_v45 = vadd.f32 %v871_v12, %v610_v23  ;;  %v621_v30 = vadd.f32 %v3616_v35, %v4432_v0  ;;  %v874_v49 = vpop.f32.mrf.mxu0  ;;  %v3335_v12 = vld [vmem:[%s3964_s27 + $0xf1] sm:$0xff] }
 0x106   : > { %v612_v34 = vpop.f32.mrf.mxu1 }
 0x107   : > { %v4529_v52 = vadd.f32 %v3650_v46, %v621_v30  ;;  %v613_v29 = vadd.f32 %v612_v34, %v4436_v21  ;;  %v3653_v58 = vpop.f32.mrf.mxu0  ;;  %3856 = vmatmul.mubr.msk.bf16.gmra.mxu0 %vm294_vm1, %v4179_v61  ;;  %v2232_v46 = vpack.c.bf16 %v3336_v13, %v3335_v12 }
 0x108   : > { %v3619_v50 = vpop.f32.mrf.mxu1  ;;  %3822 = vmatmul.mubr.msk.bf16.gmra.mxu1 %vm294_vm1, %v2229_v48  ;;  %3859 = vmatprep.mubr.msk.bf16.mxu0 %vm294_vm1, %v4183_v63 }
 0x109   : > { %v4537_v0 = vadd.f32 %v874_v49, %v613_v29  ;;  %v634_v36 = vadd.f32 %v3619_v50, %v4440_v39  ;;  %v887_v55 = vpop.f32.mrf.mxu0  ;;  %3825 = vmatprep.mubr.msk.bf16.mxu1 %vm294_vm1, %v2230_v27  ;;  %v3337_v29 = vld [vmem:[%s3964_s27 + $0x109] sm:$0xff]  ;;  %v3339_v50 = vld [vmem:[%s3964_s27 + $0x121] sm:$0xff] }
 0x10a   : > { %v625_v21 = vpop.f32.mrf.mxu1 }
 0x10b   : > { %v4545_v15 = vadd.f32 %v3653_v58, %v634_v36  ;;  %v626_v61 = vadd.f32 %v625_v21, %v4451_v53  ;;  %v3654_v22 = vpop.f32.mrf.mxu0  ;;  %v3338_v58 = vld [vmem:[%s3964_s27 + $0x111] sm:$0xff]  ;;  %v3340_v36 = vld [vmem:[%s3964_s27 + $0x129] sm:$0xff] }
 0x10c   : > { %v3620_v11 = vpop.f32.mrf.mxu1  ;;  %v2233_v21 = vpack.c.bf16 %v3338_v58, %v3337_v29  ;;  %v2234_v13 = vpack.c.bf16 %v3340_v36, %v3339_v50 }
 0x10d   : > { %v4548_v63 = vadd.f32 %v887_v55, %v626_v61  ;;  %v637_v39 = vadd.f32 %v3620_v11, %v4459_v57  ;;  %v890_v23 = vpop.f32.mrf.mxu0 }
 0x10e   : > { %v628_v35 = vpop.f32.mrf.mxu1 }
 0x10f   : > { %v4551_v48 = vadd.f32 %v3654_v22, %v637_v39  ;;  %v629_v30 = vadd.f32 %v628_v35, %v4465_v6  ;;  %v3657_v49 = vpop.f32.mrf.mxu0  ;;  %3860 = vmatmul.mubr.msk.bf16.gmra.mxu0 %vm294_vm1, %v4203_v18  ;;  %v3342_v35 = vld [vmem:[%s3964_s27 + $0x141] sm:$0xff] }
 0x110   : > { %v3623_v53 = vpop.f32.mrf.mxu1  ;;  %3826 = vmatmul.mubr.msk.bf16.gmra.mxu1 %vm294_vm1, %v2231_v17  ;;  %3863 = vmatprep.mubr.msk.bf16.mxu0 %vm294_vm1, %v4207_v20 }
 0x111   : > { %v4559_v57 = vadd.f32 %v890_v23, %v629_v30  ;;  %v650_v27 = vadd.f32 %v3623_v53, %v4469_v10  ;;  %v903_v34 = vpop.f32.mrf.mxu0  ;;  %3829 = vmatprep.mubr.msk.bf16.mxu1 %vm294_vm1, %v2232_v46  ;;  %v3341_v46 = vld [vmem:[%s3964_s27 + $0x139] sm:$0xff]  ;;  %v3343_v30 = vld [vmem:[%s3964_s27 + $0x151] sm:$0xff] }
 0x112   : > { %v641_v6 = vpop.f32.mrf.mxu1 }
 0x113   : > { %v4567_v55 = vadd.f32 %v3657_v49, %v650_v27  ;;  %v642_v18 = vadd.f32 %v641_v6, %v4478_v24  ;;  %v3658_v4 = vpop.f32.mrf.mxu0  ;;  %v3344_v49 = vld [vmem:[%s3964_s27 + $0x159] sm:$0xff] }
 0x114   : > { %v3624_v60 = vpop.f32.mrf.mxu1  ;;  %v2236_v6 = vpack.c.bf16 %v3344_v49, %v3343_v30 }
 0x115   : > { %v4570_v20 = vadd.f32 %v903_v34, %v642_v18  ;;  %v653_v10 = vadd.f32 %v3624_v60, %v4484_v26  ;;  %v906_v12 = vpop.f32.mrf.mxu0  ;;  %v2235_v34 = vpack.c.bf16 %v3342_v35, %v3341_v46  ;;  %v3395_v60 = vld [vmem:[%s3964_s27 + $0x172] sm:$0xff] }
 0x116   : > { %v644_v61 = vpop.f32.mrf.mxu1 }
 0x117   : > { %v4573_v22 = vadd.f32 %v3658_v4, %v653_v10  ;;  %v645_v11 = vadd.f32 %v644_v61, %v4488_v32  ;;  %v3661_v17 = vpop.f32.mrf.mxu0  ;;  %3864 = vmatmul.mubr.msk.bf16.gmra.mxu0 %vm294_vm1, %v4227_v40 }
 0x118   : > { %v3627_v24 = vpop.f32.mrf.mxu1  ;;  %3830 = vmatmul.mubr.msk.bf16.gmra.mxu1 %vm294_vm1, %v2233_v21  ;;  %3867 = vmatprep.mubr.msk.bf16.mxu0 %vm294_vm1, %v4231_v42 }
 0x119   : > { %v4581_v26 = vadd.f32 %v906_v12, %v645_v11  ;;  %v666_v39 = vadd.f32 %v3627_v24, %v4400_v59  ;;  %v919_v23 = vpop.f32.mrf.mxu0  ;;  %3833 = vmatprep.mubr.msk.bf16.mxu1 %vm294_vm1, %v2234_v13  ;;  %v3346_v13 = vld [vmem:[%s3964_s27 + $0x171] sm:$0xff] }
 0x11a   : > { %v657_v32 = vpop.f32.mrf.mxu1 }
 0x11b   : > { %v4589_v53 = vadd.f32 %v3661_v17, %v666_v39  ;;  %v658_v40 = vadd.f32 %v657_v32, %v4408_v7  ;;  %v3662_v27 = vpop.f32.mrf.mxu0 }
 0x11c   : > { %v3628_v42 = vpop.f32.mrf.mxu1 }
 0x11d   : > { %v4592_v29 = vadd.f32 %v919_v23, %v658_v40  ;;  %v669_v59 = vadd.f32 %v3628_v42, %v4410_v14  ;;  %v922_v58 = vpop.f32.mrf.mxu0  ;;  %v3394_v14 = vld [vmem:[%s3964_s27 + $0x16a] sm:$0xff]  ;;  %v3398_v40 = vld [vmem:[%s3964_s27 + $0x19a] sm:$0xff] }
 0x11e   : > { %v660_v50 = vpop.f32.mrf.mxu1 }
 0x11f   : > { %v4595_v36 = vadd.f32 %v3662_v27, %v669_v59  ;;  %v661_v18 = vadd.f32 %v660_v50, %v4414_v28  ;;  %v3665_v4 = vpop.f32.mrf.mxu0  ;;  %3868 = vmatmul.mubr.msk.bf16.gmra.mxu0 %vm294_vm1, %v4251_v2  ;;  %v3345_v28 = vld [vmem:[%s3964_s27 + $0x169] sm:$0xff]  ;;  %v3350_v59 = vld [vmem:[%s3964_s27 + $0x1a1] sm:$0xff] }
 0x120   : > { %v3631_v7 = vpop.f32.mrf.mxu1  ;;  %3834 = vmatmul.mubr.msk.bf16.gmra.mxu1 %vm294_vm1, %v2235_v34  ;;  %3871 = vmatprep.mubr.msk.bf16.mxu0 %vm294_vm1, %v4255_v5  ;;  %v2531_v5 = vpack.c.bf16 %v3395_v60, %v3394_v14  ;;  %v2237_v39 = vpack.c.bf16 %v3346_v13, %v3345_v28  ;;  %v3399_v27 = vld [vmem:[%s3964_s27 + $0x1a2] sm:$0xff] }
 0x121   : > { %v4605_v21 = vadd.f32 %v922_v58, %v661_v18  ;;  %v682_v10 = vadd.f32 %v3631_v7, %v4420_v44  ;;  %v935_v12 = vpop.f32.mrf.mxu0  ;;  %3837 = vmatprep.mubr.msk.bf16.mxu1 %vm294_vm1, %v2236_v6 }
 0x122   : > { %v673_v61 = vpop.f32.mrf.mxu1 }
 0x123   : > { %v4611_v11 = vadd.f32 %v3665_v4, %v682_v10  ;;  %v674_v2 = vadd.f32 %v673_v61, %v4430_v62  ;;  %v3666_v17 = vpop.f32.mrf.mxu0  ;;  %v2533_v4 = vpack.c.bf16 %v3399_v27, %v3398_v40 }
 0x124   : > { %v3632_v24 = vpop.f32.mrf.mxu1 }
 0x125   : > { %v4614_v23 = vadd.f32 %v935_v12, %v674_v2  ;;  %v685_v44 = vadd.f32 %v3632_v24, %v4434_v19  ;;  %v938_v46 = vpop.f32.mrf.mxu0 }
 0x126   : > { %v676_v35 = vpop.f32.mrf.mxu1 }
 0x127   : > { %v4617_v32 = vadd.f32 %v3666_v17, %v685_v44  ;;  %v677_v30 = vadd.f32 %v676_v35, %v4438_v38  ;;  %v3669_v49 = vpop.f32.mrf.mxu0  ;;  %3872 = vmatmul.mubr.msk.bf16.gmra.mxu0 %vm294_vm1, %v2531_v5  ;;  %v3349_v38 = vld [vmem:[%s3964_s27 + $0x199] sm:$0xff] }
 0x128   : > { %v3635_v62 = vpop.f32.mrf.mxu1  ;;  %3838 = vmatmul.mubr.msk.bf16.gmra.mxu1 %vm294_vm1, %v2237_v39  ;;  %3875 = vmatprep.mubr.msk.bf16.mxu0 %vm294_vm1, %v4463_v3  ;;  %v2239_v7 = vpack.c.bf16 %v3350_v59, %v3349_v38 }
 0x129   : > { %v4626_v19 = vadd.f32 %v938_v46, %v677_v30  ;;  %v698_v42 = vadd.f32 %v3635_v62, %v4444_v41  ;;  %v951_v34 = vpop.f32.mrf.mxu0  ;;  %3841 = vmatprep.mubr.msk.bf16.mxu1 %vm294_vm1, %v4355_v37 }
 0x12a   : > { %v689_v58 = vpop.f32.mrf.mxu1 }
 0x12b   : > { %v4633_v6 = vadd.f32 %v3669_v49, %v698_v42  ;;  %v690_v50 = vadd.f32 %v689_v58, %v4457_v56  ;;  %v3670_v18 = vpop.f32.mrf.mxu0 }
 0x12c   : > { %v3636_v3 = vpop.f32.mrf.mxu1 }
 0x12d   : > { %v4636_v14 = vadd.f32 %v951_v34, %v690_v50  ;;  %v701_v60 = vadd.f32 %v3636_v3, %v4461_v1  ;;  %v954_v41 = vpop.f32.mrf.mxu0 }
 0x12e   : > { %v692_v10 = vpop.f32.mrf.mxu1 }
 0x12f   : > { %v4639_v12 = vadd.f32 %v3670_v18, %v701_v60  ;;  %v693_v37 = vadd.f32 %v692_v10, %v4467_v8  ;;  %v3673_v28 = vpop.f32.mrf.mxu0  ;;  %3876 = vmatmul.mubr.msk.bf16.gmra.mxu0 %vm294_vm1, %v2533_v4 }
 0x130   : > { %v3639_v13 = vpop.f32.mrf.mxu1  ;;  %3842 = vmatmul.mubr.msk.bf16.gmra.mxu1 %vm294_vm1, %v2239_v7 }
 0x131   : > { %v4644_v56 = vadd.f32 %v954_v41, %v693_v37  ;;  %v714_v61 = vadd.f32 %v3639_v13, %v4472_v16  ;;  %v967_v2 = vpop.f32.mrf.mxu0 }
 0x132   : > { %v705_v17 = vpop.f32.mrf.mxu1 }
 0x133   : > { %v4647_v5 = vadd.f32 %v3673_v28, %v714_v61  ;;  %v706_v1 = vadd.f32 %v705_v17, %v4482_v25  ;;  %v3674_v24 = vpop.f32.mrf.mxu0 }
 0x134   : > { %v3640_v39 = vpop.f32.mrf.mxu1 }
 0x135   : > { %v4650_v44 = vadd.f32 %v967_v2, %v706_v1  ;;  %v717_v8 = vadd.f32 %v3640_v39, %v4486_v31  ;;  %v970_v46 = vpop.f32.mrf.mxu0 }
 0x136   : > { %v708_v35 = vpop.f32.mrf.mxu1 }
 0x137   : > { %v4653_v30 = vadd.f32 %v3674_v24, %v717_v8  ;;  %v709_v49 = vadd.f32 %v708_v35, %v4490_v33  ;;  %v3713_v62 = vpop.f32.mrf.mxu0 }
 0x138   : > { %v3679_v16 = vpop.f32.mrf.mxu1 }
 0x139   : > { %v4656_v40 = vadd.f32 %v970_v46, %v709_v49  ;;  %v1279_v27 = vadd.f32 %v3679_v16, %v4502_v47  ;;  %v1444_v42 = vpop.f32.mrf.mxu0 }
 0x13a   : > { %v1150_v25 = vpop.f32.mrf.mxu1 }
 0x13b   : > { %v4659_v34 = vadd.f32 %v3713_v62, %v1279_v27  ;;  %v1277_v38 = vadd.f32 %v1150_v25, %v4504_v51  ;;  %v3714_v59 = vpop.f32.mrf.mxu0 }
 0x13c   : > { %v3680_v31 = vpop.f32.mrf.mxu1 }
 0x13d   : > { %v4662_v58 = vadd.f32 %v1444_v42, %v1277_v38  ;;  %v1280_v50 = vadd.f32 %v3680_v31, %v4506_v54  ;;  %v1447_v18 = vpop.f32.mrf.mxu0 }
 0x13e   : > { %v1153_v33 = vpop.f32.mrf.mxu1 }
 0x13f   : > { %v4665_v4 = vadd.f32 %v3714_v59, %v1280_v50  ;;  %v1278_v3 = vadd.f32 %v1153_v33, %v4515_v9  ;;  %v3717_v7 = vpop.f32.mrf.mxu0 }
 0x140   : > { %v3683_v47 = vpop.f32.mrf.mxu1 }
 0x141   : > { %v4668_v60 = vadd.f32 %v1447_v18, %v1278_v3  ;;  %v1283_v41 = vadd.f32 %v3683_v47, %v4523_v43  ;;  %v1460_v10 = vpop.f32.mrf.mxu0 }
 0x142   : > { %v1166_v51 = vpop.f32.mrf.mxu1 }
 0x143   : > { %v4671_v37 = vadd.f32 %v3717_v7, %v1283_v41  ;;  %v1281_v28 = vadd.f32 %v1166_v51, %v4526_v45  ;;  %v3718_v13 = vpop.f32.mrf.mxu0 }
 0x144   : > { %v3684_v54 = vpop.f32.mrf.mxu1 }
 0x145   : > { %v4674_v61 = vadd.f32 %v1460_v10, %v1281_v28  ;;  %v1284_v2 = vadd.f32 %v3684_v54, %v4529_v52  ;;  %v1463_v17 = vpop.f32.mrf.mxu0 }
 0x146   : > { %v1169_v9 = vpop.f32.mrf.mxu1 }
 0x147   : > { %v4677_v1 = vadd.f32 %v3718_v13, %v1284_v2  ;;  %v1282_v24 = vadd.f32 %v1169_v9, %v4537_v0  ;;  %v3721_v39 = vpop.f32.mrf.mxu0 }
 0x148   : > { %v3687_v43 = vpop.f32.mrf.mxu1 }
 0x149   : > { %v4680_v8 = vadd.f32 %v1463_v17, %v1282_v24  ;;  %v1287_v46 = vadd.f32 %v3687_v43, %v4545_v15  ;;  %v1476_v35 = vpop.f32.mrf.mxu0 }
 0x14a   : > { %v1182_v45 = vpop.f32.mrf.mxu1 }
 0x14b   : > { %v4683_v49 = vadd.f32 %v3721_v39, %v1287_v46  ;;  %v1285_v62 = vadd.f32 %v1182_v45, %v4548_v63  ;;  %v3722_v16 = vpop.f32.mrf.mxu0 }
 0x14c   : > { %v3688_v52 = vpop.f32.mrf.mxu1 }
 0x14d   : > { %v4686_v27 = vadd.f32 %v1476_v35, %v1285_v62  ;;  %v1288_v42 = vadd.f32 %v3688_v52, %v4551_v48  ;;  %v1479_v25 = vpop.f32.mrf.mxu0 }
 0x14e   : > { %v1185_v0 = vpop.f32.mrf.mxu1 }
 0x14f   : > { %v4689_v38 = vadd.f32 %v3722_v16, %v1288_v42  ;;  %v1286_v59 = vadd.f32 %v1185_v0, %v4559_v57  ;;  %v3725_v31 = vpop.f32.mrf.mxu0 }
 0x150   : > { %v3691_v15 = vpop.f32.mrf.mxu1 }
 0x151   : > { %v4692_v50 = vadd.f32 %v1479_v25, %v1286_v59  ;;  %v1291_v18 = vadd.f32 %v3691_v15, %v4567_v55  ;;  %v1492_v33 = vpop.f32.mrf.mxu0 }
 0x152   : > { %v1198_v63 = vpop.f32.mrf.mxu1 }
 0x153   : > { %v4695_v3 = vadd.f32 %v3725_v31, %v1291_v18  ;;  %v1289_v7 = vadd.f32 %v1198_v63, %v4570_v20  ;;  %v3726_v47 = vpop.f32.mrf.mxu0 }
 0x154   : > { %v3692_v48 = vpop.f32.mrf.mxu1 }
 0x155   : > { %v4698_v41 = vadd.f32 %v1492_v33, %v1289_v7  ;;  %v1292_v10 = vadd.f32 %v3692_v48, %v4573_v22  ;;  %v1495_v51 = vpop.f32.mrf.mxu0 }
 0x156   : > { %v1201_v57 = vpop.f32.mrf.mxu1 }
 0x157   : > { %v4701_v28 = vadd.f32 %v3726_v47, %v1292_v10  ;;  %v1290_v13 = vadd.f32 %v1201_v57, %v4581_v26  ;;  %v3729_v54 = vpop.f32.mrf.mxu0 }
 0x158   : > { %v3695_v55 = vpop.f32.mrf.mxu1 }
 0x159   : > { %v4704_v2 = vadd.f32 %v1495_v51, %v1290_v13  ;;  %v1295_v17 = vadd.f32 %v3695_v55, %v4589_v53  ;;  %v1508_v9 = vpop.f32.mrf.mxu0 }
 0x15a   : > { %v1214_v20 = vpop.f32.mrf.mxu1 }
 0x15b   : > { %v4707_v24 = vadd.f32 %v3729_v54, %v1295_v17  ;;  %v1293_v39 = vadd.f32 %v1214_v20, %v4592_v29  ;;  %v3730_v43 = vpop.f32.mrf.mxu0 }
 0x15c   : > { %v3696_v22 = vpop.f32.mrf.mxu1 }
 0x15d   : > { %v4710_v46 = vadd.f32 %v1508_v9, %v1293_v39  ;;  %v1296_v35 = vadd.f32 %v3696_v22, %v4595_v36  ;;  %v1511_v45 = vpop.f32.mrf.mxu0 }
 0x15e   : > { %v1217_v26 = vpop.f32.mrf.mxu1 }
 0x15f   : > { %v4713_v62 = vadd.f32 %v3730_v43, %v1296_v35  ;;  %v1294_v16 = vadd.f32 %v1217_v26, %v4605_v21  ;;  %v3733_v52 = vpop.f32.mrf.mxu0 }
 0x160   : > { %v3699_v53 = vpop.f32.mrf.mxu1 }
 0x161   : > { %5330 = vst [vmem:[#allocation2_spill] sm:$0xff] %v4713_v62  ;;  %v4716_v42 = vadd.f32 %v1511_v45, %v1294_v16  ;;  %v1299_v25 = vadd.f32 %v3699_v53, %v4611_v11  ;;  %v1524_v0 = vpop.f32.mrf.mxu0 }
 0x162   : > { %v1230_v29 = vpop.f32.mrf.mxu1 }
 0x163   : > { %5331 = vst [vmem:[#allocation3_spill] sm:$0xff] %v4716_v42  ;;  %v4719_v59 = vadd.f32 %v3733_v52, %v1299_v25  ;;  %v1297_v31 = vadd.f32 %v1230_v29, %v4614_v23  ;;  %v3734_v15 = vpop.f32.mrf.mxu0 }
 0x164   : > { %v3700_v36 = vpop.f32.mrf.mxu1 }
 0x165   : > { %5332 = vst [vmem:[#allocation4_spill] sm:$0xff] %v4719_v59  ;;  %v4722_v18 = vadd.f32 %v1524_v0, %v1297_v31  ;;  %v1300_v33 = vadd.f32 %v3700_v36, %v4617_v32  ;;  %v1527_v63 = vpop.f32.mrf.mxu0 }
 0x166   : > { %v1233_v21 = vpop.f32.mrf.mxu1 }
 0x167   : > { %5333 = vst [vmem:[#allocation5_spill] sm:$0xff] %v4722_v18  ;;  %v4725_v7 = vadd.f32 %v3734_v15, %v1300_v33  ;;  %v1298_v47 = vadd.f32 %v1233_v21, %v4626_v19  ;;  %v3737_v48 = vpop.f32.mrf.mxu0 }
 0x168   : > { %v3703_v11 = vpop.f32.mrf.mxu1 }
 0x169   : > { %5334 = vst [vmem:[#allocation6_spill] sm:$0xff] %v4725_v7  ;;  %v4728_v10 = vadd.f32 %v1527_v63, %v1298_v47  ;;  %v1303_v51 = vadd.f32 %v3703_v11, %v4633_v6  ;;  %v1540_v57 = vpop.f32.mrf.mxu0 }
 0x16a   : > { %v1246_v23 = vpop.f32.mrf.mxu1 }
 0x16b   : > { %5335 = vst [vmem:[#allocation7_spill] sm:$0xff] %v4728_v10  ;;  %v4731_v13 = vadd.f32 %v3737_v48, %v1303_v51  ;;  %v1301_v54 = vadd.f32 %v1246_v23, %v4636_v14  ;;  %v3738_v55 = vpop.f32.mrf.mxu0 }
 0x16c   : > { %v3704_v32 = vpop.f32.mrf.mxu1 }
 0x16d   : > { %5336 = vst [vmem:[#allocation8_spill] sm:$0xff] %v4731_v13  ;;  %v4734_v17 = vadd.f32 %v1540_v57, %v1301_v54  ;;  %v1304_v9 = vadd.f32 %v3704_v32, %v4639_v12  ;;  %v1543_v20 = vpop.f32.mrf.mxu0 }
 0x16e   : > { %v1249_v19 = vpop.f32.mrf.mxu1 }
 0x16f   : > { %5337 = vst [vmem:[#allocation9_spill] sm:$0xff] %v4734_v17  ;;  %v4737_v39 = vadd.f32 %v3738_v55, %v1304_v9  ;;  %v1302_v43 = vadd.f32 %v1249_v19, %v4644_v56  ;;  %v3741_v22 = vpop.f32.mrf.mxu0 }
 0x170   : > { %v3707_v6 = vpop.f32.mrf.mxu1 }
 0x171   : > { %5338 = vst [vmem:[#allocation10_spill] sm:$0xff] %v4737_v39  ;;  %v4740_v35 = vadd.f32 %v1543_v20, %v1302_v43  ;;  %v1307_v45 = vadd.f32 %v3707_v6, %v4647_v5  ;;  %v1556_v26 = vpop.f32.mrf.mxu0 }
 0x172   : > { %v1262_v14 = vpop.f32.mrf.mxu1 }
 0x173   : > { %5339 = vst [vmem:[#allocation11_spill] sm:$0xff] %v4740_v35  ;;  %v4743_v16 = vadd.f32 %v3741_v22, %v1307_v45  ;;  %v1305_v52 = vadd.f32 %v1262_v14, %v4650_v44  ;;  %v3742_v53 = vpop.f32.mrf.mxu0 }
 0x174   : > { %v3708_v12 = vpop.f32.mrf.mxu1 }
 0x175   : > { %5340 = vst [vmem:[#allocation12_spill] sm:$0xff] %v4743_v16  ;;  %v4746_v25 = vadd.f32 %v1556_v26, %v1305_v52  ;;  %v1308_v0 = vadd.f32 %v3708_v12, %v4653_v30  ;;  %v1559_v29 = vpop.f32.mrf.mxu0 }
 0x176   : > { %v1265_v56 = vpop.f32.mrf.mxu1 }
 0x177   : > { %5341 = vst [vmem:[#allocation13_spill] sm:$0xff] %v4746_v25  ;;  %v4749_v31 = vadd.f32 %v3742_v53, %v1308_v0  ;;  %v1306_v15 = vadd.f32 %v1265_v56, %v4656_v40  ;;  %v4752_v36 = vpop.f32.mrf.mxu0 }
 0x178   : > { %v3747_v5 = vpop.f32.mrf.mxu1 }
 0x179   : > { %5342 = vst [vmem:[#allocation14_spill] sm:$0xff] %v4749_v31  ;;  %v4754_v33 = vadd.f32 %v1559_v29, %v1306_v15  ;;  %v4756_v63 = vpop.f32.mrf.mxu0 }
 0x17a   : > { %v4758_v44 = vpop.f32.mrf.mxu1 }
 0x17b   : > { %5343 = vst [vmem:[#allocation15_spill] sm:$0xff] %v4754_v33  ;;  %v4760_v21 = vpop.f32.mrf.mxu0 }
 0x17c   : > { %v4762_v47 = vpop.f32.mrf.mxu1 }
 0x17d   : > { %v4764_v30 = vpop.f32.mrf.mxu0 }
 0x17e   : > { %v4766_v48 = vpop.f32.mrf.mxu1 }
 0x17f   : > { %v4768_v11 = vpop.f32.mrf.mxu0 }
 0x180   : > { %v4770_v40 = vpop.f32.mrf.mxu1 }
 0x181   : > { %v4772_v51 = vpop.f32.mrf.mxu0 }
 0x182   : > { %v4774_v57 = vpop.f32.mrf.mxu1 }
 0x183   : > { %v4776_v23 = vpop.f32.mrf.mxu0 }
 0x184   : > { %v4778_v54 = vpop.f32.mrf.mxu1 }
 0x185   : > { %v4780_v55 = vpop.f32.mrf.mxu0 }
 0x186   : > { %v4782_v32 = vpop.f32.mrf.mxu1 }
 0x187   : > { %v4784_v9 = vpop.f32.mrf.mxu0 }
 0x188   : > { %v4786_v20 = vpop.f32.mrf.mxu1 }
 0x189   : > { %v4788_v19 = vpop.f32.mrf.mxu0 }
 0x18a   : > { %v4790_v43 = vpop.f32.mrf.mxu1 }
 0x18b   : > { %v4792_v22 = vpop.f32.mrf.mxu0 }
 0x18c   : > { %v4794_v6 = vpop.f32.mrf.mxu1 }
 0x18d   : > { %v4796_v45 = vpop.f32.mrf.mxu0 }
 0x18e   : > { %v4798_v26 = vpop.f32.mrf.mxu1 }
 0x18f   : > { %v4800_v14 = vpop.f32.mrf.mxu0 }
 0x190   : > { %v4802_v52 = vpop.f32.mrf.mxu1 }
 0x191   : > { %v4804_v53 = vpop.f32.mrf.mxu0 }
 0x192   : > { %v4806_v12 = vpop.f32.mrf.mxu1 }
 0x193   : > { %v4808_v0 = vpop.f32.mrf.mxu0 }
 0x194   : > { %v4810_v29 = vpop.f32.mrf.mxu1 }
 0x195   : > { %v4812_v56 = vpop.f32.mrf.mxu0 }
 0x196   : > { %v4814_v15 = vpop.f32.mrf.mxu1 }
 0x197   : > { %v4816_v33 = vpop.f32.mrf.mxu0 }
 0x198   : > { %v4818_v31 = vpop.f32.mrf.mxu1 }
 0x199   : > { %v4820_v25 = vpop.f32.mrf.mxu0 }
 0x19a   : > { %5344 = vst [vmem:[#allocation16_spill] sm:$0xff] %v4820_v25  ;;  %v4822_v16 = vpop.f32.mrf.mxu1 }
 0x19b   : > { %v4824_v35 = vpop.f32.mrf.mxu0 }
 0x19c   : > { %5345 = vst [vmem:[#allocation17_spill] sm:$0xff] %v4824_v35  ;;  %v4826_v39 = vpop.f32.mrf.mxu1 }
 0x19d   : > { %5346 = vst [vmem:[#allocation18_spill] sm:$0xff] %v4826_v39  ;;  %v4828_v17 = vpop.f32.mrf.mxu0 }
 0x19e   : > { %5347 = vst [vmem:[#allocation19_spill] sm:$0xff] %v4828_v17  ;;  %v4830_v13 = vpop.f32.mrf.mxu1 }
 0x19f   : > { %5348 = vst [vmem:[#allocation20_spill] sm:$0xff] %v4830_v13  ;;  %v4832_v10 = vpop.f32.mrf.mxu0 }
 0x1a0   : > { %5349 = vst [vmem:[#allocation21_spill] sm:$0xff] %v4832_v10  ;;  %v4834_v7 = vpop.f32.mrf.mxu1 }
 0x1a1   : > { %5350 = vst [vmem:[#allocation22_spill] sm:$0xff] %v4834_v7  ;;  %v4836_v18 = vpop.f32.mrf.mxu0 }
 0x1a2   : > { %5351 = vst [vmem:[#allocation23_spill] sm:$0xff] %v4836_v18  ;;  %v4838_v59 = vpop.f32.mrf.mxu1 }
 0x1a3   : > { %v4840_v42 = vpop.f32.mrf.mxu0 }
 0x1a4   : > { %5352 = vst [vmem:[#allocation24_spill] sm:$0xff] %v4840_v42  ;;  %v4842_v25 = vpop.f32.mrf.mxu1 }
 0x1a5   : > { %5353 = vst [vmem:[#allocation25_spill] sm:$0xff] %v4842_v25  ;;  %v4844_v35 = vpop.f32.mrf.mxu0 }
 0x1a6   : > { %5354 = vst [vmem:[#allocation26_spill] sm:$0xff] %v4844_v35  ;;  %v4846_v39 = vpop.f32.mrf.mxu1 }
 0x1a7   : > { %5355 = vst [vmem:[#allocation27_spill] sm:$0xff] %v4846_v39  ;;  %v4848_v17 = vpop.f32.mrf.mxu0 }
 0x1a8   : > { %5356 = vst [vmem:[#allocation28_spill] sm:$0xff] %v4848_v17  ;;  %v4850_v62 = vpop.f32.mrf.mxu1 }
 0x1a9   : > { %5357 = vst [vmem:[#allocation29_spill] sm:$0xff] %v4850_v62  ;;  %v4852_v13 = vpop.f32.mrf.mxu0 }
 0x1aa   : > { %5358 = vst [vmem:[#allocation30_spill] sm:$0xff] %v4852_v13  ;;  %v4854_v10 = vpop.f32.mrf.mxu1  ;;  %v1867_v13 = vadd.f32 %v3747_v5, %v4659_v34 }
 0x1ab   : > { %5359 = vst [vmem:[#allocation31_spill] sm:$0xff] %v4854_v10  ;;  %v4856_v7 = vpop.f32.mrf.mxu0 }
 0x1ac   : > { %5360 = vst [vmem:[#allocation32_spill] sm:$0xff] %v4856_v7  ;;  %v4858_v18 = vpop.f32.mrf.mxu1 }
 0x1ad   : > { %5361 = vst [vmem:[#allocation33_spill] sm:$0xff] %v4858_v18  ;;  %v4861_v42 = vpop.f32.mrf.mxu0 }
 0x1ae   : > { %5362 = vst [vmem:[#allocation34_spill] sm:$0xff] %v4861_v42  ;;  %v4863_v25 = vpop.f32.mrf.mxu1  ;;  %v1865_v42 = vadd.f32 %v4758_v44, %v4662_v58  ;;  %v1869_v44 = vadd.f32 %v4774_v57, %v4674_v61 }
 0x1af   : > { %5363 = vst [vmem:[#allocation35_spill] sm:$0xff] %v4863_v25  ;;  %v4865_v35 = vpop.f32.mrf.mxu0 }
 0x1b0   : > { %5364 = vst [vmem:[#allocation36_spill] sm:$0xff] %v4865_v35  ;;  %v4867_v39 = vpop.f32.mrf.mxu1  ;;  %v2160_v5 = vadd.f32 %v4756_v63, %v1865_v42 }
 0x1b1   : > { %5365 = vst [vmem:[#allocation37_spill] sm:$0xff] %v4867_v39  ;;  %v4869_v17 = vpop.f32.mrf.mxu0  ;;  %v2162_v39 = vadd.f32 %v4752_v36, %v1867_v13  ;;  %v1871_v13 = vadd.f32 %v4770_v40, %v4671_v37  ;;  %v1870_v40 = vadd.f32 %v4782_v32, %v4680_v8 }
 0x1b2   : > { %5366 = vst [vmem:[#allocation38_spill] sm:$0xff] %v4869_v17  ;;  %v4871_v62 = vpop.f32.mrf.mxu1  ;;  %v1868_v17 = vadd.f32 %v4762_v47, %v4665_v4 }
 0x1b3   : > { %5367 = vst [vmem:[#allocation39_spill] sm:$0xff] %v4871_v62  ;;  %v4874_v10 = vpop.f32.mrf.mxu0  ;;  %v2166_v37 = vadd.f32 %v4768_v11, %v1871_v13  ;;  %v1873_v13 = vadd.f32 %v4790_v43, %v4686_v27 }
 0x1b4   : > { %5368 = vst [vmem:[#allocation40_spill] sm:$0xff] %v4874_v10  ;;  %v4876_v7 = vpop.f32.mrf.mxu1  ;;  %v1866_v10 = vadd.f32 %v4766_v48, %v4668_v60  ;;  %v2163_v4 = vadd.f32 %v4760_v21, %v1868_v17 }
 0x1b5   : > { %5369 = vst [vmem:[#allocation41_spill] sm:$0xff] %v4876_v7  ;;  %v4880_v25 = vpop.f32.mrf.mxu0 }
 0x1b6   : > { %v4882_v35 = vpop.f32.mrf.mxu1  ;;  %v2161_v63 = vadd.f32 %v4764_v30, %v1866_v10 }
 0x1b7   : > { %v3849_v62 = vpop.f32.mrf.mxu0 }
 0x1b8   : > { %v3815_v34 = vpop.f32.mrf.mxu1 }
 0x1b9   : > { %v2456_v7 = vadd.f32 %v3815_v34, %v2162_v39  ;;  %v2621_v18 = vpop.f32.mrf.mxu0 }
 0x1ba   : > { %v2327_v58 = vpop.f32.mrf.mxu1 }
 0x1bb   : > { %v4898_v42 = vadd.f32 %v3849_v62, %v2456_v7  ;;  %v2454_v36 = vadd.f32 %v2327_v58, %v2160_v5  ;;  %v3850_v60 = vpop.f32.mrf.mxu0  ;;  %v1872_v62 = vadd.f32 %v4778_v54, %v4677_v1  ;;  %v1875_v5 = vadd.f32 %v4786_v20, %v4683_v49 }
 0x1bc   : > { %v3816_v39 = vpop.f32.mrf.mxu1 }
 0x1bd   : > { %2783 = vst.msk [vmem:[%s4893_s20 + $0x10] sm:$0xff] %vm2780_vm2, %v4898_v42  ;;  %v4906_v47 = vadd.f32 %v2621_v18, %v2454_v36  ;;  %v2457_v17 = vadd.f32 %v3816_v39, %v2163_v4  ;;  %v2624_v21 = vpop.f32.mrf.mxu0  ;;  %v2164_v18 = vadd.f32 %v4772_v51, %v1869_v44  ;;  %v2167_v34 = vadd.f32 %v4776_v23, %v1872_v62 }
 0x1be   : > { %v2330_v48 = vpop.f32.mrf.mxu1  ;;  %v2165_v4 = vadd.f32 %v4780_v55, %v1870_v40  ;;  %v1876_v39 = vadd.f32 %v4794_v6, %v4689_v38  ;;  %v2168_v44 = vadd.f32 %v4788_v19, %v1873_v13  ;;  %v1880_v40 = vadd.f32 %v4810_v29, %v4701_v28 }
 0x1bf   : > { %2781 = vst.msk [vmem:[%s4893_s20] sm:$0xff] %vm2780_vm2, %v4906_v47  ;;  %v4914_v7 = vadd.f32 %v3850_v60, %v2457_v17  ;;  %v2455_v61 = vadd.f32 %v2330_v48, %v2161_v63  ;;  %v3853_v10 = vpop.f32.mrf.mxu0  ;;  %v2170_v60 = vadd.f32 %v4784_v9, %v1875_v5  ;;  %v1874_v17 = vadd.f32 %v4798_v26, %v4692_v50 }
 0x1c0   : > { %v3819_v30 = vpop.f32.mrf.mxu1  ;;  %v2171_v48 = vadd.f32 %v4792_v22, %v1876_v39  ;;  %v2175_v5 = vadd.f32 %v4808_v0, %v1880_v40  ;;  %v5379_v40 = vld [vmem:[#allocation5_spill] sm:$0xff] }
 0x1c1   : > { %2784 = vst.msk [vmem:[%s4893_s20 + $0x18] sm:$0xff] %vm2780_vm2, %v4914_v7  ;;  %v4922_v11 = vadd.f32 %v2624_v21, %v2455_v61  ;;  %v2460_v1 = vadd.f32 %v3819_v30, %v2166_v37  ;;  %v2637_v57 = vpop.f32.mrf.mxu0  ;;  %v1879_v37 = vadd.f32 %v4802_v52, %v4695_v3  ;;  %v2169_v61 = vadd.f32 %v4796_v45, %v1874_v17 }
 0x1c2   : > { %v2343_v54 = vpop.f32.mrf.mxu1 }
 0x1c3   : > { %2782 = vst.msk [vmem:[%s4893_s20 + $0x8] sm:$0xff] %vm2780_vm2, %v4922_v11  ;;  %v4930_v51 = vadd.f32 %v3853_v10, %v2460_v1  ;;  %v2458_v8 = vadd.f32 %v2343_v54, %v2164_v18  ;;  %v3854_v32 = vpop.f32.mrf.mxu0  ;;  %v1877_v10 = vadd.f32 %v4806_v12, %v4698_v41  ;;  %v2174_v18 = vadd.f32 %v4800_v14, %v1879_v37 }
 0x1c4   : > { %v3820_v58 = vpop.f32.mrf.mxu1  ;;  %v1878_v54 = vadd.f32 %v4814_v15, %v4704_v2 }
 0x1c5   : > { %2787 = vst.msk [vmem:[%s4893_s20 + $0x30] sm:$0xff] %vm2780_vm2, %v4930_v51  ;;  %v4938_v23 = vadd.f32 %v2637_v57, %v2458_v8  ;;  %v2461_v49 = vadd.f32 %v3820_v58, %v2167_v34  ;;  %v2640_v20 = vpop.f32.mrf.mxu0  ;;  %v2172_v57 = vadd.f32 %v4804_v53, %v1877_v10  ;;  %v1883_v8 = vadd.f32 %v4818_v31, %v4707_v24 }
 0x1c6   : > { %v2346_v36 = vpop.f32.mrf.mxu1  ;;  %v2173_v58 = vadd.f32 %v4812_v56, %v1878_v54 }
 0x1c7   : > { %2785 = vst.msk [vmem:[%s4893_s20 + $0x20] sm:$0xff] %vm2780_vm2, %v4938_v23  ;;  %v4946_v55 = vadd.f32 %v3854_v32, %v2461_v49  ;;  %v2459_v27 = vadd.f32 %v2346_v36, %v2165_v4  ;;  %v3857_v43 = vpop.f32.mrf.mxu0  ;;  %v1881_v4 = vadd.f32 %v4822_v16, %v4710_v46  ;;  %v2178_v49 = vadd.f32 %v4816_v33, %v1883_v8  ;;  %v5371_v36 = vld [vmem:[#allocation18_spill] sm:$0xff] }
 0x1c8   : > { %v3823_v63 = vpop.f32.mrf.mxu1 }
 0x1c9   : > { %2788 = vst.msk [vmem:[%s4893_s20 + $0x38] sm:$0xff] %vm2780_vm2, %v4946_v55  ;;  %v4954_v9 = vadd.f32 %v2640_v20, %v2459_v27  ;;  %v2464_v38 = vadd.f32 %v3823_v63, %v2170_v60  ;;  %v2653_v6 = vpop.f32.mrf.mxu0  ;;  %v5370_v20 = vld [vmem:[#allocation2_spill] sm:$0xff]  ;;  %v5372_v27 = vld [vmem:[#allocation16_spill] sm:$0xff]  ;;  %v5373_v63 = vld [vmem:[#allocation3_spill] sm:$0xff] }
 0x1ca   : > { %v2359_v21 = vpop.f32.mrf.mxu1  ;;  %v1884_v60 = vadd.f32 %v5371_v36, %v5370_v20 }
 0x1cb   : > { %2786 = vst.msk [vmem:[%s4893_s20 + $0x28] sm:$0xff] %vm2780_vm2, %v4954_v9  ;;  %v4962_v19 = vadd.f32 %v3857_v43, %v2464_v38  ;;  %v2462_v50 = vadd.f32 %v2359_v21, %v2168_v44  ;;  %v3858_v26 = vpop.f32.mrf.mxu0  ;;  %v2176_v43 = vadd.f32 %v5372_v27, %v1881_v4  ;;  %v5374_v44 = vld [vmem:[#allocation20_spill] sm:$0xff]  ;;  %v5388_v27 = vld [vmem:[#allocation29_spill] sm:$0xff] }
 0x1cc   : > { %v3824_v62 = vpop.f32.mrf.mxu1  ;;  %v1882_v17 = vadd.f32 %v5374_v44, %v5373_v63 }
 0x1cd   : > { %2791 = vst.msk [vmem:[%s4893_s20 + $0x50] sm:$0xff] %vm2780_vm2, %v4962_v19  ;;  %v4970_v22 = vadd.f32 %v2653_v6, %v2462_v50  ;;  %v2465_v3 = vadd.f32 %v3824_v62, %v2171_v48  ;;  %v2656_v52 = vpop.f32.mrf.mxu0  ;;  %v5375_v48 = vld [vmem:[#allocation17_spill] sm:$0xff]  ;;  %v5376_v50 = vld [vmem:[#allocation4_spill] sm:$0xff] }
 0x1ce   : > { %v2362_v30 = vpop.f32.mrf.mxu1  ;;  %v2179_v37 = vadd.f32 %v5375_v48, %v1884_v60  ;;  %v5390_v48 = vld [vmem:[#allocation9_spill] sm:$0xff] }
 0x1cf   : > { %2789 = vst.msk [vmem:[%s4893_s20 + $0x40] sm:$0xff] %vm2780_vm2, %v4970_v22  ;;  %v4978_v45 = vadd.f32 %v3858_v26, %v2465_v3  ;;  %v2463_v41 = vadd.f32 %v2362_v30, %v2169_v61  ;;  %v3861_v12 = vpop.f32.mrf.mxu0  ;;  %v5377_v26 = vld [vmem:[#allocation22_spill] sm:$0xff]  ;;  %v5378_v30 = vld [vmem:[#allocation19_spill] sm:$0xff] }
 0x1d0   : > { %v3827_v1 = vpop.f32.mrf.mxu1  ;;  %v1887_v62 = vadd.f32 %v5377_v26, %v5376_v50 }
 0x1d1   : > { %2792 = vst.msk [vmem:[%s4893_s20 + $0x58] sm:$0xff] %vm2780_vm2, %v4978_v45  ;;  %v4986_v14 = vadd.f32 %v2656_v52, %v2463_v41  ;;  %v2468_v28 = vadd.f32 %v3827_v1, %v2174_v18  ;;  %v2669_v29 = vpop.f32.mrf.mxu0  ;;  %v2177_v18 = vadd.f32 %v5378_v30, %v1882_v17  ;;  %v1885_v41 = vadd.f32 %v4838_v59, %v5379_v40  ;;  %v5394_v40 = vld [vmem:[#allocation33_spill] sm:$0xff] }
 0x1d2   : > { %v2375_v34 = vpop.f32.mrf.mxu1 }
 0x1d3   : > { %2790 = vst.msk [vmem:[%s4893_s20 + $0x48] sm:$0xff] %vm2780_vm2, %v4986_v14  ;;  %v4994_v53 = vadd.f32 %v3861_v12, %v2468_v28  ;;  %v2466_v2 = vadd.f32 %v2375_v34, %v2172_v57  ;;  %v3862_v15 = vpop.f32.mrf.mxu0  ;;  %v5380_v28 = vld [vmem:[#allocation21_spill] sm:$0xff]  ;;  %v5381_v34 = vld [vmem:[#allocation6_spill] sm:$0xff] }
 0x1d4   : > { %v3828_v32 = vpop.f32.mrf.mxu1 }
 0x1d5   : > { %2795 = vst.msk [vmem:[%s4893_s20 + $0x70] sm:$0xff] %vm2780_vm2, %v4994_v53  ;;  %v5002_v0 = vadd.f32 %v2669_v29, %v2466_v2  ;;  %v2469_v24 = vadd.f32 %v3828_v32, %v2175_v5  ;;  %v2672_v31 = vpop.f32.mrf.mxu0  ;;  %v2182_v29 = vadd.f32 %v5380_v28, %v1887_v62  ;;  %v5382_v5 = vld [vmem:[#allocation25_spill] sm:$0xff] }
 0x1d6   : > { %v2378_v13 = vpop.f32.mrf.mxu1  ;;  %v1888_v8 = vadd.f32 %v5382_v5, %v5381_v34  ;;  %v5396_v5 = vld [vmem:[#allocation11_spill] sm:$0xff] }
 0x1d7   : > { %2793 = vst.msk [vmem:[%s4893_s20 + $0x60] sm:$0xff] %vm2780_vm2, %v5002_v0  ;;  %v5010_v56 = vadd.f32 %v3862_v15, %v2469_v24  ;;  %v2467_v46 = vadd.f32 %v2378_v13, %v2173_v58  ;;  %v3865_v16 = vpop.f32.mrf.mxu0  ;;  %v5383_v58 = vld [vmem:[#allocation23_spill] sm:$0xff] }
 0x1d8   : > { %v3831_v39 = vpop.f32.mrf.mxu1  ;;  %v2180_v4 = vadd.f32 %v5383_v58, %v1885_v41  ;;  %v5384_v24 = vld [vmem:[#allocation7_spill] sm:$0xff] }
 0x1d9   : > { %2796 = vst.msk [vmem:[%s4893_s20 + $0x78] sm:$0xff] %vm2780_vm2, %v5010_v56  ;;  %v5018_v33 = vadd.f32 %v2672_v31, %v2467_v46  ;;  %v2472_v38 = vadd.f32 %v3831_v39, %v2178_v49  ;;  %v2685_v6 = vpop.f32.mrf.mxu0  ;;  %v5385_v31 = vld [vmem:[#allocation27_spill] sm:$0xff]  ;;  %v5386_v46 = vld [vmem:[#allocation24_spill] sm:$0xff] }
 0x1da   : > { %v2391_v21 = vpop.f32.mrf.mxu1  ;;  %v1886_v13 = vadd.f32 %v5385_v31, %v5384_v24  ;;  %v5387_v39 = vld [vmem:[#allocation8_spill] sm:$0xff] }
 0x1db   : > { %2794 = vst.msk [vmem:[%s4893_s20 + $0x68] sm:$0xff] %vm2780_vm2, %v5018_v33  ;;  %v5026_v61 = vadd.f32 %v3865_v16, %v2472_v38  ;;  %v2470_v10 = vadd.f32 %v2391_v21, %v2176_v43  ;;  %v3866_v3 = vpop.f32.mrf.mxu0  ;;  %v2183_v16 = vadd.f32 %v5386_v46, %v1888_v8  ;;  %v1891_v43 = vadd.f32 %v5388_v27, %v5387_v39  ;;  %v5397_v8 = vld [vmem:[#allocation35_spill] sm:$0xff]  ;;  %v5398_v24 = vld [vmem:[#allocation32_spill] sm:$0xff]  ;;  %v5401_v27 = vld [vmem:[#allocation34_spill] sm:$0xff] }
 0x1dc   : > { %v3832_v52 = vpop.f32.mrf.mxu1 }
 0x1dd   : > { %2799 = vst.msk [vmem:[%s4893_s20 + $0x90] sm:$0xff] %vm2780_vm2, %v5026_v61  ;;  %v5034_v12 = vadd.f32 %v2685_v6, %v2470_v10  ;;  %v2473_v1 = vadd.f32 %v3832_v52, %v2179_v37  ;;  %v2688_v57 = vpop.f32.mrf.mxu0  ;;  %v5389_v6 = vld [vmem:[#allocation26_spill] sm:$0xff]  ;;  %v5391_v37 = vld [vmem:[#allocation31_spill] sm:$0xff]  ;;  %v5392_v52 = vld [vmem:[#allocation28_spill] sm:$0xff] }
 0x1de   : > { %v2394_v54 = vpop.f32.mrf.mxu1  ;;  %v2181_v21 = vadd.f32 %v5389_v6, %v1886_v13  ;;  %v1889_v50 = vadd.f32 %v5391_v37, %v5390_v48  ;;  %v2186_v30 = vadd.f32 %v5392_v52, %v1891_v43  ;;  %v5399_v13 = vld [vmem:[#allocation12_spill] sm:$0xff] }
 0x1df   : > { %2797 = vst.msk [vmem:[%s4893_s20 + $0x80] sm:$0xff] %vm2780_vm2, %v5034_v12  ;;  %v5042_v2 = vadd.f32 %v3866_v3, %v2473_v1  ;;  %v2471_v59 = vadd.f32 %v2394_v54, %v2177_v18  ;;  %v3869_v15 = vpop.f32.mrf.mxu0  ;;  %v5393_v18 = vld [vmem:[#allocation10_spill] sm:$0xff] }
 0x1e0   : > { %v3835_v32 = vpop.f32.mrf.mxu1  ;;  %v1892_v41 = vadd.f32 %v5394_v40, %v5393_v18 }
 0x1e1   : > { %2800 = vst.msk [vmem:[%s4893_s20 + $0x98] sm:$0xff] %vm2780_vm2, %v5042_v2  ;;  %v5050_v49 = vadd.f32 %v2688_v57, %v2471_v59  ;;  %v2476_v20 = vadd.f32 %v3835_v32, %v2182_v29  ;;  %v2701_v36 = vpop.f32.mrf.mxu0  ;;  %v5395_v29 = vld [vmem:[#allocation30_spill] sm:$0xff]  ;;  %v1890_v59 = vadd.f32 %v5397_v8, %v5396_v5 }
 0x1e2   : > { %v2407_v60 = vpop.f32.mrf.mxu1  ;;  %v2184_v34 = vadd.f32 %v5395_v29, %v1889_v50  ;;  %v2187_v31 = vadd.f32 %v5398_v24, %v1892_v41  ;;  %v5404_v50 = vld [vmem:[#allocation36_spill] sm:$0xff] }
 0x1e3   : > { %2798 = vst.msk [vmem:[%s4893_s20 + $0x88] sm:$0xff] %vm2780_vm2, %v5050_v49  ;;  %v5058_v63 = vadd.f32 %v3869_v15, %v2476_v20  ;;  %v2474_v44 = vadd.f32 %v2407_v60, %v2180_v4  ;;  %v3870_v17 = vpop.f32.mrf.mxu0  ;;  %v5400_v20 = vld [vmem:[#allocation37_spill] sm:$0xff]  ;;  %v2185_v43 = vadd.f32 %v5401_v27, %v1890_v59 }
 0x1e4   : > { %v3836_v38 = vpop.f32.mrf.mxu1 }
 0x1e5   : > { %2803 = vst.msk [vmem:[%s4893_s20 + $0xb0] sm:$0xff] %vm2780_vm2, %v5058_v63  ;;  %v5066_v26 = vadd.f32 %v2701_v36, %v2474_v44  ;;  %v2477_v62 = vadd.f32 %v3836_v38, %v2183_v16  ;;  %v2704_v10 = vpop.f32.mrf.mxu0  ;;  %v1895_v36 = vadd.f32 %v5400_v20, %v5399_v13  ;;  %v5402_v44 = vld [vmem:[#allocation13_spill] sm:$0xff] }
 0x1e6   : > { %v2410_v3 = vpop.f32.mrf.mxu1 }
 0x1e7   : > { %2801 = vst.msk [vmem:[%s4893_s20 + $0xa0] sm:$0xff] %vm2780_vm2, %v5066_v26  ;;  %v5074_v1 = vadd.f32 %v3870_v17, %v2477_v62  ;;  %v2475_v57 = vadd.f32 %v2410_v3, %v2181_v21  ;;  %v3873_v54 = vpop.f32.mrf.mxu0  ;;  %v5403_v17 = vld [vmem:[#allocation39_spill] sm:$0xff]  ;;  %v2190_v62 = vadd.f32 %v5404_v50, %v1895_v36  ;;  %v5406_v3 = vld [vmem:[#allocation41_spill] sm:$0xff] }
 0x1e8   : > { %v3839_v28 = vpop.f32.mrf.mxu1  ;;  %v1893_v38 = vadd.f32 %v5403_v17, %v5402_v44 }
 0x1e9   : > { %2804 = vst.msk [vmem:[%s4893_s20 + $0xb8] sm:$0xff] %vm2780_vm2, %v5074_v1  ;;  %v5082_v15 = vadd.f32 %v2704_v10, %v2475_v57  ;;  %v2480_v32 = vadd.f32 %v3839_v28, %v2186_v30  ;;  %v2717_v58 = vpop.f32.mrf.mxu0  ;;  %v5405_v10 = vld [vmem:[#allocation14_spill] sm:$0xff]  ;;  %v5408_v28 = vld [vmem:[#allocation15_spill] sm:$0xff] }
 0x1ea   : > { %v2423_v4 = vpop.f32.mrf.mxu1  ;;  %v1896_v52 = vadd.f32 %v5406_v3, %v5405_v10  ;;  %v5407_v57 = vld [vmem:[#allocation38_spill] sm:$0xff]  ;;  %v1894_v29 = vadd.f32 %v4882_v35, %v5408_v28 }
 0x1eb   : > { %2802 = vst.msk [vmem:[%s4893_s20 + $0xa8] sm:$0xff] %vm2780_vm2, %v5082_v15  ;;  %v5090_v60 = vadd.f32 %v3873_v54, %v2480_v32  ;;  %v2478_v46 = vadd.f32 %v2423_v4, %v2184_v34  ;;  %v3874_v16 = vpop.f32.mrf.mxu0  ;;  %v2188_v54 = vadd.f32 %v5407_v57, %v1893_v38  ;;  %v5409_v32 = vld [vmem:[#allocation40_spill] sm:$0xff] }
 0x1ec   : > { %v3840_v39 = vpop.f32.mrf.mxu1  ;;  %v2189_v13 = vadd.f32 %v4880_v25, %v1894_v29 }
 0x1ed   : > { %2807 = vst.msk [vmem:[%s4893_s20 + $0xd0] sm:$0xff] %vm2780_vm2, %v5090_v60  ;;  %v5098_v6 = vadd.f32 %v2717_v58, %v2478_v46  ;;  %v2481_v21 = vadd.f32 %v3840_v39, %v2187_v31  ;;  %v2720_v48 = vpop.f32.mrf.mxu0  ;;  %v2191_v58 = vadd.f32 %v5409_v32, %v1896_v52 }
 0x1ee   : > { %v2426_v37 = vpop.f32.mrf.mxu1 }
 0x1ef   : > { %2805 = vst.msk [vmem:[%s4893_s20 + $0xc0] sm:$0xff] %vm2780_vm2, %v5098_v6  ;;  %v5106_v30 = vadd.f32 %v3874_v16, %v2481_v21  ;;  %v2479_v18 = vadd.f32 %v2426_v37, %v2185_v43  ;;  %v3877_v40 = vpop.f32.mrf.mxu0 }
 0x1f0   : > { %v3843_v41 = vpop.f32.mrf.mxu1 }
 0x1f1   : > { %2808 = vst.msk [vmem:[%s4893_s20 + $0xd8] sm:$0xff] %vm2780_vm2, %v5106_v30  ;;  %v5114_v34 = vadd.f32 %v2720_v48, %v2479_v18  ;;  %v2484_v5 = vadd.f32 %v3843_v41, %v2190_v62  ;;  %v2733_v8 = vpop.f32.mrf.mxu0 }
 0x1f2   : > { %v2439_v59 = vpop.f32.mrf.mxu1 }
 0x1f3   : > { %2806 = vst.msk [vmem:[%s4893_s20 + $0xc8] sm:$0xff] %vm2780_vm2, %v5114_v34  ;;  %v5120_v4 = vadd.f32 %v3877_v40, %v2484_v5  ;;  %v2482_v24 = vadd.f32 %v2439_v59, %v2188_v54  ;;  %v3878_v31 = vpop.f32.mrf.mxu0 }
 0x1f4   : > { %v3844_v35 = vpop.f32.mrf.mxu1 }
 0x1f5   : > { %2811 = vst.msk [vmem:[%s4893_s20 + $0xf0] sm:$0xff] %vm2780_vm2, %v5120_v4  ;;  %v5126_v20 = vadd.f32 %v2733_v8, %v2482_v24  ;;  %v2485_v36 = vadd.f32 %v3844_v35, %v2191_v58  ;;  %v2736_v27 = vpop.f32.mrf.mxu0 }
 0x1f6   : > { %v2442_v46 = vpop.f32.mrf.mxu1 }
 0x1f7   : > { %2809 = vst.msk [vmem:[%s4893_s20 + $0xe0] sm:$0xff] %vm2780_vm2, %v5126_v20  ;;  %v5131_v16 = vadd.f32 %v3878_v31, %v2485_v36  ;;  %v2483_v39 = vadd.f32 %v2442_v46, %v2189_v13  ;;  %2816 = sbr.rel (%p3417_p5) target bundleno = 510 (0x1fe), region = 32 }
 0x1f9   : > { %2812 = vst.msk [vmem:[%s4893_s20 + $0xf8] sm:$0xff] %vm2780_vm2, %v5131_v16  ;;  %v5136_v43 = vadd.f32 %v2736_v27, %v2483_v39 }
 0x1fb   : > { %2810 = vst.msk [vmem:[%s4893_s20 + $0xe8] sm:$0xff] %vm2780_vm2, %v5136_v43 }
 0x1fc   : > { %vm2817_vm3 = vcmask 57344   ;;  %v3909_v25 = vmov 0.0  }
 0x1fd   : > { %2818 = vst.msk [vmem:[%s5328_s3] sm:$0x1] %vm2817_vm3, %v3909_v25  ;;  %2819 = vst.msk [vmem:[%s5329_s4] sm:$0x1] %vm2817_vm3, %v3909_v25 }
 0x1fe PF: > { %v2821_v44 = vsel %vm2780_vm2, %v4906_v47, 0.0  ;;  %v2822_v17 = vsel %vm2780_vm2, %v4922_v11, 0.0  ;;  %v2824_v38 = vsel %vm2780_vm2, %v4898_v42, 0.0  ;;  %v2826_v48 = vsel %vm2780_vm2, %v4914_v7, 0.0 }
 0x1ff   : > { %v2823_v21 = vadd.f32 %v2822_v17, %v2821_v44  ;;  %v2828_v50 = vsel %vm2780_vm2, %v4938_v23, 0.0  ;;  %v2830_v10 = vsel %vm2780_vm2, %v4954_v9, 0.0  ;;  %v2832_v52 = vsel %vm2780_vm2, %v4930_v51, 0.0 }
 0x200   : > { %v2834_v40 = vsel %vm2780_vm2, %v4946_v55, 0.0  ;;  %v2836_v57 = vsel %vm2780_vm2, %v4970_v22, 0.0  ;;  %v2838_v28 = vsel %vm2780_vm2, %v4986_v14, 0.0  ;;  %v2894_v29 = vmul.f32 %v4906_v47, %v4906_v47 }
 0x201   : > { %v2825_v37 = vadd.f32 %v2824_v38, %v2823_v21  ;;  %v2895_v5 = vmul.f32 %v4922_v11, %v4922_v11  ;;  %v2896_v59 = vmul.f32 %v4898_v42, %v4898_v42  ;;  %v2840_v32 = vsel %vm2780_vm2, %v4962_v19, 0.0 }
 0x202   : > { %v2897_v58 = vmul.f32 %v4914_v7, %v4914_v7  ;;  %v2842_v35 = vsel %vm2780_vm2, %v4978_v45, 0.0  ;;  %v2898_v47 = vmul.f32 %v4938_v23, %v4938_v23  ;;  %v2926_v31 = vsel %vm2780_vm2, %v2894_v29, 0.0 }
 0x203   : > { %v2827_v62 = vadd.f32 %v2826_v48, %v2825_v37  ;;  %v2927_v11 = vsel %vm2780_vm2, %v2895_v5, 0.0  ;;  %v2929_v42 = vsel %vm2780_vm2, %v2896_v59, 0.0  ;;  %v2844_v46 = vsel %vm2780_vm2, %v5002_v0, 0.0 }
 0x204   : > { %v2928_v36 = vadd.f32 %v2927_v11, %v2926_v31  ;;  %v2899_v7 = vmul.f32 %v4954_v9, %v4954_v9  ;;  %v2931_v39 = vsel %vm2780_vm2, %v2897_v58, 0.0  ;;  %v2846_v23 = vsel %vm2780_vm2, %v5018_v33, 0.0 }
 0x205   : > { %v2829_v3 = vadd.f32 %v2828_v50, %v2827_v62  ;;  %v2900_v44 = vmul.f32 %v4930_v51, %v4930_v51  ;;  %v2933_v17 = vsel %vm2780_vm2, %v2898_v47, 0.0  ;;  %v2848_v48 = vsel %vm2780_vm2, %v4994_v53, 0.0 }
 0x206   : > { %v2930_v25 = vadd.f32 %v2929_v42, %v2928_v36  ;;  %v2901_v9 = vmul.f32 %v4946_v55, %v4946_v55  ;;  %v2935_v37 = vsel %vm2780_vm2, %v2899_v7, 0.0  ;;  %v2902_v51 = vmul.f32 %v4970_v22, %v4970_v22 }
 0x207   : > { %v2831_v18 = vadd.f32 %v2830_v10, %v2829_v3  ;;  %v2850_v10 = vsel %vm2780_vm2, %v5010_v56, 0.0  ;;  %v2937_v3 = vsel %vm2780_vm2, %v2900_v44, 0.0  ;;  %v2903_v55 = vmul.f32 %v4986_v14, %v4986_v14 }
 0x208   : > { %v2932_v21 = vadd.f32 %v2931_v39, %v2930_v25  ;;  %v2904_v22 = vmul.f32 %v4962_v19, %v4962_v19  ;;  %v2941_v29 = vsel %vm2780_vm2, %v2902_v51, 0.0  ;;  %v2856_v59 = vsel %vm2780_vm2, %v5026_v61, 0.0 }
 0x209   : > { %v2833_v41 = vadd.f32 %v2832_v52, %v2831_v18  ;;  %v2905_v14 = vmul.f32 %v4978_v45, %v4978_v45  ;;  %v2906_v19 = vmul.f32 %v5002_v0, %v5002_v0  ;;  %v2907_v45 = vmul.f32 %v5018_v33, %v5018_v33 }
 0x20a   : > { %v2934_v62 = vadd.f32 %v2933_v17, %v2932_v21  ;;  %v2945_v47 = vsel %vm2780_vm2, %v2904_v22, 0.0  ;;  %v2862_v7 = vsel %vm2780_vm2, %v5082_v15, 0.0  ;;  %v2908_v0 = vmul.f32 %v4994_v53, %v4994_v53 }
 0x20b   : > { %v2835_v54 = vadd.f32 %v2834_v40, %v2833_v41  ;;  %v2852_v40 = vsel %vm2780_vm2, %v5034_v12, 0.0  ;;  %v2939_v41 = vsel %vm2780_vm2, %v2901_v9, 0.0  ;;  %v2947_v36 = vsel %vm2780_vm2, %v2905_v14, 0.0 }
 0x20c   : > { %v2936_v18 = vadd.f32 %v2935_v37, %v2934_v62  ;;  %v2949_v39 = vsel %vm2780_vm2, %v2906_v19, 0.0  ;;  %v2909_v33 = vmul.f32 %v5010_v56, %v5010_v56  ;;  %v2951_v44 = vsel %vm2780_vm2, %v2907_v45, 0.0 }
 0x20d   : > { %v2837_v8 = vadd.f32 %v2836_v57, %v2835_v54  ;;  %v2866_v21 = vsel %vm2780_vm2, %v5074_v1, 0.0  ;;  %v2910_v53 = vmul.f32 %v5034_v12, %v5034_v12  ;;  %v2911_v56 = vmul.f32 %v5050_v49, %v5050_v49 }
 0x20e   : > { %v2938_v54 = vadd.f32 %v2937_v3, %v2936_v18  ;;  %v2955_v62 = vsel %vm2780_vm2, %v2909_v33, 0.0  ;;  %v2870_v3 = vsel %vm2780_vm2, %v5114_v34, 0.0  ;;  %v2912_v12 = vmul.f32 %v5026_v61, %v5026_v61 }
 0x20f   : > { %v2839_v24 = vadd.f32 %v2838_v28, %v2837_v8  ;;  %v2854_v28 = vsel %vm2780_vm2, %v5050_v49, 0.0  ;;  %v2913_v49 = vmul.f32 %v5042_v2, %v5042_v2  ;;  %v2914_v61 = vmul.f32 %v5066_v26, %v5066_v26 }
 0x210   : > { %v2940_v8 = vadd.f32 %v2939_v41, %v2938_v54  ;;  %v2959_v41 = vsel %vm2780_vm2, %v2911_v56, 0.0  ;;  %v2961_v22 = vsel %vm2780_vm2, %v2912_v12, 0.0  ;;  %v2882_v45 = vsel %vm2780_vm2, %v5131_v16, 0.0 }
 0x211   : > { %v2841_v13 = vadd.f32 %v2840_v32, %v2839_v24  ;;  %v2943_v32 = vsel %vm2780_vm2, %v2903_v55, 0.0  ;;  %v2872_v55 = vsel %vm2780_vm2, %v5090_v60, 0.0  ;;  %vm2891_vm4 = vcmask 57344  }
 0x212   : > { %v2942_v24 = vadd.f32 %v2941_v29, %v2940_v8  ;;  %v2876_v8 = vsel %vm2780_vm2, %v5126_v20, 0.0 }
 0x213   : > { %v2843_v27 = vadd.f32 %v2842_v35, %v2841_v13  ;;  %v2858_v35 = vsel %vm2780_vm2, %v5042_v2, 0.0  ;;  %v2860_v13 = vsel %vm2780_vm2, %v5066_v26, 0.0  ;;  %v2915_v2 = vmul.f32 %v5082_v15, %v5082_v15 }
 0x214   : > { %v2944_v11 = vadd.f32 %v2943_v32, %v2942_v24  ;;  %v2916_v26 = vmul.f32 %v5058_v63, %v5058_v63  ;;  %v2965_v24 = vsel %vm2780_vm2, %v2914_v61, 0.0  ;;  %v2917_v15 = vmul.f32 %v5074_v1, %v5074_v1  ;;  %v2893_v61 = vld [vmem:[%s5329_s4] sm:$0x1] }
 0x215   : > { %v2845_v38 = vadd.f32 %v2844_v46, %v2843_v27 }
 0x216   : > { %v2946_v46 = vadd.f32 %v2945_v47, %v2944_v11  ;;  %v2880_v47 = vsel %vm2780_vm2, %v5120_v4, 0.0 }
 0x217   : > { %v2847_v50 = vadd.f32 %v2846_v23, %v2845_v38  ;;  %v2864_v23 = vsel %vm2780_vm2, %v5058_v63, 0.0  ;;  %v2918_v63 = vmul.f32 %v5098_v6, %v5098_v6 }
 0x218   : > { %v2948_v25 = vadd.f32 %v2947_v36, %v2946_v46  ;;  %v2969_v36 = vsel %vm2780_vm2, %v2916_v26, 0.0 }
 0x219   : > { %v2849_v52 = vadd.f32 %v2848_v48, %v2847_v50  ;;  %v2953_v48 = vsel %vm2780_vm2, %v2908_v0, 0.0  ;;  %v2868_v50 = vsel %vm2780_vm2, %v5098_v6, 0.0  ;;  %v2971_v0 = vsel %vm2780_vm2, %v2917_v15, 0.0 }
 0x21a   : > { %v2950_v38 = vadd.f32 %v2949_v39, %v2948_v25  ;;  %v2973_v25 = vsel %vm2780_vm2, %v2918_v63, 0.0  ;;  %v2921_v6 = vmul.f32 %v5106_v30, %v5106_v30 }
 0x21b   : > { %v2851_v57 = vadd.f32 %v2850_v10, %v2849_v52  ;;  %v2957_v52 = vsel %vm2780_vm2, %v2910_v53, 0.0 }
 0x21c   : > { %v2952_v37 = vadd.f32 %v2951_v44, %v2950_v38 }
 0x21d   : > { %v2853_v5 = vadd.f32 %v2852_v40, %v2851_v57 }
 0x21e   : > { %v2954_v51 = vadd.f32 %v2953_v48, %v2952_v37 }
 0x21f   : > { %v2855_v58 = vadd.f32 %v2854_v28, %v2853_v5  ;;  %v2874_v28 = vsel %vm2780_vm2, %v5106_v30, 0.0  ;;  %v2924_v30 = vmul.f32 %v5120_v4, %v5120_v4 }
 0x220   : > { %v2956_v40 = vadd.f32 %v2955_v62, %v2954_v51  ;;  %v2925_v51 = vmul.f32 %v5131_v16, %v5131_v16 }
 0x221   : > { %v2857_v31 = vadd.f32 %v2856_v59, %v2855_v58  ;;  %v2963_v59 = vsel %vm2780_vm2, %v2913_v49, 0.0  ;;  %v2878_v58 = vsel %vm2780_vm2, %v5136_v43, 0.0 }
 0x222   : > { %v2958_v54 = vadd.f32 %v2957_v52, %v2956_v40  ;;  %v2985_v52 = vsel %vm2780_vm2, %v2924_v30, 0.0  ;;  %v2987_v40 = vsel %vm2780_vm2, %v2925_v51, 0.0 }
 0x223   : > { %v2859_v42 = vadd.f32 %v2858_v35, %v2857_v31  ;;  %v2967_v31 = vsel %vm2780_vm2, %v2915_v2, 0.0 }
 0x224   : > { %v2960_v5 = vadd.f32 %v2959_v41, %v2958_v54 }
 0x225   : > { %v2861_v27 = vadd.f32 %v2860_v13, %v2859_v42 }
 0x226   : > { %v2962_v32 = vadd.f32 %v2961_v22, %v2960_v5 }
 0x227   : > { %v2863_v17 = vadd.f32 %v2862_v7, %v2861_v27  ;;  %v2919_v7 = vmul.f32 %v5114_v34, %v5114_v34  ;;  %v2920_v27 = vmul.f32 %v5090_v60, %v5090_v60  ;;  %v2922_v34 = vmul.f32 %v5126_v20, %v5126_v20  ;;  %v2820_v20 = vld [vmem:[%s5328_s3] sm:$0x1] }
 0x228   : > { %v2964_v19 = vadd.f32 %v2963_v59, %v2962_v32  ;;  %v2923_v60 = vmul.f32 %v5136_v43, %v5136_v43 }
 0x229   : > { %v2865_v9 = vadd.f32 %v2864_v23, %v2863_v17  ;;  %v2975_v44 = vsel %vm2780_vm2, %v2919_v7, 0.0  ;;  %v2981_v56 = vsel %vm2780_vm2, %v2922_v34, 0.0 }
 0x22a   : > { %v2966_v13 = vadd.f32 %v2965_v24, %v2964_v19  ;;  %v2983_v43 = vsel %vm2780_vm2, %v2923_v60, 0.0 }
 0x22b   : > { %v2867_v10 = vadd.f32 %v2866_v21, %v2865_v9  ;;  %v2977_v21 = vsel %vm2780_vm2, %v2920_v27, 0.0  ;;  %v2979_v9 = vsel %vm2780_vm2, %v2921_v6, 0.0 }
 0x22c   : > { %v2968_v46 = vadd.f32 %v2967_v31, %v2966_v13 }
 0x22d   : > { %v2869_v18 = vadd.f32 %v2868_v50, %v2867_v10 }
 0x22e   : > { %v2970_v39 = vadd.f32 %v2969_v36, %v2968_v46 }
 0x22f   : > { %v2871_v57 = vadd.f32 %v2870_v3, %v2869_v18 }
 0x230   : > { %v2972_v33 = vadd.f32 %v2971_v0, %v2970_v39 }
 0x231   : > { %v2873_v29 = vadd.f32 %v2872_v55, %v2871_v57 }
 0x232   : > { %v2974_v38 = vadd.f32 %v2973_v25, %v2972_v33 }
 0x233   : > { %v2875_v14 = vadd.f32 %v2874_v28, %v2873_v29 }
 0x234   : > { %v2976_v48 = vadd.f32 %v2975_v44, %v2974_v38 }
 0x235   : > { %v2877_v35 = vadd.f32 %v2876_v8, %v2875_v14 }
 0x236   : > { %v2978_v50 = vadd.f32 %v2977_v21, %v2976_v48 }
 0x237   : > { %v2879_v11 = vadd.f32 %v2878_v58, %v2877_v35 }
 0x238   : > { %v2980_v10 = vadd.f32 %v2979_v9, %v2978_v50 }
 0x239   : > { %v2881_v42 = vadd.f32 %v2880_v47, %v2879_v11 }
 0x23a   : > { %v2982_v12 = vadd.f32 %v2981_v56, %v2980_v10 }
 0x23b   : > { %v2883_v1 = vadd.f32 %v2882_v45, %v2881_v42 }
 0x23c   : > { %v2984_v4 = vadd.f32 %v2983_v43, %v2982_v12 }
 0x23d   : > { %v2884_v23 = vrot.slane %v2883_v1, 4 }
 0x23e   : > { %v2986_v55 = vadd.f32 %v2985_v52, %v2984_v4 }
 0x23f   : > { %v2885_v17 = vadd.f32 %v2884_v23, %v2883_v1 }
 0x240   : > { %v2988_v49 = vadd.f32 %v2987_v40, %v2986_v55 }
 0x241   : > { %v2886_v53 = vrot.slane %v2885_v17, 2 }
 0x242   : > { %v2989_v41 = vrot.slane %v2988_v49, 4 }
 0x243   : > { %v2887_v37 = vadd.f32 %v2886_v53, %v2885_v17 }
 0x244   : > { %v2990_v16 = vadd.f32 %v2989_v41, %v2988_v49 }
 0x245   : > { %v2888_v62 = vrot.slane %v2887_v37, 1 }
 0x246   : > { %v2991_v57 = vrot.slane %v2990_v16, 2 }
 0x247   : > { %v2889_v3 = vadd.f32 %v2888_v62, %v2887_v37 }
 0x248   : > { %v2992_v54 = vadd.f32 %v2991_v57, %v2990_v16 }
 0x249   : > { %v2890_v18 = vadd.f32 %v2889_v3, %v2820_v20 }
 0x24a   : > { %v2993_v28 = vrot.slane %v2992_v54, 1 }
 0x24b   : > { %2892 = vst.msk [vmem:[%s5328_s3] sm:$0x1] %vm2891_vm4, %v2890_v18 }
 0x24c   : > { %v2994_v22 = vadd.f32 %v2993_v28, %v2992_v54 }
 0x24e   : > { %v2995_v29 = vadd.f32 %v2994_v22, %v2893_v61 }
 0x250   : > { %2996 = vst.msk [vmem:[%s5329_s4] sm:$0x1] %vm2891_vm4, %v2995_v29 }
 0x251 PF: > { %s15_s15 = sadd.s32 1, %s3907_s15  }
 0x252   : > { %p12_p6 = scmp.ge.s32.totalorder %s15_s15, 4  }
 0x254   :  { %14 = sbr.rel (!%p12_p6) target bundleno = 1 (0x1), region = 88 }

// kernel: unet_block_forward.6
= control target key start
LH: loop header
LB: loop body
LE: loop exit
PB: predicated region body
PF: predicated region fallthrough
CT: control target
= control target key end

     0   :  { %s3934_s15 = smov 0   ;;  %s5324_s0 = inlined_call_operand.vmem [shape: f32[2,18,18,8], index: 0, kind: input, shape index: {}]   ;;  %s5325_s1 = inlined_call_operand.vmem [shape: bf16[9,8,8], index: 1, kind: input, shape index: {}]   ;;  %s5326_s2 = inlined_call_operand.vmem [shape: f32[512,8], index: 2, kind: output, shape index: {0}]   ;;  %s5327_s3 = inlined_call_operand.vmem [shape: f32[1,8], index: 3, kind: output, shape index: {1}]   ;;  %s5328_s4 = inlined_call_operand.vmem [shape: f32[1,8], index: 4, kind: output, shape index: {2}]  }
   0x1 LB: > { %s3940_s16 = sadd.s32 4294967295, %s3906_s15   ;;  %p3068_p0 = scmp.ge.s32.totalorder %s3906_s15, 1  ;;  %s3906_s15 = sphi %s3934_s15, %s15_s15  }
   0x2   : > { %p157_p1 = scmp.lt.s32.totalorder %s3906_s15, 3 }
   0x4   : > { %p158_p2 = pnand %p3068_p0, %p157_p1 }
   0x6   : > { %161 = sbr.rel (%p158_p2) target bundleno = 593 (0x251), region = 28 }
   0xb   : > { %v3072_v0 = vld [vmem:[%s5325_s1 + $0x4] sm:$0xf]  ;;  %vm343_vm0 = vcmask 1043456   ;;  %p183_p3 = scmp.lt.s32.totalorder %s3940_s16, 1  ;;  %v243_v2 = vld [vmem:[%s5325_s1] sm:$0xf] }
   0xc   : > { %3881 = vmatprep.subr.msk.bf16.mxu1 %vm343_vm0, %v3072_v0  ;;  %3880 = vmatprep.subr.msk.bf16.mxu0 %vm343_vm0, %v3072_v0  ;;  %v345_v1 = vsel %vm343_vm0, %v3072_v0, 0  ;;  %v3105_v3 = vld [vmem:[%s5325_s1 + $0x8] sm:$0xf]  ;;  %vm294_vm1 = vcmask 64512   ;;  %v557_v18 = vsel %vm343_vm0, %v243_v2, 0  ;;  %s3070_s14 = sshll.u32 %s3940_s16, 5 }
   0xd   : > { %3879 = vmatpush3.bf16.msra.mxu1 %v345_v1  ;;  %3573 = vmatpush3.bf16.msra.mxu0 %v345_v1  ;;  %s184_s23 = scalar_select %p183_p3, %s3940_s16, 1  ;;  %v819_v15 = vsel %vm343_vm0, %v3105_v3, 0  ;;  %v3997_v24 = vld [vmem:[%s5325_s1 + $0xc] sm:$0xf]  ;;  %v4002_v25 = vld [vmem:[%s5325_s1 + $0x10] sm:$0xf] }
   0xe   : > { %3882 = vmatprep.subr.msk.bf16.mxu1 %vm343_vm0, %v243_v2  ;;  %3883 = vmatprep.subr.msk.bf16.mxu0 %vm343_vm0, %v3105_v3  ;;  %p189_p4 = scmp.lt.s32.totalorder %s3070_s14, 63  ;;  %p3416_p5 = scmp.ne.s32.totalorder %s3940_s16, 0 }
   0xf   : > { %s3890_s24 = smul.u32 432, %s184_s23 }
  0x10   : > { %s5410_s14 = smov (!%p189_p4, %s3070_s14), 63 }
  0x11   : > { %s3963_s27 = scalar_lea.vmem %s5324_s0, %s3890_s24  ;;  %s3071_s17 = sshll.u32 %s5410_s14, 3 }
  0x12   : > { %v244_v4 = vld [vmem:[%s3963_s27 + $0x1] sm:$0xff]  ;;  %v245_v5 = vld [vmem:[%s3963_s27 + $0x9] sm:$0xff]  ;;  %v246_v9 = vld [vmem:[%s3963_s27 + $0x19] sm:$0xff]  ;;  %s4892_s20 = scalar_lea.vmem %s5326_s2, %s3071_s17 }
  0x13   : > { %v260_v6 = vld [vmem:[%s3963_s27 + $0xc1] sm:$0xff]  ;;  %v276_v7 = vpack.c.bf16 %v245_v5, %v244_v4  ;;  %v261_v8 = vld [vmem:[%s3963_s27 + $0xc9] sm:$0xff]  ;;  %v262_v13 = vld [vmem:[%s3963_s27 + $0xd9] sm:$0xff] }
  0x14   : > { %v247_v10 = vld [vmem:[%s3963_s27 + $0x21] sm:$0xff]  ;;  %v3971_v11 = vpack.c.bf16 %v261_v8, %v260_v6  ;;  %v248_v16 = vld [vmem:[%s3963_s27 + $0x31] sm:$0xff]  ;;  %v249_v19 = vld [vmem:[%s3963_s27 + $0x39] sm:$0xff]  ;;  %v1408_v8 = vsel %vm343_vm0, %v4002_v25, 0 }
  0x15   : > { %v3973_v12 = vpack.c.bf16 %v247_v10, %v246_v9  ;;  %v263_v14 = vld [vmem:[%s3963_s27 + $0xe1] sm:$0xff]  ;;  %3574 = vmatprep.mubr.msk.bf16.mxu0 %vm294_vm1, %v276_v7  ;;  %v264_v20 = vld [vmem:[%s3963_s27 + $0xf1] sm:$0xff]  ;;  %v265_v21 = vld [vmem:[%s3963_s27 + $0xf9] sm:$0xff]  ;;  %v3990_v22 = vpack.c.bf16 %v249_v19, %v248_v16  ;;  %v1114_v10 = vsel %vm343_vm0, %v3997_v24, 0 }
  0x16   : > { %v3980_v17 = vpack.c.bf16 %v263_v14, %v262_v13  ;;  %3590 = vmatprep.mubr.msk.bf16.mxu1 %vm294_vm1, %v3971_v11  ;;  %v3992_v23 = vpack.c.bf16 %v265_v21, %v264_v20  ;;  %v250_v26 = vld [vmem:[%s3963_s27 + $0x49] sm:$0xff]  ;;  %v251_v27 = vld [vmem:[%s3963_s27 + $0x51] sm:$0xff]  ;;  %v252_v30 = vld [vmem:[%s3963_s27 + $0x61] sm:$0xff] }
  0x17   : > { %3575 = vmatmul.mubr.msk.bf16.vlgmr.msra.gmra.mxu0 %vm294_vm1, %v3973_v12  ;;  %v266_v28 = vld [vmem:[%s3963_s27 + $0x109] sm:$0xff]  ;;  %v267_v29 = vld [vmem:[%s3963_s27 + $0x111] sm:$0xff]  ;;  %v268_v32 = vld [vmem:[%s3963_s27 + $0x121] sm:$0xff]  ;;  %v4020_v34 = vpack.c.bf16 %v251_v27, %v250_v26 }
  0x18   : > { %3591 = vmatmul.mubr.msk.bf16.vlgmr.msra.gmra.mxu1 %vm294_vm1, %v3980_v17  ;;  %3641 = vmatpush3.bf16.msra.mxu0 %v819_v15  ;;  %v253_v31 = vld [vmem:[%s3963_s27 + $0x69] sm:$0xff]  ;;  %v4024_v35 = vpack.c.bf16 %v267_v29, %v266_v28  ;;  %v254_v38 = vld [vmem:[%s3963_s27 + $0x79] sm:$0xff]  ;;  %v255_v39 = vld [vmem:[%s3963_s27 + $0x81] sm:$0xff] }
  0x19   : > { %3607 = vmatpush3.bf16.msra.mxu1 %v557_v18  ;;  %3578 = vmatprep.mubr.msk.bf16.mxu0 %vm294_vm1, %v3990_v22  ;;  %v269_v33 = vld [vmem:[%s3963_s27 + $0x129] sm:$0xff]  ;;  %v4026_v36 = vpack.c.bf16 %v253_v31, %v252_v30  ;;  %v270_v40 = vld [vmem:[%s3963_s27 + $0x139] sm:$0xff]  ;;  %v271_v41 = vld [vmem:[%s3963_s27 + $0x141] sm:$0xff]  ;;  %v4046_v46 = vpack.c.bf16 %v255_v39, %v254_v38 }
  0x1a   : > { %3594 = vmatprep.mubr.msk.bf16.mxu1 %vm294_vm1, %v3992_v23  ;;  %3884 = vmatprep.subr.msk.bf16.mxu1 %vm343_vm0, %v3997_v24  ;;  %v4028_v37 = vpack.c.bf16 %v269_v33, %v268_v32  ;;  %v256_v42 = vld [vmem:[%s3963_s27 + $0x91] sm:$0xff]  ;;  %v257_v43 = vld [vmem:[%s3963_s27 + $0x99] sm:$0xff]  ;;  %v4048_v47 = vpack.c.bf16 %v271_v41, %v270_v40  ;;  %v258_v50 = vld [vmem:[%s3963_s27 + $0xa9] sm:$0xff] }
  0x1b   : > { %3885 = vmatprep.subr.msk.bf16.mxu0 %vm343_vm0, %v4002_v25  ;;  %v272_v44 = vld [vmem:[%s3963_s27 + $0x151] sm:$0xff]  ;;  %v273_v45 = vld [vmem:[%s3963_s27 + $0x159] sm:$0xff]  ;;  %v4050_v48 = vpack.c.bf16 %v257_v43, %v256_v42  ;;  %v274_v52 = vld [vmem:[%s3963_s27 + $0x169] sm:$0xff] }
  0x1c   : > { %v4052_v49 = vpack.c.bf16 %v273_v45, %v272_v44  ;;  %v259_v51 = vld [vmem:[%s3963_s27 + $0xb1] sm:$0xff]  ;;  %v720_v54 = vld [vmem:[%s3963_s27 + $0x2] sm:$0xff]  ;;  %v722_v62 = vld [vmem:[%s3963_s27 + $0x1a] sm:$0xff] }
  0x1d   : > { %v275_v53 = vld [vmem:[%s3963_s27 + $0x171] sm:$0xff]  ;;  %v195_v56 = vld [vmem:[%s3963_s27] sm:$0xff]  ;;  %v196_v57 = vld [vmem:[%s3963_s27 + $0x8] sm:$0xff]  ;;  %v4070_v58 = vpack.c.bf16 %v259_v51, %v258_v50 }
  0x1e   : > { %v721_v55 = vld [vmem:[%s3963_s27 + $0xa] sm:$0xff]  ;;  %v4072_v59 = vpack.c.bf16 %v275_v53, %v274_v52  ;;  %v227_v61 = vpack.c.bf16 %v196_v57, %v195_v56  ;;  %v723_v63 = vld [vmem:[%s3963_s27 + $0x22] sm:$0xff]  ;;  %v197_v0 = vld [vmem:[%s3963_s27 + $0x18] sm:$0xff] }
  0x1f   : > { %3579 = vmatmul.mubr.msk.bf16.gmra.mxu0 %vm294_vm1, %v4020_v34  ;;  %v752_v60 = vpack.c.bf16 %v721_v55, %v720_v54  ;;  %v198_v1 = vld [vmem:[%s3963_s27 + $0x20] sm:$0xff]  ;;  %v199_v2 = vld [vmem:[%s3963_s27 + $0x30] sm:$0xff]  ;;  %v200_v3 = vld [vmem:[%s3963_s27 + $0x38] sm:$0xff]  ;;  %v4086_v4 = vpack.c.bf16 %v723_v63, %v722_v62 }
  0x20   : > { %3595 = vmatmul.mubr.msk.bf16.gmra.mxu1 %vm294_vm1, %v4024_v35  ;;  %3582 = vmatprep.mubr.msk.bf16.mxu0 %vm294_vm1, %v4026_v36  ;;  %v724_v5 = vld [vmem:[%s3963_s27 + $0x32] sm:$0xff]  ;;  %v725_v6 = vld [vmem:[%s3963_s27 + $0x3a] sm:$0xff]  ;;  %v4090_v7 = vpack.c.bf16 %v198_v1, %v197_v0  ;;  %v4094_v9 = vpack.c.bf16 %v200_v3, %v199_v2  ;;  %v201_v16 = vld [vmem:[%s3963_s27 + $0x48] sm:$0xff] }
  0x21   : > { %3598 = vmatprep.mubr.msk.bf16.mxu1 %vm294_vm1, %v4028_v37  ;;  %v4098_v13 = vpack.c.bf16 %v725_v6, %v724_v5  ;;  %v4105_v14 = vld [vmem:[%s5325_s1 + $0x14] sm:$0xf]  ;;  %v4110_v15 = vld [vmem:[%s5325_s1 + $0x18] sm:$0xf]  ;;  %v726_v18 = vld [vmem:[%s3963_s27 + $0x4a] sm:$0xff] }
  0x22   : > { %v727_v19 = vld [vmem:[%s3963_s27 + $0x52] sm:$0xff]  ;;  %v728_v21 = vld [vmem:[%s3963_s27 + $0x62] sm:$0xff]  ;;  %v729_v24 = vld [vmem:[%s3963_s27 + $0x6a] sm:$0xff] }
  0x23   : > { %v202_v20 = vld [vmem:[%s3963_s27 + $0x50] sm:$0xff]  ;;  %v203_v25 = vld [vmem:[%s3963_s27 + $0x60] sm:$0xff]  ;;  %v204_v26 = vld [vmem:[%s3963_s27 + $0x68] sm:$0xff]  ;;  %v4128_v27 = vpack.c.bf16 %v727_v19, %v726_v18  ;;  %v4134_v29 = vpack.c.bf16 %v729_v24, %v728_v21 }
  0x24   : > { %v4132_v28 = vpack.c.bf16 %v202_v20, %v201_v16  ;;  %v4136_v30 = vpack.c.bf16 %v204_v26, %v203_v25  ;;  %v205_v31 = vld [vmem:[%s3963_s27 + $0x78] sm:$0xff]  ;;  %v731_v33 = vld [vmem:[%s3963_s27 + $0x82] sm:$0xff]  ;;  %v207_v41 = vld [vmem:[%s3963_s27 + $0x90] sm:$0xff] }
  0x25   : > { %v730_v32 = vld [vmem:[%s3963_s27 + $0x7a] sm:$0xff]  ;;  %v732_v39 = vld [vmem:[%s3963_s27 + $0x92] sm:$0xff]  ;;  %v209_v51 = vld [vmem:[%s3963_s27 + $0xa8] sm:$0xff] }
  0x26   : > { %v206_v38 = vld [vmem:[%s3963_s27 + $0x80] sm:$0xff]  ;;  %v208_v42 = vld [vmem:[%s3963_s27 + $0x98] sm:$0xff]  ;;  %v4154_v43 = vpack.c.bf16 %v731_v33, %v730_v32  ;;  %v734_v52 = vld [vmem:[%s3963_s27 + $0xaa] sm:$0xff] }
  0x27   : > { %3583 = vmatmul.mubr.msk.bf16.gmra.mxu0 %vm294_vm1, %v4046_v46  ;;  %v733_v40 = vld [vmem:[%s3963_s27 + $0x9a] sm:$0xff]  ;;  %v4156_v44 = vpack.c.bf16 %v206_v38, %v205_v31  ;;  %v4160_v50 = vpack.c.bf16 %v208_v42, %v207_v41  ;;  %v735_v53 = vld [vmem:[%s3963_s27 + $0xb2] sm:$0xff]  ;;  %v736_v55 = vld [vmem:[%s3963_s27 + $0xc2] sm:$0xff] }
  0x28   : > { %3599 = vmatmul.mubr.msk.bf16.gmra.mxu1 %vm294_vm1, %v4048_v47  ;;  %3586 = vmatprep.mubr.msk.bf16.mxu0 %vm294_vm1, %v4050_v48  ;;  %v4158_v45 = vpack.c.bf16 %v733_v40, %v732_v39  ;;  %v210_v54 = vld [vmem:[%s3963_s27 + $0xb0] sm:$0xff]  ;;  %v211_v57 = vld [vmem:[%s3963_s27 + $0xc0] sm:$0xff]  ;;  %v213_v1 = vld [vmem:[%s3963_s27 + $0xd8] sm:$0xff] }
  0x29   : > { %3602 = vmatprep.mubr.msk.bf16.mxu1 %vm294_vm1, %v4052_v49  ;;  %v737_v56 = vld [vmem:[%s3963_s27 + $0xca] sm:$0xff]  ;;  %v4180_v62 = vpack.c.bf16 %v210_v54, %v209_v51  ;;  %v738_v2 = vld [vmem:[%s3963_s27 + $0xda] sm:$0xff]  ;;  %v739_v3 = vld [vmem:[%s3963_s27 + $0xe2] sm:$0xff] }
  0x2a   : > { %v4182_v63 = vpack.c.bf16 %v737_v56, %v736_v55  ;;  %v214_v5 = vld [vmem:[%s3963_s27 + $0xe0] sm:$0xff]  ;;  %v740_v6 = vld [vmem:[%s3963_s27 + $0xf2] sm:$0xff]  ;;  %v4202_v18 = vpack.c.bf16 %v739_v3, %v738_v2  ;;  %v217_v24 = vld [vmem:[%s3963_s27 + $0x108] sm:$0xff] }
  0x2b   : > { %v216_v16 = vld [vmem:[%s3963_s27 + $0xf8] sm:$0xff]  ;;  %v4204_v19 = vpack.c.bf16 %v214_v5, %v213_v1  ;;  %v742_v25 = vld [vmem:[%s3963_s27 + $0x10a] sm:$0xff]  ;;  %v744_v32 = vld [vmem:[%s3963_s27 + $0x122] sm:$0xff] }
  0x2c   : > { %v743_v26 = vld [vmem:[%s3963_s27 + $0x112] sm:$0xff]  ;;  %v745_v33 = vld [vmem:[%s3963_s27 + $0x12a] sm:$0xff]  ;;  %v219_v38 = vld [vmem:[%s3963_s27 + $0x120] sm:$0xff] }
  0x2d   : > { %v218_v31 = vld [vmem:[%s3963_s27 + $0x110] sm:$0xff]  ;;  %v220_v39 = vld [vmem:[%s3963_s27 + $0x128] sm:$0xff]  ;;  %v4226_v40 = vpack.c.bf16 %v743_v26, %v742_v25  ;;  %v4230_v42 = vpack.c.bf16 %v745_v33, %v744_v32  ;;  %v222_v55 = vld [vmem:[%s3963_s27 + $0x140] sm:$0xff]  ;;  %v1702_v32 = vsel %vm343_vm0, %v4105_v14, 0 }
  0x2e   : > { %v4228_v41 = vpack.c.bf16 %v218_v31, %v217_v24  ;;  %v4232_v51 = vpack.c.bf16 %v220_v39, %v219_v38  ;;  %v747_v54 = vld [vmem:[%s3963_s27 + $0x142] sm:$0xff]  ;;  %v748_v56 = vld [vmem:[%s3963_s27 + $0x152] sm:$0xff]  ;;  %v1997_v31 = vsel %vm343_vm0, %v4110_v15, 0  ;;  %v3350_v33 = vld [vmem:[%s5325_s1 + $0x1c] sm:$0xf] }
  0x2f   : > { %3587 = vmatmul.mubr.msk.bf16.gmra.mxu0 %vm294_vm1, %v4070_v58  ;;  %v224_v1 = vld [vmem:[%s3963_s27 + $0x158] sm:$0xff]  ;;  %v226_v24 = vld [vmem:[%s3963_s27 + $0x170] sm:$0xff] }
  0x30   : > { %3603 = vmatmul.mubr.msk.bf16.gmra.mxu1 %vm294_vm1, %v4072_v59  ;;  %3642 = vmatprep.mubr.msk.bf16.mxu0 %vm294_vm1, %v752_v60  ;;  %v212_v60 = vld [vmem:[%s3963_s27 + $0xc8] sm:$0xff] }
  0x31   : > { %3608 = vmatprep.mubr.msk.bf16.mxu1 %vm294_vm1, %v227_v61  ;;  %v4178_v61 = vpack.c.bf16 %v735_v53, %v734_v52  ;;  %v4184_v0 = vpack.c.bf16 %v212_v60, %v211_v57  ;;  %v221_v52 = vld [vmem:[%s3963_s27 + $0x138] sm:$0xff]  ;;  %v223_v60 = vld [vmem:[%s3963_s27 + $0x150] sm:$0xff] }
  0x32   : > { %v746_v53 = vld [vmem:[%s3963_s27 + $0x13a] sm:$0xff]  ;;  %v4252_v3 = vpack.c.bf16 %v222_v55, %v221_v52  ;;  %v3251_v55 = vld [vmem:[%s3963_s27 + $0x18a] sm:$0xff] }
  0x33   : > { %v749_v57 = vld [vmem:[%s3963_s27 + $0x15a] sm:$0xff]  ;;  %v4250_v2 = vpack.c.bf16 %v747_v54, %v746_v53  ;;  %v3250_v54 = vld [vmem:[%s3963_s27 + $0x182] sm:$0xff] }
  0x34   : > { %v4254_v5 = vpack.c.bf16 %v749_v57, %v748_v56  ;;  %v3300_v52 = vld [vmem:[%s3963_s27 + $0x1a0] sm:$0xff] }
  0x37   : > { %3643 = vmatmul.mubr.msk.bf16.vlgmr.msra.gmra.mxu0 %vm294_vm1, %v4086_v4 }
  0x38   : > { %3609 = vmatmul.mubr.msk.bf16.vlgmr.msra.gmra.mxu1 %vm294_vm1, %v4090_v7  ;;  %3709 = vmatpush3.bf16.msra.mxu0 %v1408_v8  ;;  %v741_v8 = vld [vmem:[%s3963_s27 + $0xfa] sm:$0xff] }
  0x39   : > { %3675 = vmatpush3.bf16.msra.mxu1 %v1114_v10  ;;  %3612 = vmatprep.mubr.msk.bf16.mxu1 %vm294_vm1, %v4094_v9  ;;  %v215_v10 = vld [vmem:[%s3963_s27 + $0xf0] sm:$0xff]  ;;  %v4206_v20 = vpack.c.bf16 %v741_v8, %v740_v6  ;;  %v4256_v6 = vpack.c.bf16 %v224_v1, %v223_v60 }
  0x3a   : > { %3646 = vmatprep.mubr.msk.bf16.mxu0 %vm294_vm1, %v4098_v13  ;;  %3886 = vmatprep.subr.msk.bf16.mxu1 %vm343_vm0, %v4105_v14  ;;  %v4208_v21 = vpack.c.bf16 %v216_v16, %v215_v10  ;;  %v750_v8 = vld [vmem:[%s3963_s27 + $0x16a] sm:$0xff]  ;;  %v751_v10 = vld [vmem:[%s3963_s27 + $0x172] sm:$0xff] }
  0x3b   : > { %3887 = vmatprep.subr.msk.bf16.mxu0 %vm343_vm0, %v4110_v15  ;;  %v225_v16 = vld [vmem:[%s3963_s27 + $0x168] sm:$0xff]  ;;  %v4270_v25 = vpack.c.bf16 %v751_v10, %v750_v8 }
  0x3c   : > { %v4272_v26 = vpack.c.bf16 %v226_v24, %v225_v16 }
  0x3f   : > { %3647 = vmatmul.mubr.msk.bf16.gmra.mxu0 %vm294_vm1, %v4128_v27 }
  0x40   : > { %3613 = vmatmul.mubr.msk.bf16.gmra.mxu1 %vm294_vm1, %v4132_v28  ;;  %3650 = vmatprep.mubr.msk.bf16.mxu0 %vm294_vm1, %v4134_v29 }
  0x41   : > { %3616 = vmatprep.mubr.msk.bf16.mxu1 %vm294_vm1, %v4136_v30 }
  0x47   : > { %3651 = vmatmul.mubr.msk.bf16.gmra.mxu0 %vm294_vm1, %v4154_v43 }
  0x48   : > { %3617 = vmatmul.mubr.msk.bf16.gmra.mxu1 %vm294_vm1, %v4156_v44  ;;  %3654 = vmatprep.mubr.msk.bf16.mxu0 %vm294_vm1, %v4158_v45 }
  0x49   : > { %3620 = vmatprep.mubr.msk.bf16.mxu1 %vm294_vm1, %v4160_v50 }
  0x4f   : > { %3655 = vmatmul.mubr.msk.bf16.gmra.mxu0 %vm294_vm1, %v4178_v61 }
  0x50   : > { %3621 = vmatmul.mubr.msk.bf16.gmra.mxu1 %vm294_vm1, %v4180_v62  ;;  %3658 = vmatprep.mubr.msk.bf16.mxu0 %vm294_vm1, %v4182_v63 }
  0x51   : > { %3624 = vmatprep.mubr.msk.bf16.mxu1 %vm294_vm1, %v4184_v0 }
  0x57   : > { %3659 = vmatmul.mubr.msk.bf16.gmra.mxu0 %vm294_vm1, %v4202_v18 }
  0x58   : > { %3625 = vmatmul.mubr.msk.bf16.gmra.mxu1 %vm294_vm1, %v4204_v19  ;;  %3662 = vmatprep.mubr.msk.bf16.mxu0 %vm294_vm1, %v4206_v20 }
  0x59   : > { %3628 = vmatprep.mubr.msk.bf16.mxu1 %vm294_vm1, %v4208_v21 }
  0x5f   : > { %3663 = vmatmul.mubr.msk.bf16.gmra.mxu0 %vm294_vm1, %v4226_v40 }
  0x60   : > { %3629 = vmatmul.mubr.msk.bf16.gmra.mxu1 %vm294_vm1, %v4228_v41  ;;  %3666 = vmatprep.mubr.msk.bf16.mxu0 %vm294_vm1, %v4230_v42 }
  0x61   : > { %3632 = vmatprep.mubr.msk.bf16.mxu1 %vm294_vm1, %v4232_v51 }
  0x67   : > { %3667 = vmatmul.mubr.msk.bf16.gmra.mxu0 %vm294_vm1, %v4250_v2 }
  0x68   : > { %3633 = vmatmul.mubr.msk.bf16.gmra.mxu1 %vm294_vm1, %v4252_v3  ;;  %3670 = vmatprep.mubr.msk.bf16.mxu0 %vm294_vm1, %v4254_v5 }
  0x69   : > { %3636 = vmatprep.mubr.msk.bf16.mxu1 %vm294_vm1, %v4256_v6 }
  0x6f   : > { %3671 = vmatmul.mubr.msk.bf16.gmra.mxu0 %vm294_vm1, %v4270_v25 }
  0x70   : > { %3637 = vmatmul.mubr.msk.bf16.gmra.mxu1 %vm294_vm1, %v4272_v26  ;;  %3710 = vmatprep.mubr.msk.bf16.mxu0 %vm294_vm1, %v3973_v12  ;;  %v3399_v12 = vld [vmem:[%s5325_s1 + $0x20] sm:$0xf] }
  0x71   : > { %3676 = vmatprep.mubr.msk.bf16.mxu1 %vm294_vm1, %v4090_v7 }
  0x77   : > { %3711 = vmatmul.mubr.msk.bf16.vlgmr.msra.gmra.mxu0 %vm294_vm1, %v3990_v22 }
  0x78   : > { %3677 = vmatmul.mubr.msk.bf16.vlgmr.msra.gmra.mxu1 %vm294_vm1, %v4094_v9  ;;  %3777 = vmatpush3.bf16.msra.mxu0 %v1997_v31 }
  0x79   : > { %3743 = vmatpush3.bf16.msra.mxu1 %v1702_v32  ;;  %3680 = vmatprep.mubr.msk.bf16.mxu1 %vm294_vm1, %v4132_v28 }
  0x7a   : > { %3714 = vmatprep.mubr.msk.bf16.mxu0 %vm294_vm1, %v4020_v34  ;;  %3888 = vmatprep.subr.msk.bf16.mxu1 %vm343_vm0, %v3350_v33 }
  0x7b   : > { %3889 = vmatprep.subr.msk.bf16.mxu0 %vm343_vm0, %v3399_v12 }
  0x7f   : > { %3715 = vmatmul.mubr.msk.bf16.gmra.mxu0 %vm294_vm1, %v4026_v36 }
  0x80   : > { %3681 = vmatmul.mubr.msk.bf16.gmra.mxu1 %vm294_vm1, %v4136_v30  ;;  %3718 = vmatprep.mubr.msk.bf16.mxu0 %vm294_vm1, %v4046_v46 }
  0x81   : > { %3684 = vmatprep.mubr.msk.bf16.mxu1 %vm294_vm1, %v4156_v44 }
  0x87   : > { %3719 = vmatmul.mubr.msk.bf16.gmra.mxu0 %vm294_vm1, %v4050_v48  ;;  %v2585_v48 = vsel %vm343_vm0, %v3399_v12, 0 }
  0x88   : > { %3685 = vmatmul.mubr.msk.bf16.gmra.mxu1 %vm294_vm1, %v4160_v50  ;;  %3722 = vmatprep.mubr.msk.bf16.mxu0 %vm294_vm1, %v4070_v58 }
  0x89   : > { %3688 = vmatprep.mubr.msk.bf16.mxu1 %vm294_vm1, %v4180_v62 }
  0x8f   : > { %3723 = vmatmul.mubr.msk.bf16.gmra.mxu0 %vm294_vm1, %v3971_v11  ;;  %v3201_v11 = vld [vmem:[%s3963_s27 + $0x181] sm:$0xff] }
  0x90   : > { %3689 = vmatmul.mubr.msk.bf16.gmra.mxu1 %vm294_vm1, %v4184_v0  ;;  %3726 = vmatprep.mubr.msk.bf16.mxu0 %vm294_vm1, %v3980_v17  ;;  %v3202_v17 = vld [vmem:[%s3963_s27 + $0x189] sm:$0xff] }
  0x91   : > { %3692 = vmatprep.mubr.msk.bf16.mxu1 %vm294_vm1, %v4204_v19 }
  0x97   : > { %3727 = vmatmul.mubr.msk.bf16.gmra.mxu0 %vm294_vm1, %v3992_v23  ;;  %v3152_v23 = vld [vmem:[%s3963_s27 + $0x180] sm:$0xff] }
  0x98   : > { %3693 = vmatmul.mubr.msk.bf16.gmra.mxu1 %vm294_vm1, %v4208_v21  ;;  %3730 = vmatprep.mubr.msk.bf16.mxu0 %vm294_vm1, %v4024_v35  ;;  %v3153_v35 = vld [vmem:[%s3963_s27 + $0x188] sm:$0xff] }
  0x99   : > { %3696 = vmatprep.mubr.msk.bf16.mxu1 %vm294_vm1, %v4228_v41 }
  0x9f   : > { %3731 = vmatmul.mubr.msk.bf16.gmra.mxu0 %vm294_vm1, %v4028_v37  ;;  %v4354_v37 = vpack.c.bf16 %v3202_v17, %v3201_v11 }
  0xa0   : > { %3697 = vmatmul.mubr.msk.bf16.gmra.mxu1 %vm294_vm1, %v4232_v51  ;;  %3734 = vmatprep.mubr.msk.bf16.mxu0 %vm294_vm1, %v4048_v47  ;;  %v1062_v47 = vpack.c.bf16 %v3153_v35, %v3152_v23  ;;  %v3326_v23 = vld [vmem:[%s3963_s27 + $0x91] sm:$0xff]  ;;  %v3327_v35 = vld [vmem:[%s3963_s27 + $0x99] sm:$0xff] }
  0xa1   : > { %3700 = vmatprep.mubr.msk.bf16.mxu1 %vm294_vm1, %v4252_v3 }
  0xa7   : > { %3735 = vmatmul.mubr.msk.bf16.gmra.mxu0 %vm294_vm1, %v4052_v49  ;;  %v2291_v49 = vsel %vm343_vm0, %v3350_v33, 0 }
  0xa8   : > { %3701 = vmatmul.mubr.msk.bf16.gmra.mxu1 %vm294_vm1, %v4256_v6  ;;  %3738 = vmatprep.mubr.msk.bf16.mxu0 %vm294_vm1, %v4072_v59 }
  0xa9   : > { %3704 = vmatprep.mubr.msk.bf16.mxu1 %vm294_vm1, %v4272_v26 }
  0xaf   : > { %3739 = vmatmul.mubr.msk.bf16.gmra.mxu0 %vm294_vm1, %v4354_v37 }
  0xb0   : > { %3705 = vmatmul.mubr.msk.bf16.gmra.mxu1 %vm294_vm1, %v1062_v47  ;;  %3778 = vmatprep.mubr.msk.bf16.mxu0 %vm294_vm1, %v4094_v9 }
  0xb1   : > { %3744 = vmatprep.mubr.msk.bf16.mxu1 %vm294_vm1, %v4086_v4 }
  0xb7   : > { %3779 = vmatmul.mubr.msk.bf16.vlgmr.msra.gmra.mxu0 %vm294_vm1, %v4132_v28 }
  0xb8   : > { %3745 = vmatmul.mubr.msk.bf16.vlgmr.msra.gmra.mxu1 %vm294_vm1, %v4098_v13  ;;  %3845 = vmatpush3.bf16.msra.mxu0 %v2585_v48 }
  0xb9   : > { %3811 = vmatpush3.bf16.msra.mxu1 %v2291_v49  ;;  %3748 = vmatprep.mubr.msk.bf16.mxu1 %vm294_vm1, %v4128_v27 }
  0xba   : > { %3782 = vmatprep.mubr.msk.bf16.mxu0 %vm294_vm1, %v4136_v30 }
  0xbf   : > { %3783 = vmatmul.mubr.msk.bf16.gmra.mxu0 %vm294_vm1, %v4156_v44 }
  0xc0   : > { %3749 = vmatmul.mubr.msk.bf16.gmra.mxu1 %vm294_vm1, %v4134_v29  ;;  %3786 = vmatprep.mubr.msk.bf16.mxu0 %vm294_vm1, %v4160_v50 }
  0xc1   : > { %3752 = vmatprep.mubr.msk.bf16.mxu1 %vm294_vm1, %v4154_v43 }
  0xc7   : > { %3787 = vmatmul.mubr.msk.bf16.gmra.mxu0 %vm294_vm1, %v4180_v62 }
  0xc8   : > { %3753 = vmatmul.mubr.msk.bf16.gmra.mxu1 %vm294_vm1, %v4158_v45  ;;  %3790 = vmatprep.mubr.msk.bf16.mxu0 %vm294_vm1, %v4184_v0 }
  0xc9   : > { %3756 = vmatprep.mubr.msk.bf16.mxu1 %vm294_vm1, %v4178_v61 }
  0xcf   : > { %3791 = vmatmul.mubr.msk.bf16.gmra.mxu0 %vm294_vm1, %v4204_v19 }
  0xd0   : > { %3757 = vmatmul.mubr.msk.bf16.gmra.mxu1 %vm294_vm1, %v4182_v63  ;;  %3794 = vmatprep.mubr.msk.bf16.mxu0 %vm294_vm1, %v4208_v21 }
  0xd1   : > { %3760 = vmatprep.mubr.msk.bf16.mxu1 %vm294_vm1, %v4202_v18 }
  0xd7   : > { %v3576_v58 = vpop.f32.mrf.mxu0  ;;  %3795 = vmatmul.mubr.msk.bf16.gmra.mxu0 %vm294_vm1, %v4228_v41 }
  0xd8   : > { %v4399_v59 = vpop.f32.mrf.mxu1  ;;  %3761 = vmatmul.mubr.msk.bf16.gmra.mxu1 %vm294_vm1, %v4206_v20  ;;  %3798 = vmatprep.mubr.msk.bf16.mxu0 %vm294_vm1, %v4232_v51  ;;  %v3299_v51 = vld [vmem:[%s3963_s27 + $0x198] sm:$0xff] }
  0xd9   : > { %v381_v4 = vpop.f32.mrf.mxu0  ;;  %3764 = vmatprep.mubr.msk.bf16.mxu1 %vm294_vm1, %v4226_v40  ;;  %v1945_v60 = vpack.c.bf16 %v3300_v52, %v3299_v51 }
  0xda   : > { %v4407_v7 = vpop.f32.mrf.mxu1 }
  0xdb   : > { %v3577_v9 = vpop.f32.mrf.mxu0 }
  0xdc   : > { %v4409_v14 = vpop.f32.mrf.mxu1 }
  0xdd   : > { %v4411_v15 = vpop.f32.mrf.mxu0 }
  0xde   : > { %v4413_v28 = vpop.f32.mrf.mxu1 }
  0xdf   : > { %v4415_v30 = vpop.f32.mrf.mxu0  ;;  %3799 = vmatmul.mubr.msk.bf16.gmra.mxu0 %vm294_vm1, %v4252_v3  ;;  %v4462_v3 = vpack.c.bf16 %v3251_v55, %v3250_v54 }
  0xe0   : > { %v4419_v44 = vpop.f32.mrf.mxu1  ;;  %3765 = vmatmul.mubr.msk.bf16.gmra.mxu1 %vm294_vm1, %v4230_v42  ;;  %3802 = vmatprep.mubr.msk.bf16.mxu0 %vm294_vm1, %v4256_v6 }
  0xe1   : > { %v4425_v50 = vpop.f32.mrf.mxu0  ;;  %3768 = vmatprep.mubr.msk.bf16.mxu1 %vm294_vm1, %v4250_v2 }
  0xe2   : > { %v4429_v62 = vpop.f32.mrf.mxu1 }
  0xe3   : > { %v4431_v0 = vpop.f32.mrf.mxu0 }
  0xe4   : > { %v4433_v19 = vpop.f32.mrf.mxu1 }
  0xe5   : > { %v4435_v21 = vpop.f32.mrf.mxu0 }
  0xe6   : > { %v4437_v38 = vpop.f32.mrf.mxu1 }
  0xe7   : > { %v4439_v39 = vpop.f32.mrf.mxu0  ;;  %3803 = vmatmul.mubr.msk.bf16.gmra.mxu0 %vm294_vm1, %v4272_v26 }
  0xe8   : > { %v4443_v41 = vpop.f32.mrf.mxu1  ;;  %3769 = vmatmul.mubr.msk.bf16.gmra.mxu1 %vm294_vm1, %v4254_v5  ;;  %3806 = vmatprep.mubr.msk.bf16.mxu0 %vm294_vm1, %v1062_v47 }
  0xe9   : > { %v4450_v53 = vpop.f32.mrf.mxu0  ;;  %3772 = vmatprep.mubr.msk.bf16.mxu1 %vm294_vm1, %v4270_v25 }
  0xea   : > { %v4456_v56 = vpop.f32.mrf.mxu1 }
  0xeb   : > { %v4458_v57 = vpop.f32.mrf.mxu0 }
  0xec   : > { %v4460_v1 = vpop.f32.mrf.mxu1 }
  0xed   : > { %v4464_v6 = vpop.f32.mrf.mxu0 }
  0xee   : > { %v4466_v8 = vpop.f32.mrf.mxu1 }
  0xef   : > { %v4468_v10 = vpop.f32.mrf.mxu0  ;;  %3807 = vmatmul.mubr.msk.bf16.gmra.mxu0 %vm294_vm1, %v1945_v60 }
  0xf0   : > { %v4471_v16 = vpop.f32.mrf.mxu1  ;;  %3773 = vmatmul.mubr.msk.bf16.gmra.mxu1 %vm294_vm1, %v4462_v3  ;;  %3846 = vmatprep.mubr.msk.bf16.mxu0 %vm294_vm1, %v4098_v13 }
  0xf1   : > { %v4477_v24 = vpop.f32.mrf.mxu0  ;;  %3812 = vmatprep.mubr.msk.bf16.mxu1 %vm294_vm1, %v3990_v22 }
  0xf2   : > { %v4481_v25 = vpop.f32.mrf.mxu1 }
  0xf3   : > { %v4483_v26 = vpop.f32.mrf.mxu0 }
  0xf4   : > { %v4485_v31 = vpop.f32.mrf.mxu1 }
  0xf5   : > { %v4487_v32 = vpop.f32.mrf.mxu0 }
  0xf6   : > { %v4489_v33 = vpop.f32.mrf.mxu1 }
  0xf7   : > { %v3644_v12 = vpop.f32.mrf.mxu0  ;;  %3847 = vmatmul.mubr.msk.bf16.vlgmr.msra.gmra.mxu0 %vm294_vm1, %v4128_v27 }
  0xf8   : > { %v3610_v13 = vpop.f32.mrf.mxu1  ;;  %3813 = vmatmul.mubr.msk.bf16.vlgmr.msra.gmra.mxu1 %vm294_vm1, %v4020_v34  ;;  %3850 = vmatprep.mubr.msk.bf16.mxu0 %vm294_vm1, %v4134_v29  ;;  %v2228_v29 = vpack.c.bf16 %v3327_v35, %v3326_v23 }
  0xf9   : > { %v602_v22 = vadd.f32 %v3610_v13, %v3576_v58  ;;  %v855_v11 = vpop.f32.mrf.mxu0  ;;  %3816 = vmatprep.mubr.msk.bf16.mxu1 %vm294_vm1, %v4026_v36  ;;  %v3328_v13 = vld [vmem:[%s3963_s27 + $0xa9] sm:$0xff] }
  0xfa   : > { %v593_v17 = vpop.f32.mrf.mxu1 }
  0xfb   : > { %v4501_v47 = vadd.f32 %v3644_v12, %v602_v22  ;;  %v594_v48 = vadd.f32 %v593_v17, %v381_v4  ;;  %v3645_v49 = vpop.f32.mrf.mxu0  ;;  %v3331_v17 = vld [vmem:[%s3963_s27 + $0xc9] sm:$0xff] }
  0xfc   : > { %v3611_v27 = vpop.f32.mrf.mxu1 }
  0xfd   : > { %v4503_v51 = vadd.f32 %v855_v11, %v594_v48  ;;  %v605_v34 = vadd.f32 %v3611_v27, %v3577_v9  ;;  %v858_v52 = vpop.f32.mrf.mxu0  ;;  %v3330_v11 = vld [vmem:[%s3963_s27 + $0xc1] sm:$0xff] }
  0xfe   : > { %v596_v58 = vpop.f32.mrf.mxu1  ;;  %v2230_v27 = vpack.c.bf16 %v3331_v17, %v3330_v11 }
  0xff   : > { %v4505_v54 = vadd.f32 %v3645_v49, %v605_v34  ;;  %v597_v36 = vadd.f32 %v596_v58, %v4411_v15  ;;  %v3648_v55 = vpop.f32.mrf.mxu0  ;;  %3851 = vmatmul.mubr.msk.bf16.gmra.mxu0 %vm294_vm1, %v4154_v43  ;;  %v3329_v15 = vld [vmem:[%s3963_s27 + $0xb1] sm:$0xff] }
 0x100   : > { %v3614_v4 = vpop.f32.mrf.mxu1  ;;  %3817 = vmatmul.mubr.msk.bf16.gmra.mxu1 %vm294_vm1, %v4046_v46  ;;  %3854 = vmatprep.mubr.msk.bf16.mxu0 %vm294_vm1, %v4158_v45  ;;  %v2229_v48 = vpack.c.bf16 %v3329_v15, %v3328_v13  ;;  %v3335_v13 = vld [vmem:[%s3963_s27 + $0xf9] sm:$0xff] }
 0x101   : > { %v4514_v9 = vadd.f32 %v858_v52, %v597_v36  ;;  %v618_v60 = vadd.f32 %v3614_v4, %v4415_v30  ;;  %v871_v12 = vpop.f32.mrf.mxu0  ;;  %3820 = vmatprep.mubr.msk.bf16.mxu1 %vm294_vm1, %v2228_v29  ;;  %v3332_v4 = vld [vmem:[%s3963_s27 + $0xd9] sm:$0xff] }
 0x102   : > { %v609_v22 = vpop.f32.mrf.mxu1 }
 0x103   : > { %v4522_v43 = vadd.f32 %v3648_v55, %v618_v60  ;;  %v610_v23 = vadd.f32 %v609_v22, %v4425_v50  ;;  %v3649_v46 = vpop.f32.mrf.mxu0  ;;  %v3333_v60 = vld [vmem:[%s3963_s27 + $0xe1] sm:$0xff] }
 0x104   : > { %v3615_v35 = vpop.f32.mrf.mxu1  ;;  %v2231_v17 = vpack.c.bf16 %v3333_v60, %v3332_v4 }
 0x105   : > { %v4525_v45 = vadd.f32 %v871_v12, %v610_v23  ;;  %v621_v30 = vadd.f32 %v3615_v35, %v4431_v0  ;;  %v874_v49 = vpop.f32.mrf.mxu0  ;;  %v3334_v12 = vld [vmem:[%s3963_s27 + $0xf1] sm:$0xff] }
 0x106   : > { %v612_v34 = vpop.f32.mrf.mxu1 }
 0x107   : > { %v4528_v52 = vadd.f32 %v3649_v46, %v621_v30  ;;  %v613_v29 = vadd.f32 %v612_v34, %v4435_v21  ;;  %v3652_v58 = vpop.f32.mrf.mxu0  ;;  %3855 = vmatmul.mubr.msk.bf16.gmra.mxu0 %vm294_vm1, %v4178_v61  ;;  %v2232_v46 = vpack.c.bf16 %v3335_v13, %v3334_v12 }
 0x108   : > { %v3618_v50 = vpop.f32.mrf.mxu1  ;;  %3821 = vmatmul.mubr.msk.bf16.gmra.mxu1 %vm294_vm1, %v2229_v48  ;;  %3858 = vmatprep.mubr.msk.bf16.mxu0 %vm294_vm1, %v4182_v63 }
 0x109   : > { %v4536_v0 = vadd.f32 %v874_v49, %v613_v29  ;;  %v634_v36 = vadd.f32 %v3618_v50, %v4439_v39  ;;  %v887_v55 = vpop.f32.mrf.mxu0  ;;  %3824 = vmatprep.mubr.msk.bf16.mxu1 %vm294_vm1, %v2230_v27  ;;  %v3336_v29 = vld [vmem:[%s3963_s27 + $0x109] sm:$0xff]  ;;  %v3338_v50 = vld [vmem:[%s3963_s27 + $0x121] sm:$0xff] }
 0x10a   : > { %v625_v21 = vpop.f32.mrf.mxu1 }
 0x10b   : > { %v4544_v15 = vadd.f32 %v3652_v58, %v634_v36  ;;  %v626_v61 = vadd.f32 %v625_v21, %v4450_v53  ;;  %v3653_v22 = vpop.f32.mrf.mxu0  ;;  %v3337_v58 = vld [vmem:[%s3963_s27 + $0x111] sm:$0xff]  ;;  %v3339_v36 = vld [vmem:[%s3963_s27 + $0x129] sm:$0xff] }
 0x10c   : > { %v3619_v11 = vpop.f32.mrf.mxu1  ;;  %v2233_v21 = vpack.c.bf16 %v3337_v58, %v3336_v29  ;;  %v2234_v13 = vpack.c.bf16 %v3339_v36, %v3338_v50 }
 0x10d   : > { %v4547_v63 = vadd.f32 %v887_v55, %v626_v61  ;;  %v637_v39 = vadd.f32 %v3619_v11, %v4458_v57  ;;  %v890_v23 = vpop.f32.mrf.mxu0 }
 0x10e   : > { %v628_v35 = vpop.f32.mrf.mxu1 }
 0x10f   : > { %v4550_v48 = vadd.f32 %v3653_v22, %v637_v39  ;;  %v629_v30 = vadd.f32 %v628_v35, %v4464_v6  ;;  %v3656_v49 = vpop.f32.mrf.mxu0  ;;  %3859 = vmatmul.mubr.msk.bf16.gmra.mxu0 %vm294_vm1, %v4202_v18  ;;  %v3341_v35 = vld [vmem:[%s3963_s27 + $0x141] sm:$0xff] }
 0x110   : > { %v3622_v53 = vpop.f32.mrf.mxu1  ;;  %3825 = vmatmul.mubr.msk.bf16.gmra.mxu1 %vm294_vm1, %v2231_v17  ;;  %3862 = vmatprep.mubr.msk.bf16.mxu0 %vm294_vm1, %v4206_v20 }
 0x111   : > { %v4558_v57 = vadd.f32 %v890_v23, %v629_v30  ;;  %v650_v27 = vadd.f32 %v3622_v53, %v4468_v10  ;;  %v903_v34 = vpop.f32.mrf.mxu0  ;;  %3828 = vmatprep.mubr.msk.bf16.mxu1 %vm294_vm1, %v2232_v46  ;;  %v3340_v46 = vld [vmem:[%s3963_s27 + $0x139] sm:$0xff]  ;;  %v3342_v30 = vld [vmem:[%s3963_s27 + $0x151] sm:$0xff] }
 0x112   : > { %v641_v6 = vpop.f32.mrf.mxu1 }
 0x113   : > { %v4566_v55 = vadd.f32 %v3656_v49, %v650_v27  ;;  %v642_v18 = vadd.f32 %v641_v6, %v4477_v24  ;;  %v3657_v4 = vpop.f32.mrf.mxu0  ;;  %v3343_v49 = vld [vmem:[%s3963_s27 + $0x159] sm:$0xff] }
 0x114   : > { %v3623_v60 = vpop.f32.mrf.mxu1  ;;  %v2236_v6 = vpack.c.bf16 %v3343_v49, %v3342_v30 }
 0x115   : > { %v4569_v20 = vadd.f32 %v903_v34, %v642_v18  ;;  %v653_v10 = vadd.f32 %v3623_v60, %v4483_v26  ;;  %v906_v12 = vpop.f32.mrf.mxu0  ;;  %v2235_v34 = vpack.c.bf16 %v3341_v35, %v3340_v46  ;;  %v3394_v60 = vld [vmem:[%s3963_s27 + $0x172] sm:$0xff] }
 0x116   : > { %v644_v61 = vpop.f32.mrf.mxu1 }
 0x117   : > { %v4572_v22 = vadd.f32 %v3657_v4, %v653_v10  ;;  %v645_v11 = vadd.f32 %v644_v61, %v4487_v32  ;;  %v3660_v17 = vpop.f32.mrf.mxu0  ;;  %3863 = vmatmul.mubr.msk.bf16.gmra.mxu0 %vm294_vm1, %v4226_v40 }
 0x118   : > { %v3626_v24 = vpop.f32.mrf.mxu1  ;;  %3829 = vmatmul.mubr.msk.bf16.gmra.mxu1 %vm294_vm1, %v2233_v21  ;;  %3866 = vmatprep.mubr.msk.bf16.mxu0 %vm294_vm1, %v4230_v42 }
 0x119   : > { %v4580_v26 = vadd.f32 %v906_v12, %v645_v11  ;;  %v666_v39 = vadd.f32 %v3626_v24, %v4399_v59  ;;  %v919_v23 = vpop.f32.mrf.mxu0  ;;  %3832 = vmatprep.mubr.msk.bf16.mxu1 %vm294_vm1, %v2234_v13  ;;  %v3345_v13 = vld [vmem:[%s3963_s27 + $0x171] sm:$0xff] }
 0x11a   : > { %v657_v32 = vpop.f32.mrf.mxu1 }
 0x11b   : > { %v4588_v53 = vadd.f32 %v3660_v17, %v666_v39  ;;  %v658_v40 = vadd.f32 %v657_v32, %v4407_v7  ;;  %v3661_v27 = vpop.f32.mrf.mxu0 }
 0x11c   : > { %v3627_v42 = vpop.f32.mrf.mxu1 }
 0x11d   : > { %v4591_v29 = vadd.f32 %v919_v23, %v658_v40  ;;  %v669_v59 = vadd.f32 %v3627_v42, %v4409_v14  ;;  %v922_v58 = vpop.f32.mrf.mxu0  ;;  %v3393_v14 = vld [vmem:[%s3963_s27 + $0x16a] sm:$0xff]  ;;  %v3397_v40 = vld [vmem:[%s3963_s27 + $0x19a] sm:$0xff] }
 0x11e   : > { %v660_v50 = vpop.f32.mrf.mxu1 }
 0x11f   : > { %v4594_v36 = vadd.f32 %v3661_v27, %v669_v59  ;;  %v661_v18 = vadd.f32 %v660_v50, %v4413_v28  ;;  %v3664_v4 = vpop.f32.mrf.mxu0  ;;  %3867 = vmatmul.mubr.msk.bf16.gmra.mxu0 %vm294_vm1, %v4250_v2  ;;  %v3344_v28 = vld [vmem:[%s3963_s27 + $0x169] sm:$0xff]  ;;  %v3349_v59 = vld [vmem:[%s3963_s27 + $0x1a1] sm:$0xff] }
 0x120   : > { %v3630_v7 = vpop.f32.mrf.mxu1  ;;  %3833 = vmatmul.mubr.msk.bf16.gmra.mxu1 %vm294_vm1, %v2235_v34  ;;  %3870 = vmatprep.mubr.msk.bf16.mxu0 %vm294_vm1, %v4254_v5  ;;  %v2531_v5 = vpack.c.bf16 %v3394_v60, %v3393_v14  ;;  %v2237_v39 = vpack.c.bf16 %v3345_v13, %v3344_v28  ;;  %v3398_v27 = vld [vmem:[%s3963_s27 + $0x1a2] sm:$0xff] }
 0x121   : > { %v4604_v21 = vadd.f32 %v922_v58, %v661_v18  ;;  %v682_v10 = vadd.f32 %v3630_v7, %v4419_v44  ;;  %v935_v12 = vpop.f32.mrf.mxu0  ;;  %3836 = vmatprep.mubr.msk.bf16.mxu1 %vm294_vm1, %v2236_v6 }
 0x122   : > { %v673_v61 = vpop.f32.mrf.mxu1 }
 0x123   : > { %v4610_v11 = vadd.f32 %v3664_v4, %v682_v10  ;;  %v674_v2 = vadd.f32 %v673_v61, %v4429_v62  ;;  %v3665_v17 = vpop.f32.mrf.mxu0  ;;  %v2533_v4 = vpack.c.bf16 %v3398_v27, %v3397_v40 }
 0x124   : > { %v3631_v24 = vpop.f32.mrf.mxu1 }
 0x125   : > { %v4613_v23 = vadd.f32 %v935_v12, %v674_v2  ;;  %v685_v44 = vadd.f32 %v3631_v24, %v4433_v19  ;;  %v938_v46 = vpop.f32.mrf.mxu0 }
 0x126   : > { %v676_v35 = vpop.f32.mrf.mxu1 }
 0x127   : > { %v4616_v32 = vadd.f32 %v3665_v17, %v685_v44  ;;  %v677_v30 = vadd.f32 %v676_v35, %v4437_v38  ;;  %v3668_v49 = vpop.f32.mrf.mxu0  ;;  %3871 = vmatmul.mubr.msk.bf16.gmra.mxu0 %vm294_vm1, %v2531_v5  ;;  %v3348_v38 = vld [vmem:[%s3963_s27 + $0x199] sm:$0xff] }
 0x128   : > { %v3634_v62 = vpop.f32.mrf.mxu1  ;;  %3837 = vmatmul.mubr.msk.bf16.gmra.mxu1 %vm294_vm1, %v2237_v39  ;;  %3874 = vmatprep.mubr.msk.bf16.mxu0 %vm294_vm1, %v4462_v3  ;;  %v2239_v7 = vpack.c.bf16 %v3349_v59, %v3348_v38 }
 0x129   : > { %v4625_v19 = vadd.f32 %v938_v46, %v677_v30  ;;  %v698_v42 = vadd.f32 %v3634_v62, %v4443_v41  ;;  %v951_v34 = vpop.f32.mrf.mxu0  ;;  %3840 = vmatprep.mubr.msk.bf16.mxu1 %vm294_vm1, %v4354_v37 }
 0x12a   : > { %v689_v58 = vpop.f32.mrf.mxu1 }
 0x12b   : > { %v4632_v6 = vadd.f32 %v3668_v49, %v698_v42  ;;  %v690_v50 = vadd.f32 %v689_v58, %v4456_v56  ;;  %v3669_v18 = vpop.f32.mrf.mxu0 }
 0x12c   : > { %v3635_v3 = vpop.f32.mrf.mxu1 }
 0x12d   : > { %v4635_v14 = vadd.f32 %v951_v34, %v690_v50  ;;  %v701_v60 = vadd.f32 %v3635_v3, %v4460_v1  ;;  %v954_v41 = vpop.f32.mrf.mxu0 }
 0x12e   : > { %v692_v10 = vpop.f32.mrf.mxu1 }
 0x12f   : > { %v4638_v12 = vadd.f32 %v3669_v18, %v701_v60  ;;  %v693_v37 = vadd.f32 %v692_v10, %v4466_v8  ;;  %v3672_v28 = vpop.f32.mrf.mxu0  ;;  %3875 = vmatmul.mubr.msk.bf16.gmra.mxu0 %vm294_vm1, %v2533_v4 }
 0x130   : > { %v3638_v13 = vpop.f32.mrf.mxu1  ;;  %3841 = vmatmul.mubr.msk.bf16.gmra.mxu1 %vm294_vm1, %v2239_v7 }
 0x131   : > { %v4643_v56 = vadd.f32 %v954_v41, %v693_v37  ;;  %v714_v61 = vadd.f32 %v3638_v13, %v4471_v16  ;;  %v967_v2 = vpop.f32.mrf.mxu0 }
 0x132   : > { %v705_v17 = vpop.f32.mrf.mxu1 }
 0x133   : > { %v4646_v5 = vadd.f32 %v3672_v28, %v714_v61  ;;  %v706_v1 = vadd.f32 %v705_v17, %v4481_v25  ;;  %v3673_v24 = vpop.f32.mrf.mxu0 }
 0x134   : > { %v3639_v39 = vpop.f32.mrf.mxu1 }
 0x135   : > { %v4649_v44 = vadd.f32 %v967_v2, %v706_v1  ;;  %v717_v8 = vadd.f32 %v3639_v39, %v4485_v31  ;;  %v970_v46 = vpop.f32.mrf.mxu0 }
 0x136   : > { %v708_v35 = vpop.f32.mrf.mxu1 }
 0x137   : > { %v4652_v30 = vadd.f32 %v3673_v24, %v717_v8  ;;  %v709_v49 = vadd.f32 %v708_v35, %v4489_v33  ;;  %v3712_v62 = vpop.f32.mrf.mxu0 }
 0x138   : > { %v3678_v16 = vpop.f32.mrf.mxu1 }
 0x139   : > { %v4655_v40 = vadd.f32 %v970_v46, %v709_v49  ;;  %v1279_v27 = vadd.f32 %v3678_v16, %v4501_v47  ;;  %v1444_v42 = vpop.f32.mrf.mxu0 }
 0x13a   : > { %v1150_v25 = vpop.f32.mrf.mxu1 }
 0x13b   : > { %v4658_v34 = vadd.f32 %v3712_v62, %v1279_v27  ;;  %v1277_v38 = vadd.f32 %v1150_v25, %v4503_v51  ;;  %v3713_v59 = vpop.f32.mrf.mxu0 }
 0x13c   : > { %v3679_v31 = vpop.f32.mrf.mxu1 }
 0x13d   : > { %v4661_v58 = vadd.f32 %v1444_v42, %v1277_v38  ;;  %v1280_v50 = vadd.f32 %v3679_v31, %v4505_v54  ;;  %v1447_v18 = vpop.f32.mrf.mxu0 }
 0x13e   : > { %v1153_v33 = vpop.f32.mrf.mxu1 }
 0x13f   : > { %v4664_v4 = vadd.f32 %v3713_v59, %v1280_v50  ;;  %v1278_v3 = vadd.f32 %v1153_v33, %v4514_v9  ;;  %v3716_v7 = vpop.f32.mrf.mxu0 }
 0x140   : > { %v3682_v47 = vpop.f32.mrf.mxu1 }
 0x141   : > { %v4667_v60 = vadd.f32 %v1447_v18, %v1278_v3  ;;  %v1283_v41 = vadd.f32 %v3682_v47, %v4522_v43  ;;  %v1460_v10 = vpop.f32.mrf.mxu0 }
 0x142   : > { %v1166_v51 = vpop.f32.mrf.mxu1 }
 0x143   : > { %v4670_v37 = vadd.f32 %v3716_v7, %v1283_v41  ;;  %v1281_v28 = vadd.f32 %v1166_v51, %v4525_v45  ;;  %v3717_v13 = vpop.f32.mrf.mxu0 }
 0x144   : > { %v3683_v54 = vpop.f32.mrf.mxu1 }
 0x145   : > { %v4673_v61 = vadd.f32 %v1460_v10, %v1281_v28  ;;  %v1284_v2 = vadd.f32 %v3683_v54, %v4528_v52  ;;  %v1463_v17 = vpop.f32.mrf.mxu0 }
 0x146   : > { %v1169_v9 = vpop.f32.mrf.mxu1 }
 0x147   : > { %v4676_v1 = vadd.f32 %v3717_v13, %v1284_v2  ;;  %v1282_v24 = vadd.f32 %v1169_v9, %v4536_v0  ;;  %v3720_v39 = vpop.f32.mrf.mxu0 }
 0x148   : > { %v3686_v43 = vpop.f32.mrf.mxu1 }
 0x149   : > { %v4679_v8 = vadd.f32 %v1463_v17, %v1282_v24  ;;  %v1287_v46 = vadd.f32 %v3686_v43, %v4544_v15  ;;  %v1476_v35 = vpop.f32.mrf.mxu0 }
 0x14a   : > { %v1182_v45 = vpop.f32.mrf.mxu1 }
 0x14b   : > { %v4682_v49 = vadd.f32 %v3720_v39, %v1287_v46  ;;  %v1285_v62 = vadd.f32 %v1182_v45, %v4547_v63  ;;  %v3721_v16 = vpop.f32.mrf.mxu0 }
 0x14c   : > { %v3687_v52 = vpop.f32.mrf.mxu1 }
 0x14d   : > { %v4685_v27 = vadd.f32 %v1476_v35, %v1285_v62  ;;  %v1288_v42 = vadd.f32 %v3687_v52, %v4550_v48  ;;  %v1479_v25 = vpop.f32.mrf.mxu0 }
 0x14e   : > { %v1185_v0 = vpop.f32.mrf.mxu1 }
 0x14f   : > { %v4688_v38 = vadd.f32 %v3721_v16, %v1288_v42  ;;  %v1286_v59 = vadd.f32 %v1185_v0, %v4558_v57  ;;  %v3724_v31 = vpop.f32.mrf.mxu0 }
 0x150   : > { %v3690_v15 = vpop.f32.mrf.mxu1 }
 0x151   : > { %v4691_v50 = vadd.f32 %v1479_v25, %v1286_v59  ;;  %v1291_v18 = vadd.f32 %v3690_v15, %v4566_v55  ;;  %v1492_v33 = vpop.f32.mrf.mxu0 }
 0x152   : > { %v1198_v63 = vpop.f32.mrf.mxu1 }
 0x153   : > { %v4694_v3 = vadd.f32 %v3724_v31, %v1291_v18  ;;  %v1289_v7 = vadd.f32 %v1198_v63, %v4569_v20  ;;  %v3725_v47 = vpop.f32.mrf.mxu0 }
 0x154   : > { %v3691_v48 = vpop.f32.mrf.mxu1 }
 0x155   : > { %v4697_v41 = vadd.f32 %v1492_v33, %v1289_v7  ;;  %v1292_v10 = vadd.f32 %v3691_v48, %v4572_v22  ;;  %v1495_v51 = vpop.f32.mrf.mxu0 }
 0x156   : > { %v1201_v57 = vpop.f32.mrf.mxu1 }
 0x157   : > { %v4700_v28 = vadd.f32 %v3725_v47, %v1292_v10  ;;  %v1290_v13 = vadd.f32 %v1201_v57, %v4580_v26  ;;  %v3728_v54 = vpop.f32.mrf.mxu0 }
 0x158   : > { %v3694_v55 = vpop.f32.mrf.mxu1 }
 0x159   : > { %v4703_v2 = vadd.f32 %v1495_v51, %v1290_v13  ;;  %v1295_v17 = vadd.f32 %v3694_v55, %v4588_v53  ;;  %v1508_v9 = vpop.f32.mrf.mxu0 }
 0x15a   : > { %v1214_v20 = vpop.f32.mrf.mxu1 }
 0x15b   : > { %v4706_v24 = vadd.f32 %v3728_v54, %v1295_v17  ;;  %v1293_v39 = vadd.f32 %v1214_v20, %v4591_v29  ;;  %v3729_v43 = vpop.f32.mrf.mxu0 }
 0x15c   : > { %v3695_v22 = vpop.f32.mrf.mxu1 }
 0x15d   : > { %v4709_v46 = vadd.f32 %v1508_v9, %v1293_v39  ;;  %v1296_v35 = vadd.f32 %v3695_v22, %v4594_v36  ;;  %v1511_v45 = vpop.f32.mrf.mxu0 }
 0x15e   : > { %v1217_v26 = vpop.f32.mrf.mxu1 }
 0x15f   : > { %v4712_v62 = vadd.f32 %v3729_v43, %v1296_v35  ;;  %v1294_v16 = vadd.f32 %v1217_v26, %v4604_v21  ;;  %v3732_v52 = vpop.f32.mrf.mxu0 }
 0x160   : > { %v3698_v53 = vpop.f32.mrf.mxu1 }
 0x161   : > { %5329 = vst [vmem:[#allocation2_spill] sm:$0xff] %v4712_v62  ;;  %v4715_v42 = vadd.f32 %v1511_v45, %v1294_v16  ;;  %v1299_v25 = vadd.f32 %v3698_v53, %v4610_v11  ;;  %v1524_v0 = vpop.f32.mrf.mxu0 }
 0x162   : > { %v1230_v29 = vpop.f32.mrf.mxu1 }
 0x163   : > { %5330 = vst [vmem:[#allocation3_spill] sm:$0xff] %v4715_v42  ;;  %v4718_v59 = vadd.f32 %v3732_v52, %v1299_v25  ;;  %v1297_v31 = vadd.f32 %v1230_v29, %v4613_v23  ;;  %v3733_v15 = vpop.f32.mrf.mxu0 }
 0x164   : > { %v3699_v36 = vpop.f32.mrf.mxu1 }
 0x165   : > { %5331 = vst [vmem:[#allocation4_spill] sm:$0xff] %v4718_v59  ;;  %v4721_v18 = vadd.f32 %v1524_v0, %v1297_v31  ;;  %v1300_v33 = vadd.f32 %v3699_v36, %v4616_v32  ;;  %v1527_v63 = vpop.f32.mrf.mxu0 }
 0x166   : > { %v1233_v21 = vpop.f32.mrf.mxu1 }
 0x167   : > { %5332 = vst [vmem:[#allocation5_spill] sm:$0xff] %v4721_v18  ;;  %v4724_v7 = vadd.f32 %v3733_v15, %v1300_v33  ;;  %v1298_v47 = vadd.f32 %v1233_v21, %v4625_v19  ;;  %v3736_v48 = vpop.f32.mrf.mxu0 }
 0x168   : > { %v3702_v11 = vpop.f32.mrf.mxu1 }
 0x169   : > { %5333 = vst [vmem:[#allocation6_spill] sm:$0xff] %v4724_v7  ;;  %v4727_v10 = vadd.f32 %v1527_v63, %v1298_v47  ;;  %v1303_v51 = vadd.f32 %v3702_v11, %v4632_v6  ;;  %v1540_v57 = vpop.f32.mrf.mxu0 }
 0x16a   : > { %v1246_v23 = vpop.f32.mrf.mxu1 }
 0x16b   : > { %5334 = vst [vmem:[#allocation7_spill] sm:$0xff] %v4727_v10  ;;  %v4730_v13 = vadd.f32 %v3736_v48, %v1303_v51  ;;  %v1301_v54 = vadd.f32 %v1246_v23, %v4635_v14  ;;  %v3737_v55 = vpop.f32.mrf.mxu0 }
 0x16c   : > { %v3703_v32 = vpop.f32.mrf.mxu1 }
 0x16d   : > { %5335 = vst [vmem:[#allocation8_spill] sm:$0xff] %v4730_v13  ;;  %v4733_v17 = vadd.f32 %v1540_v57, %v1301_v54  ;;  %v1304_v9 = vadd.f32 %v3703_v32, %v4638_v12  ;;  %v1543_v20 = vpop.f32.mrf.mxu0 }
 0x16e   : > { %v1249_v19 = vpop.f32.mrf.mxu1 }
 0x16f   : > { %5336 = vst [vmem:[#allocation9_spill] sm:$0xff] %v4733_v17  ;;  %v4736_v39 = vadd.f32 %v3737_v55, %v1304_v9  ;;  %v1302_v43 = vadd.f32 %v1249_v19, %v4643_v56  ;;  %v3740_v22 = vpop.f32.mrf.mxu0 }
 0x170   : > { %v3706_v6 = vpop.f32.mrf.mxu1 }
 0x171   : > { %5337 = vst [vmem:[#allocation10_spill] sm:$0xff] %v4736_v39  ;;  %v4739_v35 = vadd.f32 %v1543_v20, %v1302_v43  ;;  %v1307_v45 = vadd.f32 %v3706_v6, %v4646_v5  ;;  %v1556_v26 = vpop.f32.mrf.mxu0 }
 0x172   : > { %v1262_v14 = vpop.f32.mrf.mxu1 }
 0x173   : > { %5338 = vst [vmem:[#allocation11_spill] sm:$0xff] %v4739_v35  ;;  %v4742_v16 = vadd.f32 %v3740_v22, %v1307_v45  ;;  %v1305_v52 = vadd.f32 %v1262_v14, %v4649_v44  ;;  %v3741_v53 = vpop.f32.mrf.mxu0 }
 0x174   : > { %v3707_v12 = vpop.f32.mrf.mxu1 }
 0x175   : > { %5339 = vst [vmem:[#allocation12_spill] sm:$0xff] %v4742_v16  ;;  %v4745_v25 = vadd.f32 %v1556_v26, %v1305_v52  ;;  %v1308_v0 = vadd.f32 %v3707_v12, %v4652_v30  ;;  %v1559_v29 = vpop.f32.mrf.mxu0 }
 0x176   : > { %v1265_v56 = vpop.f32.mrf.mxu1 }
 0x177   : > { %5340 = vst [vmem:[#allocation13_spill] sm:$0xff] %v4745_v25  ;;  %v4748_v31 = vadd.f32 %v3741_v53, %v1308_v0  ;;  %v1306_v15 = vadd.f32 %v1265_v56, %v4655_v40  ;;  %v4751_v36 = vpop.f32.mrf.mxu0 }
 0x178   : > { %v3746_v5 = vpop.f32.mrf.mxu1 }
 0x179   : > { %5341 = vst [vmem:[#allocation14_spill] sm:$0xff] %v4748_v31  ;;  %v4753_v33 = vadd.f32 %v1559_v29, %v1306_v15  ;;  %v4755_v63 = vpop.f32.mrf.mxu0 }
 0x17a   : > { %v4757_v44 = vpop.f32.mrf.mxu1 }
 0x17b   : > { %5342 = vst [vmem:[#allocation15_spill] sm:$0xff] %v4753_v33  ;;  %v4759_v21 = vpop.f32.mrf.mxu0 }
 0x17c   : > { %v4761_v47 = vpop.f32.mrf.mxu1 }
 0x17d   : > { %v4763_v30 = vpop.f32.mrf.mxu0 }
 0x17e   : > { %v4765_v48 = vpop.f32.mrf.mxu1 }
 0x17f   : > { %v4767_v11 = vpop.f32.mrf.mxu0 }
 0x180   : > { %v4769_v40 = vpop.f32.mrf.mxu1 }
 0x181   : > { %v4771_v51 = vpop.f32.mrf.mxu0 }
 0x182   : > { %v4773_v57 = vpop.f32.mrf.mxu1 }
 0x183   : > { %v4775_v23 = vpop.f32.mrf.mxu0 }
 0x184   : > { %v4777_v54 = vpop.f32.mrf.mxu1 }
 0x185   : > { %v4779_v55 = vpop.f32.mrf.mxu0 }
 0x186   : > { %v4781_v32 = vpop.f32.mrf.mxu1 }
 0x187   : > { %v4783_v9 = vpop.f32.mrf.mxu0 }
 0x188   : > { %v4785_v20 = vpop.f32.mrf.mxu1 }
 0x189   : > { %v4787_v19 = vpop.f32.mrf.mxu0 }
 0x18a   : > { %v4789_v43 = vpop.f32.mrf.mxu1 }
 0x18b   : > { %v4791_v22 = vpop.f32.mrf.mxu0 }
 0x18c   : > { %v4793_v6 = vpop.f32.mrf.mxu1 }
 0x18d   : > { %v4795_v45 = vpop.f32.mrf.mxu0 }
 0x18e   : > { %v4797_v26 = vpop.f32.mrf.mxu1 }
 0x18f   : > { %v4799_v14 = vpop.f32.mrf.mxu0 }
 0x190   : > { %v4801_v52 = vpop.f32.mrf.mxu1 }
 0x191   : > { %v4803_v53 = vpop.f32.mrf.mxu0 }
 0x192   : > { %v4805_v12 = vpop.f32.mrf.mxu1 }
 0x193   : > { %v4807_v0 = vpop.f32.mrf.mxu0 }
 0x194   : > { %v4809_v29 = vpop.f32.mrf.mxu1 }
 0x195   : > { %v4811_v56 = vpop.f32.mrf.mxu0 }
 0x196   : > { %v4813_v15 = vpop.f32.mrf.mxu1 }
 0x197   : > { %v4815_v33 = vpop.f32.mrf.mxu0 }
 0x198   : > { %v4817_v31 = vpop.f32.mrf.mxu1 }
 0x199   : > { %v4819_v25 = vpop.f32.mrf.mxu0 }
 0x19a   : > { %5343 = vst [vmem:[#allocation16_spill] sm:$0xff] %v4819_v25  ;;  %v4821_v16 = vpop.f32.mrf.mxu1 }
 0x19b   : > { %v4823_v35 = vpop.f32.mrf.mxu0 }
 0x19c   : > { %5344 = vst [vmem:[#allocation17_spill] sm:$0xff] %v4823_v35  ;;  %v4825_v39 = vpop.f32.mrf.mxu1 }
 0x19d   : > { %5345 = vst [vmem:[#allocation18_spill] sm:$0xff] %v4825_v39  ;;  %v4827_v17 = vpop.f32.mrf.mxu0 }
 0x19e   : > { %5346 = vst [vmem:[#allocation19_spill] sm:$0xff] %v4827_v17  ;;  %v4829_v13 = vpop.f32.mrf.mxu1 }
 0x19f   : > { %5347 = vst [vmem:[#allocation20_spill] sm:$0xff] %v4829_v13  ;;  %v4831_v10 = vpop.f32.mrf.mxu0 }
 0x1a0   : > { %5348 = vst [vmem:[#allocation21_spill] sm:$0xff] %v4831_v10  ;;  %v4833_v7 = vpop.f32.mrf.mxu1 }
 0x1a1   : > { %5349 = vst [vmem:[#allocation22_spill] sm:$0xff] %v4833_v7  ;;  %v4835_v18 = vpop.f32.mrf.mxu0 }
 0x1a2   : > { %5350 = vst [vmem:[#allocation23_spill] sm:$0xff] %v4835_v18  ;;  %v4837_v59 = vpop.f32.mrf.mxu1 }
 0x1a3   : > { %v4839_v42 = vpop.f32.mrf.mxu0 }
 0x1a4   : > { %5351 = vst [vmem:[#allocation24_spill] sm:$0xff] %v4839_v42  ;;  %v4841_v25 = vpop.f32.mrf.mxu1 }
 0x1a5   : > { %5352 = vst [vmem:[#allocation25_spill] sm:$0xff] %v4841_v25  ;;  %v4843_v35 = vpop.f32.mrf.mxu0 }
 0x1a6   : > { %5353 = vst [vmem:[#allocation26_spill] sm:$0xff] %v4843_v35  ;;  %v4845_v39 = vpop.f32.mrf.mxu1 }
 0x1a7   : > { %5354 = vst [vmem:[#allocation27_spill] sm:$0xff] %v4845_v39  ;;  %v4847_v17 = vpop.f32.mrf.mxu0 }
 0x1a8   : > { %5355 = vst [vmem:[#allocation28_spill] sm:$0xff] %v4847_v17  ;;  %v4849_v62 = vpop.f32.mrf.mxu1 }
 0x1a9   : > { %5356 = vst [vmem:[#allocation29_spill] sm:$0xff] %v4849_v62  ;;  %v4851_v13 = vpop.f32.mrf.mxu0 }
 0x1aa   : > { %5357 = vst [vmem:[#allocation30_spill] sm:$0xff] %v4851_v13  ;;  %v4853_v10 = vpop.f32.mrf.mxu1  ;;  %v1867_v13 = vadd.f32 %v3746_v5, %v4658_v34 }
 0x1ab   : > { %5358 = vst [vmem:[#allocation31_spill] sm:$0xff] %v4853_v10  ;;  %v4855_v7 = vpop.f32.mrf.mxu0 }
 0x1ac   : > { %5359 = vst [vmem:[#allocation32_spill] sm:$0xff] %v4855_v7  ;;  %v4857_v18 = vpop.f32.mrf.mxu1 }
 0x1ad   : > { %5360 = vst [vmem:[#allocation33_spill] sm:$0xff] %v4857_v18  ;;  %v4860_v42 = vpop.f32.mrf.mxu0 }
 0x1ae   : > { %5361 = vst [vmem:[#allocation34_spill] sm:$0xff] %v4860_v42  ;;  %v4862_v25 = vpop.f32.mrf.mxu1  ;;  %v1865_v42 = vadd.f32 %v4757_v44, %v4661_v58  ;;  %v1869_v44 = vadd.f32 %v4773_v57, %v4673_v61 }
 0x1af   : > { %5362 = vst [vmem:[#allocation35_spill] sm:$0xff] %v4862_v25  ;;  %v4864_v35 = vpop.f32.mrf.mxu0 }
 0x1b0   : > { %5363 = vst [vmem:[#allocation36_spill] sm:$0xff] %v4864_v35  ;;  %v4866_v39 = vpop.f32.mrf.mxu1  ;;  %v2160_v5 = vadd.f32 %v4755_v63, %v1865_v42 }
 0x1b1   : > { %5364 = vst [vmem:[#allocation37_spill] sm:$0xff] %v4866_v39  ;;  %v4868_v17 = vpop.f32.mrf.mxu0  ;;  %v2162_v39 = vadd.f32 %v4751_v36, %v1867_v13  ;;  %v1871_v13 = vadd.f32 %v4769_v40, %v4670_v37  ;;  %v1870_v40 = vadd.f32 %v4781_v32, %v4679_v8 }
 0x1b2   : > { %5365 = vst [vmem:[#allocation38_spill] sm:$0xff] %v4868_v17  ;;  %v4870_v62 = vpop.f32.mrf.mxu1  ;;  %v1868_v17 = vadd.f32 %v4761_v47, %v4664_v4 }
 0x1b3   : > { %5366 = vst [vmem:[#allocation39_spill] sm:$0xff] %v4870_v62  ;;  %v4873_v10 = vpop.f32.mrf.mxu0  ;;  %v2166_v37 = vadd.f32 %v4767_v11, %v1871_v13  ;;  %v1873_v13 = vadd.f32 %v4789_v43, %v4685_v27 }
 0x1b4   : > { %5367 = vst [vmem:[#allocation40_spill] sm:$0xff] %v4873_v10  ;;  %v4875_v7 = vpop.f32.mrf.mxu1  ;;  %v1866_v10 = vadd.f32 %v4765_v48, %v4667_v60  ;;  %v2163_v4 = vadd.f32 %v4759_v21, %v1868_v17 }
 0x1b5   : > { %5368 = vst [vmem:[#allocation41_spill] sm:$0xff] %v4875_v7  ;;  %v4879_v25 = vpop.f32.mrf.mxu0 }
 0x1b6   : > { %v4881_v35 = vpop.f32.mrf.mxu1 }
 0x1b7   : > { %v3848_v62 = vpop.f32.mrf.mxu0 }
 0x1b8   : > { %v3814_v34 = vpop.f32.mrf.mxu1 }
 0x1b9   : > { %v2456_v7 = vadd.f32 %v3814_v34, %v2162_v39  ;;  %v2621_v18 = vpop.f32.mrf.mxu0  ;;  %v2161_v39 = vadd.f32 %v4763_v30, %v1866_v10 }
 0x1ba   : > { %v2327_v58 = vpop.f32.mrf.mxu1 }
 0x1bb   : > { %v4897_v36 = vadd.f32 %v3848_v62, %v2456_v7  ;;  %v2454_v42 = vadd.f32 %v2327_v58, %v2160_v5  ;;  %v3849_v63 = vpop.f32.mrf.mxu0  ;;  %v1872_v62 = vadd.f32 %v4777_v54, %v4676_v1  ;;  %v1875_v5 = vadd.f32 %v4785_v20, %v4682_v49 }
 0x1bc   : > { %v3815_v60 = vpop.f32.mrf.mxu1 }
 0x1bd   : > { %2782 = vst.msk [vmem:[%s4892_s20 + $0x10] sm:$0xff] %vm294_vm1, %v4897_v36  ;;  %v4905_v47 = vadd.f32 %v2621_v18, %v2454_v42  ;;  %v2457_v17 = vadd.f32 %v3815_v60, %v2163_v4  ;;  %v2624_v21 = vpop.f32.mrf.mxu0  ;;  %v2164_v18 = vadd.f32 %v4771_v51, %v1869_v44  ;;  %v2167_v34 = vadd.f32 %v4775_v23, %v1872_v62 }
 0x1be   : > { %v2330_v48 = vpop.f32.mrf.mxu1  ;;  %v2165_v4 = vadd.f32 %v4779_v55, %v1870_v40  ;;  %v1876_v60 = vadd.f32 %v4793_v6, %v4688_v38  ;;  %v2168_v44 = vadd.f32 %v4787_v19, %v1873_v13  ;;  %v1880_v40 = vadd.f32 %v4809_v29, %v4700_v28 }
 0x1bf   : > { %2780 = vst.msk [vmem:[%s4892_s20] sm:$0xff] %vm294_vm1, %v4905_v47  ;;  %v4913_v7 = vadd.f32 %v3849_v63, %v2457_v17  ;;  %v2455_v61 = vadd.f32 %v2330_v48, %v2161_v39  ;;  %v3852_v10 = vpop.f32.mrf.mxu0  ;;  %v2170_v63 = vadd.f32 %v4783_v9, %v1875_v5  ;;  %v1874_v17 = vadd.f32 %v4797_v26, %v4691_v50 }
 0x1c0   : > { %v3818_v30 = vpop.f32.mrf.mxu1  ;;  %v2171_v48 = vadd.f32 %v4791_v22, %v1876_v60  ;;  %v2175_v5 = vadd.f32 %v4807_v0, %v1880_v40  ;;  %v5378_v40 = vld [vmem:[#allocation5_spill] sm:$0xff] }
 0x1c1   : > { %2783 = vst.msk [vmem:[%s4892_s20 + $0x18] sm:$0xff] %vm294_vm1, %v4913_v7  ;;  %v4921_v11 = vadd.f32 %v2624_v21, %v2455_v61  ;;  %v2460_v1 = vadd.f32 %v3818_v30, %v2166_v37  ;;  %v2637_v57 = vpop.f32.mrf.mxu0  ;;  %v1879_v37 = vadd.f32 %v4801_v52, %v4694_v3  ;;  %v2169_v61 = vadd.f32 %v4795_v45, %v1874_v17 }
 0x1c2   : > { %v2343_v54 = vpop.f32.mrf.mxu1 }
 0x1c3   : > { %2781 = vst.msk [vmem:[%s4892_s20 + $0x8] sm:$0xff] %vm294_vm1, %v4921_v11  ;;  %v4929_v51 = vadd.f32 %v3852_v10, %v2460_v1  ;;  %v2458_v8 = vadd.f32 %v2343_v54, %v2164_v18  ;;  %v3853_v32 = vpop.f32.mrf.mxu0  ;;  %v1877_v10 = vadd.f32 %v4805_v12, %v4697_v41  ;;  %v2174_v18 = vadd.f32 %v4799_v14, %v1879_v37 }
 0x1c4   : > { %v3819_v58 = vpop.f32.mrf.mxu1  ;;  %v1878_v54 = vadd.f32 %v4813_v15, %v4703_v2 }
 0x1c5   : > { %2786 = vst.msk [vmem:[%s4892_s20 + $0x30] sm:$0xff] %vm294_vm1, %v4929_v51  ;;  %v4937_v23 = vadd.f32 %v2637_v57, %v2458_v8  ;;  %v2461_v49 = vadd.f32 %v3819_v58, %v2167_v34  ;;  %v2640_v20 = vpop.f32.mrf.mxu0  ;;  %v2172_v57 = vadd.f32 %v4803_v53, %v1877_v10  ;;  %v1883_v8 = vadd.f32 %v4817_v31, %v4706_v24 }
 0x1c6   : > { %v2346_v42 = vpop.f32.mrf.mxu1  ;;  %v2173_v58 = vadd.f32 %v4811_v56, %v1878_v54 }
 0x1c7   : > { %2784 = vst.msk [vmem:[%s4892_s20 + $0x20] sm:$0xff] %vm294_vm1, %v4937_v23  ;;  %v4945_v55 = vadd.f32 %v3853_v32, %v2461_v49  ;;  %v2459_v27 = vadd.f32 %v2346_v42, %v2165_v4  ;;  %v3856_v43 = vpop.f32.mrf.mxu0  ;;  %v1881_v4 = vadd.f32 %v4821_v16, %v4709_v46  ;;  %v2178_v49 = vadd.f32 %v4815_v33, %v1883_v8  ;;  %v5370_v42 = vld [vmem:[#allocation18_spill] sm:$0xff] }
 0x1c8   : > { %v3822_v39 = vpop.f32.mrf.mxu1 }
 0x1c9   : > { %2787 = vst.msk [vmem:[%s4892_s20 + $0x38] sm:$0xff] %vm294_vm1, %v4945_v55  ;;  %v4953_v9 = vadd.f32 %v2640_v20, %v2459_v27  ;;  %v2464_v38 = vadd.f32 %v3822_v39, %v2170_v63  ;;  %v2653_v6 = vpop.f32.mrf.mxu0  ;;  %v5369_v20 = vld [vmem:[#allocation2_spill] sm:$0xff]  ;;  %v5371_v27 = vld [vmem:[#allocation16_spill] sm:$0xff]  ;;  %v5372_v39 = vld [vmem:[#allocation3_spill] sm:$0xff] }
 0x1ca   : > { %v2359_v21 = vpop.f32.mrf.mxu1  ;;  %v1884_v63 = vadd.f32 %v5370_v42, %v5369_v20 }
 0x1cb   : > { %2785 = vst.msk [vmem:[%s4892_s20 + $0x28] sm:$0xff] %vm294_vm1, %v4953_v9  ;;  %v4961_v19 = vadd.f32 %v3856_v43, %v2464_v38  ;;  %v2462_v50 = vadd.f32 %v2359_v21, %v2168_v44  ;;  %v3857_v26 = vpop.f32.mrf.mxu0  ;;  %v2176_v43 = vadd.f32 %v5371_v27, %v1881_v4  ;;  %v5373_v44 = vld [vmem:[#allocation20_spill] sm:$0xff]  ;;  %v5387_v27 = vld [vmem:[#allocation29_spill] sm:$0xff] }
 0x1cc   : > { %v3823_v62 = vpop.f32.mrf.mxu1  ;;  %v1882_v17 = vadd.f32 %v5373_v44, %v5372_v39 }
 0x1cd   : > { %2790 = vst.msk [vmem:[%s4892_s20 + $0x50] sm:$0xff] %vm294_vm1, %v4961_v19  ;;  %v4969_v22 = vadd.f32 %v2653_v6, %v2462_v50  ;;  %v2465_v3 = vadd.f32 %v3823_v62, %v2171_v48  ;;  %v2656_v52 = vpop.f32.mrf.mxu0  ;;  %v5374_v48 = vld [vmem:[#allocation17_spill] sm:$0xff]  ;;  %v5375_v50 = vld [vmem:[#allocation4_spill] sm:$0xff] }
 0x1ce   : > { %v2362_v30 = vpop.f32.mrf.mxu1  ;;  %v2179_v37 = vadd.f32 %v5374_v48, %v1884_v63  ;;  %v5389_v48 = vld [vmem:[#allocation9_spill] sm:$0xff] }
 0x1cf   : > { %2788 = vst.msk [vmem:[%s4892_s20 + $0x40] sm:$0xff] %vm294_vm1, %v4969_v22  ;;  %v4977_v45 = vadd.f32 %v3857_v26, %v2465_v3  ;;  %v2463_v41 = vadd.f32 %v2362_v30, %v2169_v61  ;;  %v3860_v12 = vpop.f32.mrf.mxu0  ;;  %v5376_v26 = vld [vmem:[#allocation22_spill] sm:$0xff]  ;;  %v5377_v30 = vld [vmem:[#allocation19_spill] sm:$0xff] }
 0x1d0   : > { %v3826_v1 = vpop.f32.mrf.mxu1  ;;  %v1887_v62 = vadd.f32 %v5376_v26, %v5375_v50 }
 0x1d1   : > { %2791 = vst.msk [vmem:[%s4892_s20 + $0x58] sm:$0xff] %vm294_vm1, %v4977_v45  ;;  %v4985_v14 = vadd.f32 %v2656_v52, %v2463_v41  ;;  %v2468_v28 = vadd.f32 %v3826_v1, %v2174_v18  ;;  %v2669_v29 = vpop.f32.mrf.mxu0  ;;  %v2177_v18 = vadd.f32 %v5377_v30, %v1882_v17  ;;  %v1885_v41 = vadd.f32 %v4837_v59, %v5378_v40  ;;  %v5393_v40 = vld [vmem:[#allocation33_spill] sm:$0xff] }
 0x1d2   : > { %v2375_v34 = vpop.f32.mrf.mxu1 }
 0x1d3   : > { %2789 = vst.msk [vmem:[%s4892_s20 + $0x48] sm:$0xff] %vm294_vm1, %v4985_v14  ;;  %v4993_v53 = vadd.f32 %v3860_v12, %v2468_v28  ;;  %v2466_v2 = vadd.f32 %v2375_v34, %v2172_v57  ;;  %v3861_v15 = vpop.f32.mrf.mxu0  ;;  %v5379_v28 = vld [vmem:[#allocation21_spill] sm:$0xff]  ;;  %v5380_v34 = vld [vmem:[#allocation6_spill] sm:$0xff] }
 0x1d4   : > { %v3827_v32 = vpop.f32.mrf.mxu1 }
 0x1d5   : > { %2794 = vst.msk [vmem:[%s4892_s20 + $0x70] sm:$0xff] %vm294_vm1, %v4993_v53  ;;  %v5001_v0 = vadd.f32 %v2669_v29, %v2466_v2  ;;  %v2469_v24 = vadd.f32 %v3827_v32, %v2175_v5  ;;  %v2672_v31 = vpop.f32.mrf.mxu0  ;;  %v2182_v29 = vadd.f32 %v5379_v28, %v1887_v62  ;;  %v5381_v5 = vld [vmem:[#allocation25_spill] sm:$0xff] }
 0x1d6   : > { %v2378_v13 = vpop.f32.mrf.mxu1  ;;  %v1888_v8 = vadd.f32 %v5381_v5, %v5380_v34  ;;  %v5395_v5 = vld [vmem:[#allocation11_spill] sm:$0xff] }
 0x1d7   : > { %2792 = vst.msk [vmem:[%s4892_s20 + $0x60] sm:$0xff] %vm294_vm1, %v5001_v0  ;;  %v5009_v56 = vadd.f32 %v3861_v15, %v2469_v24  ;;  %v2467_v46 = vadd.f32 %v2378_v13, %v2173_v58  ;;  %v3864_v16 = vpop.f32.mrf.mxu0  ;;  %v5382_v58 = vld [vmem:[#allocation23_spill] sm:$0xff] }
 0x1d8   : > { %v3830_v60 = vpop.f32.mrf.mxu1  ;;  %v2180_v4 = vadd.f32 %v5382_v58, %v1885_v41  ;;  %v5383_v24 = vld [vmem:[#allocation7_spill] sm:$0xff] }
 0x1d9   : > { %2795 = vst.msk [vmem:[%s4892_s20 + $0x78] sm:$0xff] %vm294_vm1, %v5009_v56  ;;  %v5017_v33 = vadd.f32 %v2672_v31, %v2467_v46  ;;  %v2472_v38 = vadd.f32 %v3830_v60, %v2178_v49  ;;  %v2685_v6 = vpop.f32.mrf.mxu0  ;;  %v5384_v31 = vld [vmem:[#allocation27_spill] sm:$0xff]  ;;  %v5385_v46 = vld [vmem:[#allocation24_spill] sm:$0xff] }
 0x1da   : > { %v2391_v21 = vpop.f32.mrf.mxu1  ;;  %v1886_v13 = vadd.f32 %v5384_v31, %v5383_v24  ;;  %v5386_v60 = vld [vmem:[#allocation8_spill] sm:$0xff] }
 0x1db   : > { %2793 = vst.msk [vmem:[%s4892_s20 + $0x68] sm:$0xff] %vm294_vm1, %v5017_v33  ;;  %v5025_v61 = vadd.f32 %v3864_v16, %v2472_v38  ;;  %v2470_v10 = vadd.f32 %v2391_v21, %v2176_v43  ;;  %v3865_v3 = vpop.f32.mrf.mxu0  ;;  %v2183_v16 = vadd.f32 %v5385_v46, %v1888_v8  ;;  %v1891_v43 = vadd.f32 %v5387_v27, %v5386_v60  ;;  %v5396_v8 = vld [vmem:[#allocation35_spill] sm:$0xff]  ;;  %v5397_v24 = vld [vmem:[#allocation32_spill] sm:$0xff]  ;;  %v5400_v27 = vld [vmem:[#allocation34_spill] sm:$0xff] }
 0x1dc   : > { %v3831_v52 = vpop.f32.mrf.mxu1 }
 0x1dd   : > { %2798 = vst.msk [vmem:[%s4892_s20 + $0x90] sm:$0xff] %vm294_vm1, %v5025_v61  ;;  %v5033_v12 = vadd.f32 %v2685_v6, %v2470_v10  ;;  %v2473_v1 = vadd.f32 %v3831_v52, %v2179_v37  ;;  %v2688_v57 = vpop.f32.mrf.mxu0  ;;  %v5388_v6 = vld [vmem:[#allocation26_spill] sm:$0xff]  ;;  %v5390_v37 = vld [vmem:[#allocation31_spill] sm:$0xff]  ;;  %v5391_v52 = vld [vmem:[#allocation28_spill] sm:$0xff] }
 0x1de   : > { %v2394_v54 = vpop.f32.mrf.mxu1  ;;  %v2181_v21 = vadd.f32 %v5388_v6, %v1886_v13  ;;  %v1889_v50 = vadd.f32 %v5390_v37, %v5389_v48  ;;  %v2186_v30 = vadd.f32 %v5391_v52, %v1891_v43  ;;  %v5398_v13 = vld [vmem:[#allocation12_spill] sm:$0xff] }
 0x1df   : > { %2796 = vst.msk [vmem:[%s4892_s20 + $0x80] sm:$0xff] %vm294_vm1, %v5033_v12  ;;  %v5041_v2 = vadd.f32 %v3865_v3, %v2473_v1  ;;  %v2471_v59 = vadd.f32 %v2394_v54, %v2177_v18  ;;  %v3868_v15 = vpop.f32.mrf.mxu0  ;;  %v5392_v18 = vld [vmem:[#allocation10_spill] sm:$0xff] }
 0x1e0   : > { %v3834_v32 = vpop.f32.mrf.mxu1  ;;  %v1892_v41 = vadd.f32 %v5393_v40, %v5392_v18 }
 0x1e1   : > { %2799 = vst.msk [vmem:[%s4892_s20 + $0x98] sm:$0xff] %vm294_vm1, %v5041_v2  ;;  %v5049_v49 = vadd.f32 %v2688_v57, %v2471_v59  ;;  %v2476_v20 = vadd.f32 %v3834_v32, %v2182_v29  ;;  %v2701_v42 = vpop.f32.mrf.mxu0  ;;  %v5394_v29 = vld [vmem:[#allocation30_spill] sm:$0xff]  ;;  %v1890_v59 = vadd.f32 %v5396_v8, %v5395_v5 }
 0x1e2   : > { %v2407_v63 = vpop.f32.mrf.mxu1  ;;  %v2184_v34 = vadd.f32 %v5394_v29, %v1889_v50  ;;  %v2187_v31 = vadd.f32 %v5397_v24, %v1892_v41  ;;  %v5403_v50 = vld [vmem:[#allocation36_spill] sm:$0xff] }
 0x1e3   : > { %2797 = vst.msk [vmem:[%s4892_s20 + $0x88] sm:$0xff] %vm294_vm1, %v5049_v49  ;;  %v5057_v39 = vadd.f32 %v3868_v15, %v2476_v20  ;;  %v2474_v44 = vadd.f32 %v2407_v63, %v2180_v4  ;;  %v3869_v17 = vpop.f32.mrf.mxu0  ;;  %v5399_v20 = vld [vmem:[#allocation37_spill] sm:$0xff]  ;;  %v2185_v43 = vadd.f32 %v5400_v27, %v1890_v59 }
 0x1e4   : > { %v3835_v38 = vpop.f32.mrf.mxu1 }
 0x1e5   : > { %2802 = vst.msk [vmem:[%s4892_s20 + $0xb0] sm:$0xff] %vm294_vm1, %v5057_v39  ;;  %v5065_v26 = vadd.f32 %v2701_v42, %v2474_v44  ;;  %v2477_v62 = vadd.f32 %v3835_v38, %v2183_v16  ;;  %v2704_v10 = vpop.f32.mrf.mxu0  ;;  %v1895_v42 = vadd.f32 %v5399_v20, %v5398_v13  ;;  %v5401_v44 = vld [vmem:[#allocation13_spill] sm:$0xff] }
 0x1e6   : > { %v2410_v3 = vpop.f32.mrf.mxu1 }
 0x1e7   : > { %2800 = vst.msk [vmem:[%s4892_s20 + $0xa0] sm:$0xff] %vm294_vm1, %v5065_v26  ;;  %v5073_v1 = vadd.f32 %v3869_v17, %v2477_v62  ;;  %v2475_v57 = vadd.f32 %v2410_v3, %v2181_v21  ;;  %v3872_v54 = vpop.f32.mrf.mxu0  ;;  %v5402_v17 = vld [vmem:[#allocation39_spill] sm:$0xff]  ;;  %v2190_v62 = vadd.f32 %v5403_v50, %v1895_v42  ;;  %v5405_v3 = vld [vmem:[#allocation41_spill] sm:$0xff] }
 0x1e8   : > { %v3838_v28 = vpop.f32.mrf.mxu1  ;;  %v1893_v38 = vadd.f32 %v5402_v17, %v5401_v44 }
 0x1e9   : > { %2803 = vst.msk [vmem:[%s4892_s20 + $0xb8] sm:$0xff] %vm294_vm1, %v5073_v1  ;;  %v5081_v15 = vadd.f32 %v2704_v10, %v2475_v57  ;;  %v2480_v32 = vadd.f32 %v3838_v28, %v2186_v30  ;;  %v2717_v58 = vpop.f32.mrf.mxu0  ;;  %v5404_v10 = vld [vmem:[#allocation14_spill] sm:$0xff]  ;;  %v5407_v28 = vld [vmem:[#allocation15_spill] sm:$0xff] }
 0x1ea   : > { %v2423_v4 = vpop.f32.mrf.mxu1  ;;  %v1896_v52 = vadd.f32 %v5405_v3, %v5404_v10  ;;  %v5406_v57 = vld [vmem:[#allocation38_spill] sm:$0xff]  ;;  %v1894_v29 = vadd.f32 %v4881_v35, %v5407_v28 }
 0x1eb   : > { %2801 = vst.msk [vmem:[%s4892_s20 + $0xa8] sm:$0xff] %vm294_vm1, %v5081_v15  ;;  %v5089_v63 = vadd.f32 %v3872_v54, %v2480_v32  ;;  %v2478_v46 = vadd.f32 %v2423_v4, %v2184_v34  ;;  %v3873_v16 = vpop.f32.mrf.mxu0  ;;  %v2188_v54 = vadd.f32 %v5406_v57, %v1893_v38  ;;  %v5408_v32 = vld [vmem:[#allocation40_spill] sm:$0xff] }
 0x1ec   : > { %v3839_v60 = vpop.f32.mrf.mxu1  ;;  %v2189_v13 = vadd.f32 %v4879_v25, %v1894_v29 }
 0x1ed   : > { %2806 = vst.msk [vmem:[%s4892_s20 + $0xd0] sm:$0xff] %vm294_vm1, %v5089_v63  ;;  %v5097_v6 = vadd.f32 %v2717_v58, %v2478_v46  ;;  %v2481_v21 = vadd.f32 %v3839_v60, %v2187_v31  ;;  %v2720_v48 = vpop.f32.mrf.mxu0  ;;  %v2191_v58 = vadd.f32 %v5408_v32, %v1896_v52 }
 0x1ee   : > { %v2426_v37 = vpop.f32.mrf.mxu1 }
 0x1ef   : > { %2804 = vst.msk [vmem:[%s4892_s20 + $0xc0] sm:$0xff] %vm294_vm1, %v5097_v6  ;;  %v5105_v30 = vadd.f32 %v3873_v16, %v2481_v21  ;;  %v2479_v18 = vadd.f32 %v2426_v37, %v2185_v43  ;;  %v3876_v40 = vpop.f32.mrf.mxu0 }
 0x1f0   : > { %v3842_v41 = vpop.f32.mrf.mxu1 }
 0x1f1   : > { %2807 = vst.msk [vmem:[%s4892_s20 + $0xd8] sm:$0xff] %vm294_vm1, %v5105_v30  ;;  %v5113_v34 = vadd.f32 %v2720_v48, %v2479_v18  ;;  %v2484_v5 = vadd.f32 %v3842_v41, %v2190_v62  ;;  %v2733_v8 = vpop.f32.mrf.mxu0 }
 0x1f2   : > { %v2439_v59 = vpop.f32.mrf.mxu1 }
 0x1f3   : > { %2805 = vst.msk [vmem:[%s4892_s20 + $0xc8] sm:$0xff] %vm294_vm1, %v5113_v34  ;;  %v5119_v4 = vadd.f32 %v3876_v40, %v2484_v5  ;;  %v2482_v24 = vadd.f32 %v2439_v59, %v2188_v54  ;;  %v3877_v31 = vpop.f32.mrf.mxu0 }
 0x1f4   : > { %v3843_v35 = vpop.f32.mrf.mxu1 }
 0x1f5   : > { %2810 = vst.msk [vmem:[%s4892_s20 + $0xf0] sm:$0xff] %vm294_vm1, %v5119_v4  ;;  %v5125_v20 = vadd.f32 %v2733_v8, %v2482_v24  ;;  %v2485_v42 = vadd.f32 %v3843_v35, %v2191_v58  ;;  %v2736_v27 = vpop.f32.mrf.mxu0 }
 0x1f6   : > { %v2442_v46 = vpop.f32.mrf.mxu1 }
 0x1f7   : > { %2808 = vst.msk [vmem:[%s4892_s20 + $0xe0] sm:$0xff] %vm294_vm1, %v5125_v20  ;;  %v5130_v16 = vadd.f32 %v3877_v31, %v2485_v42  ;;  %v2483_v60 = vadd.f32 %v2442_v46, %v2189_v13  ;;  %2815 = sbr.rel (%p3416_p5) target bundleno = 510 (0x1fe), region = 32 }
 0x1f9   : > { %2811 = vst.msk [vmem:[%s4892_s20 + $0xf8] sm:$0xff] %vm294_vm1, %v5130_v16  ;;  %v5135_v43 = vadd.f32 %v2736_v27, %v2483_v60 }
 0x1fb   : > { %2809 = vst.msk [vmem:[%s4892_s20 + $0xe8] sm:$0xff] %vm294_vm1, %v5135_v43 }
 0x1fc   : > { %vm2816_vm2 = vcmask 57344   ;;  %v3908_v25 = vmov 0.0  }
 0x1fd   : > { %2817 = vst.msk [vmem:[%s5327_s3] sm:$0x1] %vm2816_vm2, %v3908_v25  ;;  %2818 = vst.msk [vmem:[%s5328_s4] sm:$0x1] %vm2816_vm2, %v3908_v25 }
 0x1fe PF: > { %v2820_v44 = vsel %vm294_vm1, %v4905_v47, 0.0  ;;  %v2821_v17 = vsel %vm294_vm1, %v4921_v11, 0.0  ;;  %v2823_v38 = vsel %vm294_vm1, %v4897_v36, 0.0  ;;  %v2825_v48 = vsel %vm294_vm1, %v4913_v7, 0.0 }
 0x1ff   : > { %v2822_v21 = vadd.f32 %v2821_v17, %v2820_v44  ;;  %v2827_v50 = vsel %vm294_vm1, %v4937_v23, 0.0  ;;  %v2829_v10 = vsel %vm294_vm1, %v4953_v9, 0.0  ;;  %v2831_v52 = vsel %vm294_vm1, %v4929_v51, 0.0 }
 0x200   : > { %v2833_v40 = vsel %vm294_vm1, %v4945_v55, 0.0  ;;  %v2835_v57 = vsel %vm294_vm1, %v4969_v22, 0.0  ;;  %v2837_v28 = vsel %vm294_vm1, %v4985_v14, 0.0  ;;  %v2893_v29 = vmul.f32 %v4905_v47, %v4905_v47 }
 0x201   : > { %v2824_v37 = vadd.f32 %v2823_v38, %v2822_v21  ;;  %v2894_v5 = vmul.f32 %v4921_v11, %v4921_v11  ;;  %v2895_v59 = vmul.f32 %v4897_v36, %v4897_v36  ;;  %v2839_v32 = vsel %vm294_vm1, %v4961_v19, 0.0 }
 0x202   : > { %v2896_v58 = vmul.f32 %v4913_v7, %v4913_v7  ;;  %v2841_v35 = vsel %vm294_vm1, %v4977_v45, 0.0  ;;  %v2897_v47 = vmul.f32 %v4937_v23, %v4937_v23  ;;  %v2925_v31 = vsel %vm294_vm1, %v2893_v29, 0.0 }
 0x203   : > { %v2826_v62 = vadd.f32 %v2825_v48, %v2824_v37  ;;  %v2926_v11 = vsel %vm294_vm1, %v2894_v5, 0.0  ;;  %v2928_v36 = vsel %vm294_vm1, %v2895_v59, 0.0  ;;  %v2843_v46 = vsel %vm294_vm1, %v5001_v0, 0.0 }
 0x204   : > { %v2927_v42 = vadd.f32 %v2926_v11, %v2925_v31  ;;  %v2898_v7 = vmul.f32 %v4953_v9, %v4953_v9  ;;  %v2930_v60 = vsel %vm294_vm1, %v2896_v58, 0.0  ;;  %v2845_v23 = vsel %vm294_vm1, %v5017_v33, 0.0 }
 0x205   : > { %v2828_v3 = vadd.f32 %v2827_v50, %v2826_v62  ;;  %v2899_v44 = vmul.f32 %v4929_v51, %v4929_v51  ;;  %v2932_v17 = vsel %vm294_vm1, %v2897_v47, 0.0  ;;  %v2847_v48 = vsel %vm294_vm1, %v4993_v53, 0.0 }
 0x206   : > { %v2929_v25 = vadd.f32 %v2928_v36, %v2927_v42  ;;  %v2900_v9 = vmul.f32 %v4945_v55, %v4945_v55  ;;  %v2934_v37 = vsel %vm294_vm1, %v2898_v7, 0.0  ;;  %v2901_v51 = vmul.f32 %v4969_v22, %v4969_v22 }
 0x207   : > { %v2830_v18 = vadd.f32 %v2829_v10, %v2828_v3  ;;  %v2849_v10 = vsel %vm294_vm1, %v5009_v56, 0.0  ;;  %v2936_v3 = vsel %vm294_vm1, %v2899_v44, 0.0  ;;  %v2902_v55 = vmul.f32 %v4985_v14, %v4985_v14 }
 0x208   : > { %v2931_v21 = vadd.f32 %v2930_v60, %v2929_v25  ;;  %v2903_v22 = vmul.f32 %v4961_v19, %v4961_v19  ;;  %v2940_v29 = vsel %vm294_vm1, %v2901_v51, 0.0  ;;  %v2855_v59 = vsel %vm294_vm1, %v5025_v61, 0.0 }
 0x209   : > { %v2832_v41 = vadd.f32 %v2831_v52, %v2830_v18  ;;  %v2904_v14 = vmul.f32 %v4977_v45, %v4977_v45  ;;  %v2905_v19 = vmul.f32 %v5001_v0, %v5001_v0  ;;  %v2906_v45 = vmul.f32 %v5017_v33, %v5017_v33 }
 0x20a   : > { %v2933_v62 = vadd.f32 %v2932_v17, %v2931_v21  ;;  %v2944_v47 = vsel %vm294_vm1, %v2903_v22, 0.0  ;;  %v2861_v7 = vsel %vm294_vm1, %v5081_v15, 0.0  ;;  %v2907_v0 = vmul.f32 %v4993_v53, %v4993_v53 }
 0x20b   : > { %v2834_v54 = vadd.f32 %v2833_v40, %v2832_v41  ;;  %v2851_v40 = vsel %vm294_vm1, %v5033_v12, 0.0  ;;  %v2938_v41 = vsel %vm294_vm1, %v2900_v9, 0.0  ;;  %v2946_v42 = vsel %vm294_vm1, %v2904_v14, 0.0 }
 0x20c   : > { %v2935_v18 = vadd.f32 %v2934_v37, %v2933_v62  ;;  %v2948_v60 = vsel %vm294_vm1, %v2905_v19, 0.0  ;;  %v2908_v33 = vmul.f32 %v5009_v56, %v5009_v56  ;;  %v2950_v44 = vsel %vm294_vm1, %v2906_v45, 0.0 }
 0x20d   : > { %v2836_v8 = vadd.f32 %v2835_v57, %v2834_v54  ;;  %v2865_v21 = vsel %vm294_vm1, %v5073_v1, 0.0  ;;  %v2909_v53 = vmul.f32 %v5033_v12, %v5033_v12  ;;  %v2910_v56 = vmul.f32 %v5049_v49, %v5049_v49 }
 0x20e   : > { %v2937_v54 = vadd.f32 %v2936_v3, %v2935_v18  ;;  %v2954_v62 = vsel %vm294_vm1, %v2908_v33, 0.0  ;;  %v2869_v3 = vsel %vm294_vm1, %v5113_v34, 0.0  ;;  %v2911_v12 = vmul.f32 %v5025_v61, %v5025_v61 }
 0x20f   : > { %v2838_v24 = vadd.f32 %v2837_v28, %v2836_v8  ;;  %v2853_v28 = vsel %vm294_vm1, %v5049_v49, 0.0  ;;  %v2912_v49 = vmul.f32 %v5041_v2, %v5041_v2  ;;  %v2913_v61 = vmul.f32 %v5065_v26, %v5065_v26 }
 0x210   : > { %v2939_v8 = vadd.f32 %v2938_v41, %v2937_v54  ;;  %v2958_v41 = vsel %vm294_vm1, %v2910_v56, 0.0  ;;  %v2960_v22 = vsel %vm294_vm1, %v2911_v12, 0.0  ;;  %v2881_v45 = vsel %vm294_vm1, %v5130_v16, 0.0 }
 0x211   : > { %v2840_v13 = vadd.f32 %v2839_v32, %v2838_v24  ;;  %v2942_v32 = vsel %vm294_vm1, %v2902_v55, 0.0  ;;  %v2871_v55 = vsel %vm294_vm1, %v5089_v63, 0.0  ;;  %vm2890_vm3 = vcmask 57344  }
 0x212   : > { %v2941_v24 = vadd.f32 %v2940_v29, %v2939_v8  ;;  %v2875_v8 = vsel %vm294_vm1, %v5125_v20, 0.0 }
 0x213   : > { %v2842_v27 = vadd.f32 %v2841_v35, %v2840_v13  ;;  %v2857_v35 = vsel %vm294_vm1, %v5041_v2, 0.0  ;;  %v2859_v13 = vsel %vm294_vm1, %v5065_v26, 0.0  ;;  %v2914_v2 = vmul.f32 %v5081_v15, %v5081_v15 }
 0x214   : > { %v2943_v11 = vadd.f32 %v2942_v32, %v2941_v24  ;;  %v2915_v26 = vmul.f32 %v5057_v39, %v5057_v39  ;;  %v2964_v24 = vsel %vm294_vm1, %v2913_v61, 0.0  ;;  %v2916_v15 = vmul.f32 %v5073_v1, %v5073_v1  ;;  %v2892_v61 = vld [vmem:[%s5328_s4] sm:$0x1] }
 0x215   : > { %v2844_v38 = vadd.f32 %v2843_v46, %v2842_v27 }
 0x216   : > { %v2945_v46 = vadd.f32 %v2944_v47, %v2943_v11  ;;  %v2879_v47 = vsel %vm294_vm1, %v5119_v4, 0.0 }
 0x217   : > { %v2846_v50 = vadd.f32 %v2845_v23, %v2844_v38  ;;  %v2863_v23 = vsel %vm294_vm1, %v5057_v39, 0.0  ;;  %v2917_v39 = vmul.f32 %v5097_v6, %v5097_v6 }
 0x218   : > { %v2947_v25 = vadd.f32 %v2946_v42, %v2945_v46  ;;  %v2968_v42 = vsel %vm294_vm1, %v2915_v26, 0.0 }
 0x219   : > { %v2848_v52 = vadd.f32 %v2847_v48, %v2846_v50  ;;  %v2952_v48 = vsel %vm294_vm1, %v2907_v0, 0.0  ;;  %v2867_v50 = vsel %vm294_vm1, %v5097_v6, 0.0  ;;  %v2970_v0 = vsel %vm294_vm1, %v2916_v15, 0.0 }
 0x21a   : > { %v2949_v38 = vadd.f32 %v2948_v60, %v2947_v25  ;;  %v2972_v25 = vsel %vm294_vm1, %v2917_v39, 0.0  ;;  %v2920_v6 = vmul.f32 %v5105_v30, %v5105_v30 }
 0x21b   : > { %v2850_v57 = vadd.f32 %v2849_v10, %v2848_v52  ;;  %v2956_v52 = vsel %vm294_vm1, %v2909_v53, 0.0 }
 0x21c   : > { %v2951_v37 = vadd.f32 %v2950_v44, %v2949_v38 }
 0x21d   : > { %v2852_v5 = vadd.f32 %v2851_v40, %v2850_v57 }
 0x21e   : > { %v2953_v51 = vadd.f32 %v2952_v48, %v2951_v37 }
 0x21f   : > { %v2854_v58 = vadd.f32 %v2853_v28, %v2852_v5  ;;  %v2873_v28 = vsel %vm294_vm1, %v5105_v30, 0.0  ;;  %v2923_v30 = vmul.f32 %v5119_v4, %v5119_v4 }
 0x220   : > { %v2955_v40 = vadd.f32 %v2954_v62, %v2953_v51  ;;  %v2924_v51 = vmul.f32 %v5130_v16, %v5130_v16 }
 0x221   : > { %v2856_v31 = vadd.f32 %v2855_v59, %v2854_v58  ;;  %v2962_v59 = vsel %vm294_vm1, %v2912_v49, 0.0  ;;  %v2877_v58 = vsel %vm294_vm1, %v5135_v43, 0.0 }
 0x222   : > { %v2957_v54 = vadd.f32 %v2956_v52, %v2955_v40  ;;  %v2984_v52 = vsel %vm294_vm1, %v2923_v30, 0.0  ;;  %v2986_v40 = vsel %vm294_vm1, %v2924_v51, 0.0 }
 0x223   : > { %v2858_v36 = vadd.f32 %v2857_v35, %v2856_v31  ;;  %v2966_v31 = vsel %vm294_vm1, %v2914_v2, 0.0 }
 0x224   : > { %v2959_v5 = vadd.f32 %v2958_v41, %v2957_v54 }
 0x225   : > { %v2860_v27 = vadd.f32 %v2859_v13, %v2858_v36 }
 0x226   : > { %v2961_v32 = vadd.f32 %v2960_v22, %v2959_v5 }
 0x227   : > { %v2862_v17 = vadd.f32 %v2861_v7, %v2860_v27  ;;  %v2918_v7 = vmul.f32 %v5113_v34, %v5113_v34  ;;  %v2919_v27 = vmul.f32 %v5089_v63, %v5089_v63  ;;  %v2921_v34 = vmul.f32 %v5125_v20, %v5125_v20  ;;  %v2819_v20 = vld [vmem:[%s5327_s3] sm:$0x1] }
 0x228   : > { %v2963_v19 = vadd.f32 %v2962_v59, %v2961_v32  ;;  %v2922_v63 = vmul.f32 %v5135_v43, %v5135_v43 }
 0x229   : > { %v2864_v9 = vadd.f32 %v2863_v23, %v2862_v17  ;;  %v2974_v44 = vsel %vm294_vm1, %v2918_v7, 0.0  ;;  %v2980_v56 = vsel %vm294_vm1, %v2921_v34, 0.0 }
 0x22a   : > { %v2965_v13 = vadd.f32 %v2964_v24, %v2963_v19  ;;  %v2982_v43 = vsel %vm294_vm1, %v2922_v63, 0.0 }
 0x22b   : > { %v2866_v10 = vadd.f32 %v2865_v21, %v2864_v9  ;;  %v2976_v21 = vsel %vm294_vm1, %v2919_v27, 0.0  ;;  %v2978_v9 = vsel %vm294_vm1, %v2920_v6, 0.0 }
 0x22c   : > { %v2967_v46 = vadd.f32 %v2966_v31, %v2965_v13 }
 0x22d   : > { %v2868_v18 = vadd.f32 %v2867_v50, %v2866_v10 }
 0x22e   : > { %v2969_v60 = vadd.f32 %v2968_v42, %v2967_v46 }
 0x22f   : > { %v2870_v57 = vadd.f32 %v2869_v3, %v2868_v18 }
 0x230   : > { %v2971_v33 = vadd.f32 %v2970_v0, %v2969_v60 }
 0x231   : > { %v2872_v29 = vadd.f32 %v2871_v55, %v2870_v57 }
 0x232   : > { %v2973_v38 = vadd.f32 %v2972_v25, %v2971_v33 }
 0x233   : > { %v2874_v14 = vadd.f32 %v2873_v28, %v2872_v29 }
 0x234   : > { %v2975_v48 = vadd.f32 %v2974_v44, %v2973_v38 }
 0x235   : > { %v2876_v35 = vadd.f32 %v2875_v8, %v2874_v14 }
 0x236   : > { %v2977_v50 = vadd.f32 %v2976_v21, %v2975_v48 }
 0x237   : > { %v2878_v11 = vadd.f32 %v2877_v58, %v2876_v35 }
 0x238   : > { %v2979_v10 = vadd.f32 %v2978_v9, %v2977_v50 }
 0x239   : > { %v2880_v36 = vadd.f32 %v2879_v47, %v2878_v11 }
 0x23a   : > { %v2981_v12 = vadd.f32 %v2980_v56, %v2979_v10 }
 0x23b   : > { %v2882_v1 = vadd.f32 %v2881_v45, %v2880_v36 }
 0x23c   : > { %v2983_v4 = vadd.f32 %v2982_v43, %v2981_v12 }
 0x23d   : > { %v2883_v23 = vrot.slane %v2882_v1, 4 }
 0x23e   : > { %v2985_v55 = vadd.f32 %v2984_v52, %v2983_v4 }
 0x23f   : > { %v2884_v17 = vadd.f32 %v2883_v23, %v2882_v1 }
 0x240   : > { %v2987_v49 = vadd.f32 %v2986_v40, %v2985_v55 }
 0x241   : > { %v2885_v53 = vrot.slane %v2884_v17, 2 }
 0x242   : > { %v2988_v41 = vrot.slane %v2987_v49, 4 }
 0x243   : > { %v2886_v37 = vadd.f32 %v2885_v53, %v2884_v17 }
 0x244   : > { %v2989_v16 = vadd.f32 %v2988_v41, %v2987_v49 }
 0x245   : > { %v2887_v62 = vrot.slane %v2886_v37, 1 }
 0x246   : > { %v2990_v57 = vrot.slane %v2989_v16, 2 }
 0x247   : > { %v2888_v3 = vadd.f32 %v2887_v62, %v2886_v37 }
 0x248   : > { %v2991_v54 = vadd.f32 %v2990_v57, %v2989_v16 }
 0x249   : > { %v2889_v18 = vadd.f32 %v2888_v3, %v2819_v20 }
 0x24a   : > { %v2992_v28 = vrot.slane %v2991_v54, 1 }
 0x24b   : > { %2891 = vst.msk [vmem:[%s5327_s3] sm:$0x1] %vm2890_vm3, %v2889_v18 }
 0x24c   : > { %v2993_v22 = vadd.f32 %v2992_v28, %v2991_v54 }
 0x24e   : > { %v2994_v29 = vadd.f32 %v2993_v22, %v2892_v61 }
 0x250   : > { %2995 = vst.msk [vmem:[%s5328_s4] sm:$0x1] %vm2890_vm3, %v2994_v29 }
 0x251 PF: > { %s15_s15 = sadd.s32 1, %s3906_s15  }
 0x252   : > { %p12_p6 = scmp.ge.s32.totalorder %s15_s15, 4  }
 0x254   :  { %14 = sbr.rel (!%p12_p6) target bundleno = 1 (0x1), region = 88 }

</bundles_post_ra>
